<compile_context>
chip_gen: v7x
topology: tpu7x:2x2x1
jax: 0.10.0
libtpu: 0.0.40
codegen_flags: <defaults>
</compile_context>

<pallas_src>
import math

import jax
import jax.numpy as jnp
from jax import lax
from jax.experimental import pallas as pl
from jax.experimental.pallas import tpu as pltpu  # noqa: F401 (TPU backend import)

# --- model hyper-params (from the PyTorch script) ---
VOCAB_SIZE = 65          # synthetic stand-in for len(sorted(set(text)))
PAD_VOCAB = 128          # lane-padded lm_head width (cols 65..127 are zero weight)
N_EMBD = 64
BLOCK_SIZE = 32
N_HEAD = 4
N_LAYER = 4
HEAD_SIZE = N_EMBD // N_HEAD
LN_EPS = 1e-5            # torch.nn.LayerNorm default


# ---------------------------------------------------------------------------
# in-kernel math helpers (elementwise / reductions only -> always lowerable)
# ---------------------------------------------------------------------------
def _layernorm(x, gamma, beta):
    mu = jnp.mean(x, axis=-1, keepdims=True)
    var = jnp.mean((x - mu) ** 2, axis=-1, keepdims=True)
    return (x - mu) * lax.rsqrt(var + LN_EPS) * gamma + beta


def _gelu_tanh(x):
    # tanh-approx GELU: transcendental on the EUP slot instead of a VALU erf
    # polynomial. Deviates from exact-erf nn.GELU by < ~1e-3 abs.
    c = math.sqrt(2.0 / math.pi)
    return 0.5 * x * (1.0 + jnp.tanh(c * (x + 0.044715 * x * x * x)))


# ---------------------------------------------------------------------------
# fused forward kernel: all 4 blocks unrolled in one body + final LN / lm_head
# ---------------------------------------------------------------------------
def _make_gpt_kernel(B, T):
    M = B * T
    C = N_EMBD
    HS = HEAD_SIZE
    H = N_HEAD

    def kernel(x_ref, ln1g_ref, ln1b_ref, wq_ref, wk_ref, wv_ref, wo_ref, bo_ref,
               ln2g_ref, ln2b_ref, w1_ref, b1_ref, w2_ref, b2_ref,
               lnfg_ref, lnfb_ref, wh_ref, bh_ref, logits_ref):
        x = x_ref[...]                                            # (M, C) f32

        # causal bias, built ONCE (hoisted out of the layer loop)
        causal = (lax.broadcasted_iota(jnp.int32, (T, T), 0) >=
                  lax.broadcasted_iota(jnp.int32, (T, T), 1))
        bias = jnp.where(causal, 0.0, -1e30)[None, :, :]          # (1, T, T)
        scale = 1.0 / math.sqrt(C)        # torch: wei = q @ k^T / n_embd**0.5

        def split_heads(z):   # (M, C) -> (H*B, T, hs); head hd at rows [hd*B:(hd+1)*B]
            return jnp.concatenate(
                [z[:, hd * HS:(hd + 1) * HS].reshape(B, T, HS) for hd in range(H)],
                axis=0)

        for l in range(N_LAYER):          # fully unrolled in-kernel layer loop
            # ---------------- multi-head causal self-attention ----------------
            h = _layernorm(x, ln1g_ref[l], ln1b_ref[l])
            hb = h.astype(jnp.bfloat16)   # single cast reused by Q/K/V matmuls
            q = jnp.dot(hb, wq_ref[l], preferred_element_type=jnp.float32)  # (M, C)
            k = jnp.dot(hb, wk_ref[l], preferred_element_type=jnp.float32)
            v = jnp.dot(hb, wv_ref[l], preferred_element_type=jnp.float32)

            qh, kh, vh = split_heads(q), split_heads(k), split_heads(v)
            s = jnp.einsum('ztd,zsd->zts', qh, kh,
                           preferred_element_type=jnp.float32) * scale + bias
            s = s - jnp.max(s, axis=-1, keepdims=True)
            p = jnp.exp(s)
            p = p / jnp.sum(p, axis=-1, keepdims=True)   # exact softmax division
            # attention-prob dropout: identity in eval mode
            o = jnp.einsum('zts,zsd->ztd', p, vh,
                           preferred_element_type=jnp.float32)    # (H*B, T, hs)
            # merge heads: column block hd == head hd (== torch.cat(..., dim=-1))
            o2d = jnp.concatenate(
                [o[hd * B:(hd + 1) * B].reshape(M, HS) for hd in range(H)],
                axis=1)                                           # (M, C)
            attn = jnp.dot(o2d.astype(jnp.bfloat16), wo_ref[l],
                           preferred_element_type=jnp.float32) + bo_ref[l]
            x = x + attn                          # residual (dropout = identity)

            # ------------------------- feed-forward ---------------------------
            h2 = _layernorm(x, ln2g_ref[l], ln2b_ref[l])
            y = jnp.dot(h2.astype(jnp.bfloat16), w1_ref[l],
                        preferred_element_type=jnp.float32) + b1_ref[l]
            y = _gelu_tanh(y)
            y = jnp.dot(y.astype(jnp.bfloat16), w2_ref[l],
                        preferred_element_type=jnp.float32) + b2_ref[l]
            x = x + y                             # residual (dropout = identity)

        # -------------------- final LayerNorm + lm_head ------------------------
        hf = _layernorm(x, lnfg_ref[...], lnfb_ref[...])
        logits = jnp.dot(hf.astype(jnp.bfloat16), wh_ref[...],
                         preferred_element_type=jnp.float32) + bh_ref[...]
        logits_ref[...] = logits.astype(logits_ref.dtype)

    return kernel


# ---------------------------------------------------------------------------
# parameter init (deterministic, synthetic; matmul weights stored bf16)
# ---------------------------------------------------------------------------
def init_params(key):
    def nrm(k, shape, scale=0.02):
        return scale * jax.random.normal(k, shape, dtype=jnp.float32)

    keys = jax.random.split(key, 3 + N_LAYER)

    wq, wk, wv, wo, w1, w2 = [], [], [], [], [], []
    for li in range(N_LAYER):
        lk = jax.random.split(keys[3 + li], 6)
        wq.append(nrm(lk[0], (N_EMBD, N_EMBD)))   # head hd = cols [hd*hs:(hd+1)*hs]
        wk.append(nrm(lk[1], (N_EMBD, N_EMBD)))
        wv.append(nrm(lk[2], (N_EMBD, N_EMBD)))
        wo.append(nrm(lk[3], (N_EMBD, N_EMBD)))
        w1.append(nrm(lk[4], (N_EMBD, 4 * N_EMBD)))
        w2.append(nrm(lk[5], (4 * N_EMBD, N_EMBD)))

    L = N_LAYER
    w_head = jnp.pad(nrm(keys[2], (N_EMBD, VOCAB_SIZE)),
                     ((0, 0), (0, PAD_VOCAB - VOCAB_SIZE)))   # zero cols 65..127

    return {
        'tok_emb': nrm(keys[0], (VOCAB_SIZE, N_EMBD)),
        'pos_emb': nrm(keys[1], (BLOCK_SIZE, N_EMBD)),
        # ---- per-layer stacked params (leading axis = layer) ----
        'ln1_g': jnp.ones((L, 1, N_EMBD), jnp.float32),
        'ln1_b': jnp.zeros((L, 1, N_EMBD), jnp.float32),
        'wq':   jnp.stack(wq).astype(jnp.bfloat16),           # (L, C, C)
        'wk':   jnp.stack(wk).astype(jnp.bfloat16),           # (L, C, C)
        'wv':   jnp.stack(wv).astype(jnp.bfloat16),           # (L, C, C)
        'wo':   jnp.stack(wo).astype(jnp.bfloat16),           # (L, C, C)
        'bo':   jnp.zeros((L, 1, N_EMBD), jnp.float32),
        'ln2_g': jnp.ones((L, 1, N_EMBD), jnp.float32),
        'ln2_b': jnp.zeros((L, 1, N_EMBD), jnp.float32),
        'w1':   jnp.stack(w1).astype(jnp.bfloat16),           # (L, C, 4C)
        'b1':   jnp.zeros((L, 1, 4 * N_EMBD), jnp.float32),
        'w2':   jnp.stack(w2).astype(jnp.bfloat16),           # (L, 4C, C)
        'b2':   jnp.zeros((L, 1, N_EMBD), jnp.float32),
        # ---- final LN + lane-padded lm_head ----
        'lnf_g': jnp.ones((1, N_EMBD), jnp.float32),
        'lnf_b': jnp.zeros((1, N_EMBD), jnp.float32),
        'w_head': w_head.astype(jnp.bfloat16),                # (C, 128)
        'b_head': jnp.zeros((1, PAD_VOCAB), jnp.float32),
    }


# ---------------------------------------------------------------------------
# forward (embedding gathers are plain-JAX glue; everything else is the kernel)
# ---------------------------------------------------------------------------
@jax.jit
def forward(params, idx):
    """BigramLanguageModel.forward(idx, targets=None) -> logits (B, T, vocab)."""
    B, T = idx.shape
    tok_emb = jnp.take(params['tok_emb'], idx, axis=0)       # (B, T, C) glue gather
    pos_emb = params['pos_emb'][:T]                          # (T, C)    glue
    x2d = (tok_emb + pos_emb[None, :, :]).reshape(B * T, N_EMBD).astype(jnp.float32)
    M = B * T

    args = (x2d,
            params['ln1_g'], params['ln1_b'],
            params['wq'], params['wk'], params['wv'], params['wo'], params['bo'],
            params['ln2_g'], params['ln2_b'],
            params['w1'], params['b1'], params['w2'], params['b2'],
            params['lnf_g'], params['lnf_b'],
            params['w_head'], params['b_head'])

    # advisory cost estimate for XLA scheduling around the custom call
    flops = N_LAYER * (3 * 2 * M * N_EMBD * N_EMBD                 # q/k/v proj
                       + 2 * 2 * B * N_HEAD * T * T * HEAD_SIZE    # scores + p@v
                       + 2 * M * N_EMBD * N_EMBD                   # out proj
                       + 2 * 2 * M * N_EMBD * 4 * N_EMBD)          # ffn
    flops += 2 * M * N_EMBD * PAD_VOCAB                            # lm_head
    transcendentals = N_LAYER * (B * N_HEAD * T * T + M * 4 * N_EMBD)
    bytes_accessed = sum(int(a.size) * a.dtype.itemsize for a in args)
    bytes_accessed += M * PAD_VOCAB * 4

    # Single invocation (no grid): every operand is a whole-array VMEM block
    # (~400 KB total), so the entire forward runs with one launch and zero
    # inter-layer HBM traffic.
    logits_padded = pl.pallas_call(
        _make_gpt_kernel(B, T),
        out_shape=jax.ShapeDtypeStruct((M, PAD_VOCAB), jnp.float32),
        cost_estimate=pl.CostEstimate(
            flops=flops, transcendentals=transcendentals,
            bytes_accessed=bytes_accessed),
    )(*args)

    return logits_padded.reshape(B, T, PAD_VOCAB)[:, :, :VOCAB_SIZE]


if __name__ == "__main__":
    key = jax.random.PRNGKey(0)
    pkey, ikey = jax.random.split(key)
    params = init_params(pkey)

    B, T = 2, 8                                              # T <= block_size
    idx = jax.random.randint(ikey, (B, T), 0, VOCAB_SIZE, dtype=jnp.int32)

    logits = forward(params, idx)
    logits = jax.block_until_ready(logits)
    assert logits.shape == (B, T, VOCAB_SIZE)
    assert bool(jnp.all(jnp.isfinite(logits)))
    print("KERNEL_OK")
</pallas_src>

<mosaic_0001>
module attributes {stable_mosaic.version = 11 : i64} {
  func.func @kernel(%arg0: memref<16x64xf32, #tpu.memory_space<vmem>>, %arg1: memref<4x1x64xf32, #tpu.memory_space<vmem>>, %arg2: memref<4x1x64xf32, #tpu.memory_space<vmem>>, %arg3: memref<4x64x64xbf16, #tpu.memory_space<vmem>>, %arg4: memref<4x64x64xbf16, #tpu.memory_space<vmem>>, %arg5: memref<4x64x64xbf16, #tpu.memory_space<vmem>>, %arg6: memref<4x64x64xbf16, #tpu.memory_space<vmem>>, %arg7: memref<4x1x64xf32, #tpu.memory_space<vmem>>, %arg8: memref<4x1x64xf32, #tpu.memory_space<vmem>>, %arg9: memref<4x1x64xf32, #tpu.memory_space<vmem>>, %arg10: memref<4x64x256xbf16, #tpu.memory_space<vmem>>, %arg11: memref<4x1x256xf32, #tpu.memory_space<vmem>>, %arg12: memref<4x256x64xbf16, #tpu.memory_space<vmem>>, %arg13: memref<4x1x64xf32, #tpu.memory_space<vmem>>, %arg14: memref<1x64xf32, #tpu.memory_space<vmem>>, %arg15: memref<1x64xf32, #tpu.memory_space<vmem>>, %arg16: memref<64x128xbf16, #tpu.memory_space<vmem>>, %arg17: memref<1x128xf32, #tpu.memory_space<vmem>>, %arg18: memref<16x128xf32, #tpu.memory_space<vmem>>) attributes {dimension_semantics = [], scalar_prefetch = 0 : i64, scratch_operands = 0 : i64, tpu.core_type = #tpu.core_type<tc>} {
    %c0 = arith.constant 0 : index
    %c0_0 = arith.constant 0 : index
    %0 = vector.load %arg0[%c0, %c0_0] : memref<16x64xf32, #tpu.memory_space<vmem>>, vector<16x64xf32>
    %1 = tpu.iota {dimensions = array<i32: 0>} : vector<8x8xi32>
    %2 = tpu.iota {dimensions = array<i32: 1>} : vector<8x8xi32>
    %3 = arith.cmpi sge, %1, %2 : vector<8x8xi32>
    %cst = arith.constant 0.000000e+00 : f32
    %cst_1 = arith.constant -1.000000e+30 : f32
    %4 = vector.broadcast %cst : f32 to vector<8x8xf32>
    %5 = vector.broadcast %cst_1 : f32 to vector<8x8xf32>
    %6 = arith.select %3, %4, %5 : vector<8x8xi1>, vector<8x8xf32>
    %7 = vector.shape_cast %6 : vector<8x8xf32> to vector<1x8x8xf32>
    %c0_2 = arith.constant 0 : index
    %c0_3 = arith.constant 0 : index
    %c0_4 = arith.constant 0 : index
    %8 = vector.load %arg1[%c0_2, %c0_3, %c0_4] : memref<4x1x64xf32, #tpu.memory_space<vmem>>, vector<1x1x64xf32>
    %9 = vector.shape_cast %8 : vector<1x1x64xf32> to vector<1x64xf32>
    %c0_5 = arith.constant 0 : index
    %c0_6 = arith.constant 0 : index
    %c0_7 = arith.constant 0 : index
    %10 = vector.load %arg2[%c0_5, %c0_6, %c0_7] : memref<4x1x64xf32, #tpu.memory_space<vmem>>, vector<1x1x64xf32>
    %11 = vector.shape_cast %10 : vector<1x1x64xf32> to vector<1x64xf32>
    %cst_8 = arith.constant dense<0.000000e+00> : vector<16xf32>
    %12 = vector.multi_reduction <add>, %0, %cst_8 [1] : vector<16x64xf32> to vector<16xf32>
    %13 = vector.shape_cast %12 : vector<16xf32> to vector<16x1xf32>
    %cst_9 = arith.constant 6.400000e+01 : f32
    %14 = vector.broadcast %cst_9 : f32 to vector<16x1xf32>
    %15 = arith.divf %13, %14 : vector<16x1xf32>
    %16 = vector.broadcast %15 : vector<16x1xf32> to vector<16x64xf32>
    %17 = arith.subf %0, %16 : vector<16x64xf32>
    %18 = arith.mulf %17, %17 : vector<16x64xf32>
    %cst_10 = arith.constant dense<0.000000e+00> : vector<16xf32>
    %19 = vector.multi_reduction <add>, %18, %cst_10 [1] : vector<16x64xf32> to vector<16xf32>
    %20 = vector.shape_cast %19 : vector<16xf32> to vector<16x1xf32>
    %cst_11 = arith.constant 6.400000e+01 : f32
    %21 = vector.broadcast %cst_11 : f32 to vector<16x1xf32>
    %22 = arith.divf %20, %21 : vector<16x1xf32>
    %23 = vector.broadcast %15 : vector<16x1xf32> to vector<16x64xf32>
    %24 = arith.subf %0, %23 : vector<16x64xf32>
    %cst_12 = arith.constant 9.99999974E-6 : f32
    %25 = vector.broadcast %cst_12 : f32 to vector<16x1xf32>
    %26 = arith.addf %22, %25 : vector<16x1xf32>
    %27 = math.rsqrt %26 : vector<16x1xf32>
    %28 = vector.broadcast %27 : vector<16x1xf32> to vector<16x64xf32>
    %29 = arith.mulf %24, %28 : vector<16x64xf32>
    %30 = vector.broadcast %9 : vector<1x64xf32> to vector<16x64xf32>
    %31 = arith.mulf %29, %30 : vector<16x64xf32>
    %32 = vector.broadcast %11 : vector<1x64xf32> to vector<16x64xf32>
    %33 = arith.addf %31, %32 : vector<16x64xf32>
    %34 = arith.truncf %33 : vector<16x64xf32> to vector<16x64xbf16>
    %c0_13 = arith.constant 0 : index
    %c0_14 = arith.constant 0 : index
    %c0_15 = arith.constant 0 : index
    %35 = vector.load %arg3[%c0_13, %c0_14, %c0_15] : memref<4x64x64xbf16, #tpu.memory_space<vmem>>, vector<1x64x64xbf16>
    %36 = vector.shape_cast %35 : vector<1x64x64xbf16> to vector<64x64xbf16>
    %cst_16 = arith.constant dense<0.000000e+00> : vector<16x64xf32>
    %37 = tpu.matmul %34, %36, %cst_16 {dimension_numbers = #tpu.dot_dimension_numbers<[1], [0], [0], [1], [0, 0, 1, 1], [], []>} : vector<16x64xbf16>, vector<64x64xbf16>, vector<16x64xf32> -> vector<16x64xf32>
    %c0_17 = arith.constant 0 : index
    %c0_18 = arith.constant 0 : index
    %c0_19 = arith.constant 0 : index
    %38 = vector.load %arg4[%c0_17, %c0_18, %c0_19] : memref<4x64x64xbf16, #tpu.memory_space<vmem>>, vector<1x64x64xbf16>
    %39 = vector.shape_cast %38 : vector<1x64x64xbf16> to vector<64x64xbf16>
    %cst_20 = arith.constant dense<0.000000e+00> : vector<16x64xf32>
    %40 = tpu.matmul %34, %39, %cst_20 {dimension_numbers = #tpu.dot_dimension_numbers<[1], [0], [0], [1], [0, 0, 1, 1], [], []>} : vector<16x64xbf16>, vector<64x64xbf16>, vector<16x64xf32> -> vector<16x64xf32>
    %c0_21 = arith.constant 0 : index
    %c0_22 = arith.constant 0 : index
    %c0_23 = arith.constant 0 : index
    %41 = vector.load %arg5[%c0_21, %c0_22, %c0_23] : memref<4x64x64xbf16, #tpu.memory_space<vmem>>, vector<1x64x64xbf16>
    %42 = vector.shape_cast %41 : vector<1x64x64xbf16> to vector<64x64xbf16>
    %cst_24 = arith.constant dense<0.000000e+00> : vector<16x64xf32>
    %43 = tpu.matmul %34, %42, %cst_24 {dimension_numbers = #tpu.dot_dimension_numbers<[1], [0], [0], [1], [0, 0, 1, 1], [], []>} : vector<16x64xbf16>, vector<64x64xbf16>, vector<16x64xf32> -> vector<16x64xf32>
    %44 = vector.extract_strided_slice %37 {offsets = [0, 0], sizes = [16, 16], strides = [1, 1]} : vector<16x64xf32> to vector<16x16xf32>
    %45 = vector.shape_cast %44 : vector<16x16xf32> to vector<2x8x16xf32>
    %46 = vector.extract_strided_slice %37 {offsets = [0, 16], sizes = [16, 16], strides = [1, 1]} : vector<16x64xf32> to vector<16x16xf32>
    %47 = vector.shape_cast %46 : vector<16x16xf32> to vector<2x8x16xf32>
    %48 = vector.extract_strided_slice %37 {offsets = [0, 32], sizes = [16, 16], strides = [1, 1]} : vector<16x64xf32> to vector<16x16xf32>
    %49 = vector.shape_cast %48 : vector<16x16xf32> to vector<2x8x16xf32>
    %50 = vector.extract_strided_slice %37 {offsets = [0, 48], sizes = [16, 16], strides = [1, 1]} : vector<16x64xf32> to vector<16x16xf32>
    %51 = vector.shape_cast %50 : vector<16x16xf32> to vector<2x8x16xf32>
    %52 = tpu.concatenate %45, %47, %49, %51 in 0 : vector<2x8x16xf32>, vector<2x8x16xf32>, vector<2x8x16xf32>, vector<2x8x16xf32> -> vector<8x8x16xf32>
    %53 = vector.extract_strided_slice %40 {offsets = [0, 0], sizes = [16, 16], strides = [1, 1]} : vector<16x64xf32> to vector<16x16xf32>
    %54 = vector.shape_cast %53 : vector<16x16xf32> to vector<2x8x16xf32>
    %55 = vector.extract_strided_slice %40 {offsets = [0, 16], sizes = [16, 16], strides = [1, 1]} : vector<16x64xf32> to vector<16x16xf32>
    %56 = vector.shape_cast %55 : vector<16x16xf32> to vector<2x8x16xf32>
    %57 = vector.extract_strided_slice %40 {offsets = [0, 32], sizes = [16, 16], strides = [1, 1]} : vector<16x64xf32> to vector<16x16xf32>
    %58 = vector.shape_cast %57 : vector<16x16xf32> to vector<2x8x16xf32>
    %59 = vector.extract_strided_slice %40 {offsets = [0, 48], sizes = [16, 16], strides = [1, 1]} : vector<16x64xf32> to vector<16x16xf32>
    %60 = vector.shape_cast %59 : vector<16x16xf32> to vector<2x8x16xf32>
    %61 = tpu.concatenate %54, %56, %58, %60 in 0 : vector<2x8x16xf32>, vector<2x8x16xf32>, vector<2x8x16xf32>, vector<2x8x16xf32> -> vector<8x8x16xf32>
    %62 = vector.extract_strided_slice %43 {offsets = [0, 0], sizes = [16, 16], strides = [1, 1]} : vector<16x64xf32> to vector<16x16xf32>
    %63 = vector.shape_cast %62 : vector<16x16xf32> to vector<2x8x16xf32>
    %64 = vector.extract_strided_slice %43 {offsets = [0, 16], sizes = [16, 16], strides = [1, 1]} : vector<16x64xf32> to vector<16x16xf32>
    %65 = vector.shape_cast %64 : vector<16x16xf32> to vector<2x8x16xf32>
    %66 = vector.extract_strided_slice %43 {offsets = [0, 32], sizes = [16, 16], strides = [1, 1]} : vector<16x64xf32> to vector<16x16xf32>
    %67 = vector.shape_cast %66 : vector<16x16xf32> to vector<2x8x16xf32>
    %68 = vector.extract_strided_slice %43 {offsets = [0, 48], sizes = [16, 16], strides = [1, 1]} : vector<16x64xf32> to vector<16x16xf32>
    %69 = vector.shape_cast %68 : vector<16x16xf32> to vector<2x8x16xf32>
    %70 = tpu.concatenate %63, %65, %67, %69 in 0 : vector<2x8x16xf32>, vector<2x8x16xf32>, vector<2x8x16xf32>, vector<2x8x16xf32> -> vector<8x8x16xf32>
    "tpu.trace_start"() <{level = 10 : i32, message = "ztd,zsd->zts"}> : () -> ()
    %cst_25 = arith.constant dense<0.000000e+00> : vector<8x8x8xf32>
    %71 = tpu.matmul %52, %61, %cst_25 {dimension_numbers = #tpu.dot_dimension_numbers<[2], [2], [1], [1], [0, 0, 0, 1, 1, 1], [0], [0]>} : vector<8x8x16xf32>, vector<8x8x16xf32>, vector<8x8x8xf32> -> vector<8x8x8xf32>
    "tpu.trace_stop"() : () -> ()
    %cst_26 = arith.constant 1.250000e-01 : f32
    %72 = vector.broadcast %cst_26 : f32 to vector<8x8x8xf32>
    %73 = arith.mulf %71, %72 : vector<8x8x8xf32>
    %74 = vector.broadcast %7 : vector<1x8x8xf32> to vector<8x8x8xf32>
    %75 = arith.addf %73, %74 : vector<8x8x8xf32>
    %cst_27 = arith.constant dense<0xFF800000> : vector<8x8xf32>
    %76 = vector.multi_reduction <maximumf>, %75, %cst_27 [2] : vector<8x8x8xf32> to vector<8x8xf32>
    %77 = vector.shape_cast %76 : vector<8x8xf32> to vector<8x8x1xf32>
    %78 = vector.broadcast %77 : vector<8x8x1xf32> to vector<8x8x8xf32>
    %79 = arith.subf %75, %78 : vector<8x8x8xf32>
    %80 = math.exp %79 : vector<8x8x8xf32>
    %cst_28 = arith.constant dense<0.000000e+00> : vector<8x8xf32>
    %81 = vector.multi_reduction <add>, %80, %cst_28 [2] : vector<8x8x8xf32> to vector<8x8xf32>
    %82 = vector.shape_cast %81 : vector<8x8xf32> to vector<8x8x1xf32>
    %83 = vector.broadcast %82 : vector<8x8x1xf32> to vector<8x8x8xf32>
    %84 = arith.divf %80, %83 : vector<8x8x8xf32>
    "tpu.trace_start"() <{level = 10 : i32, message = "zts,zsd->ztd"}> : () -> ()
    %cst_29 = arith.constant dense<0.000000e+00> : vector<8x8x16xf32>
    %85 = tpu.matmul %84, %70, %cst_29 {dimension_numbers = #tpu.dot_dimension_numbers<[2], [1], [1], [2], [0, 0, 0, 1, 1, 2], [0], [0]>} : vector<8x8x8xf32>, vector<8x8x16xf32>, vector<8x8x16xf32> -> vector<8x8x16xf32>
    "tpu.trace_stop"() : () -> ()
    %86 = vector.extract_strided_slice %85 {offsets = [0, 0, 0], sizes = [2, 8, 16], strides = [1, 1, 1]} : vector<8x8x16xf32> to vector<2x8x16xf32>
    %87 = vector.shape_cast %86 : vector<2x8x16xf32> to vector<16x16xf32>
    %88 = vector.extract_strided_slice %85 {offsets = [2, 0, 0], sizes = [2, 8, 16], strides = [1, 1, 1]} : vector<8x8x16xf32> to vector<2x8x16xf32>
    %89 = vector.shape_cast %88 : vector<2x8x16xf32> to vector<16x16xf32>
    %90 = vector.extract_strided_slice %85 {offsets = [4, 0, 0], sizes = [2, 8, 16], strides = [1, 1, 1]} : vector<8x8x16xf32> to vector<2x8x16xf32>
    %91 = vector.shape_cast %90 : vector<2x8x16xf32> to vector<16x16xf32>
    %92 = vector.extract_strided_slice %85 {offsets = [6, 0, 0], sizes = [2, 8, 16], strides = [1, 1, 1]} : vector<8x8x16xf32> to vector<2x8x16xf32>
    %93 = vector.shape_cast %92 : vector<2x8x16xf32> to vector<16x16xf32>
    %94 = tpu.concatenate %87, %89, %91, %93 in 1 : vector<16x16xf32>, vector<16x16xf32>, vector<16x16xf32>, vector<16x16xf32> -> vector<16x64xf32>
    %95 = arith.truncf %94 : vector<16x64xf32> to vector<16x64xbf16>
    %c0_30 = arith.constant 0 : index
    %c0_31 = arith.constant 0 : index
    %c0_32 = arith.constant 0 : index
    %96 = vector.load %arg6[%c0_30, %c0_31, %c0_32] : memref<4x64x64xbf16, #tpu.memory_space<vmem>>, vector<1x64x64xbf16>
    %97 = vector.shape_cast %96 : vector<1x64x64xbf16> to vector<64x64xbf16>
    %cst_33 = arith.constant dense<0.000000e+00> : vector<16x64xf32>
    %98 = tpu.matmul %95, %97, %cst_33 {dimension_numbers = #tpu.dot_dimension_numbers<[1], [0], [0], [1], [0, 0, 1, 1], [], []>} : vector<16x64xbf16>, vector<64x64xbf16>, vector<16x64xf32> -> vector<16x64xf32>
    %c0_34 = arith.constant 0 : index
    %c0_35 = arith.constant 0 : index
    %c0_36 = arith.constant 0 : index
    %99 = vector.load %arg7[%c0_34, %c0_35, %c0_36] : memref<4x1x64xf32, #tpu.memory_space<vmem>>, vector<1x1x64xf32>
    %100 = vector.shape_cast %99 : vector<1x1x64xf32> to vector<1x64xf32>
    %101 = vector.broadcast %100 : vector<1x64xf32> to vector<16x64xf32>
    %102 = arith.addf %98, %101 : vector<16x64xf32>
    %103 = arith.addf %0, %102 : vector<16x64xf32>
    %c0_37 = arith.constant 0 : index
    %c0_38 = arith.constant 0 : index
    %c0_39 = arith.constant 0 : index
    %104 = vector.load %arg8[%c0_37, %c0_38, %c0_39] : memref<4x1x64xf32, #tpu.memory_space<vmem>>, vector<1x1x64xf32>
    %105 = vector.shape_cast %104 : vector<1x1x64xf32> to vector<1x64xf32>
    %c0_40 = arith.constant 0 : index
    %c0_41 = arith.constant 0 : index
    %c0_42 = arith.constant 0 : index
    %106 = vector.load %arg9[%c0_40, %c0_41, %c0_42] : memref<4x1x64xf32, #tpu.memory_space<vmem>>, vector<1x1x64xf32>
    %107 = vector.shape_cast %106 : vector<1x1x64xf32> to vector<1x64xf32>
    %cst_43 = arith.constant dense<0.000000e+00> : vector<16xf32>
    %108 = vector.multi_reduction <add>, %103, %cst_43 [1] : vector<16x64xf32> to vector<16xf32>
    %109 = vector.shape_cast %108 : vector<16xf32> to vector<16x1xf32>
    %cst_44 = arith.constant 6.400000e+01 : f32
    %110 = vector.broadcast %cst_44 : f32 to vector<16x1xf32>
    %111 = arith.divf %109, %110 : vector<16x1xf32>
    %112 = vector.broadcast %111 : vector<16x1xf32> to vector<16x64xf32>
    %113 = arith.subf %103, %112 : vector<16x64xf32>
    %114 = arith.mulf %113, %113 : vector<16x64xf32>
    %cst_45 = arith.constant dense<0.000000e+00> : vector<16xf32>
    %115 = vector.multi_reduction <add>, %114, %cst_45 [1] : vector<16x64xf32> to vector<16xf32>
    %116 = vector.shape_cast %115 : vector<16xf32> to vector<16x1xf32>
    %cst_46 = arith.constant 6.400000e+01 : f32
    %117 = vector.broadcast %cst_46 : f32 to vector<16x1xf32>
    %118 = arith.divf %116, %117 : vector<16x1xf32>
    %119 = vector.broadcast %111 : vector<16x1xf32> to vector<16x64xf32>
    %120 = arith.subf %103, %119 : vector<16x64xf32>
    %cst_47 = arith.constant 9.99999974E-6 : f32
    %121 = vector.broadcast %cst_47 : f32 to vector<16x1xf32>
    %122 = arith.addf %118, %121 : vector<16x1xf32>
    %123 = math.rsqrt %122 : vector<16x1xf32>
    %124 = vector.broadcast %123 : vector<16x1xf32> to vector<16x64xf32>
    %125 = arith.mulf %120, %124 : vector<16x64xf32>
    %126 = vector.broadcast %105 : vector<1x64xf32> to vector<16x64xf32>
    %127 = arith.mulf %125, %126 : vector<16x64xf32>
    %128 = vector.broadcast %107 : vector<1x64xf32> to vector<16x64xf32>
    %129 = arith.addf %127, %128 : vector<16x64xf32>
    %130 = arith.truncf %129 : vector<16x64xf32> to vector<16x64xbf16>
    %c0_48 = arith.constant 0 : index
    %c0_49 = arith.constant 0 : index
    %c0_50 = arith.constant 0 : index
    %131 = vector.load %arg10[%c0_48, %c0_49, %c0_50] : memref<4x64x256xbf16, #tpu.memory_space<vmem>>, vector<1x64x256xbf16>
    %132 = vector.shape_cast %131 : vector<1x64x256xbf16> to vector<64x256xbf16>
    %cst_51 = arith.constant dense<0.000000e+00> : vector<16x256xf32>
    %133 = tpu.matmul %130, %132, %cst_51 {dimension_numbers = #tpu.dot_dimension_numbers<[1], [0], [0], [1], [0, 0, 1, 1], [], []>} : vector<16x64xbf16>, vector<64x256xbf16>, vector<16x256xf32> -> vector<16x256xf32>
    %c0_52 = arith.constant 0 : index
    %c0_53 = arith.constant 0 : index
    %c0_54 = arith.constant 0 : index
    %134 = vector.load %arg11[%c0_52, %c0_53, %c0_54] : memref<4x1x256xf32, #tpu.memory_space<vmem>>, vector<1x1x256xf32>
    %135 = vector.shape_cast %134 : vector<1x1x256xf32> to vector<1x256xf32>
    %136 = vector.broadcast %135 : vector<1x256xf32> to vector<16x256xf32>
    %137 = arith.addf %133, %136 : vector<16x256xf32>
    %cst_55 = arith.constant 5.000000e-01 : f32
    %138 = vector.broadcast %cst_55 : f32 to vector<16x256xf32>
    %139 = arith.mulf %138, %137 : vector<16x256xf32>
    %cst_56 = arith.constant 4.471500e-02 : f32
    %140 = vector.broadcast %cst_56 : f32 to vector<16x256xf32>
    %141 = arith.mulf %140, %137 : vector<16x256xf32>
    %142 = arith.mulf %141, %137 : vector<16x256xf32>
    %143 = arith.mulf %142, %137 : vector<16x256xf32>
    %144 = arith.addf %137, %143 : vector<16x256xf32>
    %cst_57 = arith.constant 0.797884583 : f32
    %145 = vector.broadcast %cst_57 : f32 to vector<16x256xf32>
    %146 = arith.mulf %145, %144 : vector<16x256xf32>
    %147 = math.tanh %146 : vector<16x256xf32>
    %cst_58 = arith.constant 1.000000e+00 : f32
    %148 = vector.broadcast %cst_58 : f32 to vector<16x256xf32>
    %149 = arith.addf %148, %147 : vector<16x256xf32>
    %150 = arith.mulf %139, %149 : vector<16x256xf32>
    %151 = arith.truncf %150 : vector<16x256xf32> to vector<16x256xbf16>
    %c0_59 = arith.constant 0 : index
    %c0_60 = arith.constant 0 : index
    %c0_61 = arith.constant 0 : index
    %152 = vector.load %arg12[%c0_59, %c0_60, %c0_61] : memref<4x256x64xbf16, #tpu.memory_space<vmem>>, vector<1x256x64xbf16>
    %153 = vector.shape_cast %152 : vector<1x256x64xbf16> to vector<256x64xbf16>
    %cst_62 = arith.constant dense<0.000000e+00> : vector<16x64xf32>
    %154 = tpu.matmul %151, %153, %cst_62 {dimension_numbers = #tpu.dot_dimension_numbers<[1], [0], [0], [1], [0, 0, 1, 1], [], []>} : vector<16x256xbf16>, vector<256x64xbf16>, vector<16x64xf32> -> vector<16x64xf32>
    %c0_63 = arith.constant 0 : index
    %c0_64 = arith.constant 0 : index
    %c0_65 = arith.constant 0 : index
    %155 = vector.load %arg13[%c0_63, %c0_64, %c0_65] : memref<4x1x64xf32, #tpu.memory_space<vmem>>, vector<1x1x64xf32>
    %156 = vector.shape_cast %155 : vector<1x1x64xf32> to vector<1x64xf32>
    %157 = vector.broadcast %156 : vector<1x64xf32> to vector<16x64xf32>
    %158 = arith.addf %154, %157 : vector<16x64xf32>
    %159 = arith.addf %103, %158 : vector<16x64xf32>
    %c1 = arith.constant 1 : index
    %c0_66 = arith.constant 0 : index
    %c0_67 = arith.constant 0 : index
    %160 = vector.load %arg1[%c1, %c0_66, %c0_67] : memref<4x1x64xf32, #tpu.memory_space<vmem>>, vector<1x1x64xf32>
    %161 = vector.shape_cast %160 : vector<1x1x64xf32> to vector<1x64xf32>
    %c1_68 = arith.constant 1 : index
    %c0_69 = arith.constant 0 : index
    %c0_70 = arith.constant 0 : index
    %162 = vector.load %arg2[%c1_68, %c0_69, %c0_70] : memref<4x1x64xf32, #tpu.memory_space<vmem>>, vector<1x1x64xf32>
    %163 = vector.shape_cast %162 : vector<1x1x64xf32> to vector<1x64xf32>
    %cst_71 = arith.constant dense<0.000000e+00> : vector<16xf32>
    %164 = vector.multi_reduction <add>, %159, %cst_71 [1] : vector<16x64xf32> to vector<16xf32>
    %165 = vector.shape_cast %164 : vector<16xf32> to vector<16x1xf32>
    %cst_72 = arith.constant 6.400000e+01 : f32
    %166 = vector.broadcast %cst_72 : f32 to vector<16x1xf32>
    %167 = arith.divf %165, %166 : vector<16x1xf32>
    %168 = vector.broadcast %167 : vector<16x1xf32> to vector<16x64xf32>
    %169 = arith.subf %159, %168 : vector<16x64xf32>
    %170 = arith.mulf %169, %169 : vector<16x64xf32>
    %cst_73 = arith.constant dense<0.000000e+00> : vector<16xf32>
    %171 = vector.multi_reduction <add>, %170, %cst_73 [1] : vector<16x64xf32> to vector<16xf32>
    %172 = vector.shape_cast %171 : vector<16xf32> to vector<16x1xf32>
    %cst_74 = arith.constant 6.400000e+01 : f32
    %173 = vector.broadcast %cst_74 : f32 to vector<16x1xf32>
    %174 = arith.divf %172, %173 : vector<16x1xf32>
    %175 = vector.broadcast %167 : vector<16x1xf32> to vector<16x64xf32>
    %176 = arith.subf %159, %175 : vector<16x64xf32>
    %cst_75 = arith.constant 9.99999974E-6 : f32
    %177 = vector.broadcast %cst_75 : f32 to vector<16x1xf32>
    %178 = arith.addf %174, %177 : vector<16x1xf32>
    %179 = math.rsqrt %178 : vector<16x1xf32>
    %180 = vector.broadcast %179 : vector<16x1xf32> to vector<16x64xf32>
    %181 = arith.mulf %176, %180 : vector<16x64xf32>
    %182 = vector.broadcast %161 : vector<1x64xf32> to vector<16x64xf32>
    %183 = arith.mulf %181, %182 : vector<16x64xf32>
    %184 = vector.broadcast %163 : vector<1x64xf32> to vector<16x64xf32>
    %185 = arith.addf %183, %184 : vector<16x64xf32>
    %186 = arith.truncf %185 : vector<16x64xf32> to vector<16x64xbf16>
    %c1_76 = arith.constant 1 : index
    %c0_77 = arith.constant 0 : index
    %c0_78 = arith.constant 0 : index
    %187 = vector.load %arg3[%c1_76, %c0_77, %c0_78] : memref<4x64x64xbf16, #tpu.memory_space<vmem>>, vector<1x64x64xbf16>
    %188 = vector.shape_cast %187 : vector<1x64x64xbf16> to vector<64x64xbf16>
    %cst_79 = arith.constant dense<0.000000e+00> : vector<16x64xf32>
    %189 = tpu.matmul %186, %188, %cst_79 {dimension_numbers = #tpu.dot_dimension_numbers<[1], [0], [0], [1], [0, 0, 1, 1], [], []>} : vector<16x64xbf16>, vector<64x64xbf16>, vector<16x64xf32> -> vector<16x64xf32>
    %c1_80 = arith.constant 1 : index
    %c0_81 = arith.constant 0 : index
    %c0_82 = arith.constant 0 : index
    %190 = vector.load %arg4[%c1_80, %c0_81, %c0_82] : memref<4x64x64xbf16, #tpu.memory_space<vmem>>, vector<1x64x64xbf16>
    %191 = vector.shape_cast %190 : vector<1x64x64xbf16> to vector<64x64xbf16>
    %cst_83 = arith.constant dense<0.000000e+00> : vector<16x64xf32>
    %192 = tpu.matmul %186, %191, %cst_83 {dimension_numbers = #tpu.dot_dimension_numbers<[1], [0], [0], [1], [0, 0, 1, 1], [], []>} : vector<16x64xbf16>, vector<64x64xbf16>, vector<16x64xf32> -> vector<16x64xf32>
    %c1_84 = arith.constant 1 : index
    %c0_85 = arith.constant 0 : index
    %c0_86 = arith.constant 0 : index
    %193 = vector.load %arg5[%c1_84, %c0_85, %c0_86] : memref<4x64x64xbf16, #tpu.memory_space<vmem>>, vector<1x64x64xbf16>
    %194 = vector.shape_cast %193 : vector<1x64x64xbf16> to vector<64x64xbf16>
    %cst_87 = arith.constant dense<0.000000e+00> : vector<16x64xf32>
    %195 = tpu.matmul %186, %194, %cst_87 {dimension_numbers = #tpu.dot_dimension_numbers<[1], [0], [0], [1], [0, 0, 1, 1], [], []>} : vector<16x64xbf16>, vector<64x64xbf16>, vector<16x64xf32> -> vector<16x64xf32>
    %196 = vector.extract_strided_slice %189 {offsets = [0, 0], sizes = [16, 16], strides = [1, 1]} : vector<16x64xf32> to vector<16x16xf32>
    %197 = vector.shape_cast %196 : vector<16x16xf32> to vector<2x8x16xf32>
    %198 = vector.extract_strided_slice %189 {offsets = [0, 16], sizes = [16, 16], strides = [1, 1]} : vector<16x64xf32> to vector<16x16xf32>
    %199 = vector.shape_cast %198 : vector<16x16xf32> to vector<2x8x16xf32>
    %200 = vector.extract_strided_slice %189 {offsets = [0, 32], sizes = [16, 16], strides = [1, 1]} : vector<16x64xf32> to vector<16x16xf32>
    %201 = vector.shape_cast %200 : vector<16x16xf32> to vector<2x8x16xf32>
    %202 = vector.extract_strided_slice %189 {offsets = [0, 48], sizes = [16, 16], strides = [1, 1]} : vector<16x64xf32> to vector<16x16xf32>
    %203 = vector.shape_cast %202 : vector<16x16xf32> to vector<2x8x16xf32>
    %204 = tpu.concatenate %197, %199, %201, %203 in 0 : vector<2x8x16xf32>, vector<2x8x16xf32>, vector<2x8x16xf32>, vector<2x8x16xf32> -> vector<8x8x16xf32>
    %205 = vector.extract_strided_slice %192 {offsets = [0, 0], sizes = [16, 16], strides = [1, 1]} : vector<16x64xf32> to vector<16x16xf32>
    %206 = vector.shape_cast %205 : vector<16x16xf32> to vector<2x8x16xf32>
    %207 = vector.extract_strided_slice %192 {offsets = [0, 16], sizes = [16, 16], strides = [1, 1]} : vector<16x64xf32> to vector<16x16xf32>
    %208 = vector.shape_cast %207 : vector<16x16xf32> to vector<2x8x16xf32>
    %209 = vector.extract_strided_slice %192 {offsets = [0, 32], sizes = [16, 16], strides = [1, 1]} : vector<16x64xf32> to vector<16x16xf32>
    %210 = vector.shape_cast %209 : vector<16x16xf32> to vector<2x8x16xf32>
    %211 = vector.extract_strided_slice %192 {offsets = [0, 48], sizes = [16, 16], strides = [1, 1]} : vector<16x64xf32> to vector<16x16xf32>
    %212 = vector.shape_cast %211 : vector<16x16xf32> to vector<2x8x16xf32>
    %213 = tpu.concatenate %206, %208, %210, %212 in 0 : vector<2x8x16xf32>, vector<2x8x16xf32>, vector<2x8x16xf32>, vector<2x8x16xf32> -> vector<8x8x16xf32>
    %214 = vector.extract_strided_slice %195 {offsets = [0, 0], sizes = [16, 16], strides = [1, 1]} : vector<16x64xf32> to vector<16x16xf32>
    %215 = vector.shape_cast %214 : vector<16x16xf32> to vector<2x8x16xf32>
    %216 = vector.extract_strided_slice %195 {offsets = [0, 16], sizes = [16, 16], strides = [1, 1]} : vector<16x64xf32> to vector<16x16xf32>
    %217 = vector.shape_cast %216 : vector<16x16xf32> to vector<2x8x16xf32>
    %218 = vector.extract_strided_slice %195 {offsets = [0, 32], sizes = [16, 16], strides = [1, 1]} : vector<16x64xf32> to vector<16x16xf32>
    %219 = vector.shape_cast %218 : vector<16x16xf32> to vector<2x8x16xf32>
    %220 = vector.extract_strided_slice %195 {offsets = [0, 48], sizes = [16, 16], strides = [1, 1]} : vector<16x64xf32> to vector<16x16xf32>
    %221 = vector.shape_cast %220 : vector<16x16xf32> to vector<2x8x16xf32>
    %222 = tpu.concatenate %215, %217, %219, %221 in 0 : vector<2x8x16xf32>, vector<2x8x16xf32>, vector<2x8x16xf32>, vector<2x8x16xf32> -> vector<8x8x16xf32>
    "tpu.trace_start"() <{level = 10 : i32, message = "ztd,zsd->zts"}> : () -> ()
    %cst_88 = arith.constant dense<0.000000e+00> : vector<8x8x8xf32>
    %223 = tpu.matmul %204, %213, %cst_88 {dimension_numbers = #tpu.dot_dimension_numbers<[2], [2], [1], [1], [0, 0, 0, 1, 1, 1], [0], [0]>} : vector<8x8x16xf32>, vector<8x8x16xf32>, vector<8x8x8xf32> -> vector<8x8x8xf32>
    "tpu.trace_stop"() : () -> ()
    %cst_89 = arith.constant 1.250000e-01 : f32
    %224 = vector.broadcast %cst_89 : f32 to vector<8x8x8xf32>
    %225 = arith.mulf %223, %224 : vector<8x8x8xf32>
    %226 = vector.broadcast %7 : vector<1x8x8xf32> to vector<8x8x8xf32>
    %227 = arith.addf %225, %226 : vector<8x8x8xf32>
    %cst_90 = arith.constant dense<0xFF800000> : vector<8x8xf32>
    %228 = vector.multi_reduction <maximumf>, %227, %cst_90 [2] : vector<8x8x8xf32> to vector<8x8xf32>
    %229 = vector.shape_cast %228 : vector<8x8xf32> to vector<8x8x1xf32>
    %230 = vector.broadcast %229 : vector<8x8x1xf32> to vector<8x8x8xf32>
    %231 = arith.subf %227, %230 : vector<8x8x8xf32>
    %232 = math.exp %231 : vector<8x8x8xf32>
    %cst_91 = arith.constant dense<0.000000e+00> : vector<8x8xf32>
    %233 = vector.multi_reduction <add>, %232, %cst_91 [2] : vector<8x8x8xf32> to vector<8x8xf32>
    %234 = vector.shape_cast %233 : vector<8x8xf32> to vector<8x8x1xf32>
    %235 = vector.broadcast %234 : vector<8x8x1xf32> to vector<8x8x8xf32>
    %236 = arith.divf %232, %235 : vector<8x8x8xf32>
    "tpu.trace_start"() <{level = 10 : i32, message = "zts,zsd->ztd"}> : () -> ()
    %cst_92 = arith.constant dense<0.000000e+00> : vector<8x8x16xf32>
    %237 = tpu.matmul %236, %222, %cst_92 {dimension_numbers = #tpu.dot_dimension_numbers<[2], [1], [1], [2], [0, 0, 0, 1, 1, 2], [0], [0]>} : vector<8x8x8xf32>, vector<8x8x16xf32>, vector<8x8x16xf32> -> vector<8x8x16xf32>
    "tpu.trace_stop"() : () -> ()
    %238 = vector.extract_strided_slice %237 {offsets = [0, 0, 0], sizes = [2, 8, 16], strides = [1, 1, 1]} : vector<8x8x16xf32> to vector<2x8x16xf32>
    %239 = vector.shape_cast %238 : vector<2x8x16xf32> to vector<16x16xf32>
    %240 = vector.extract_strided_slice %237 {offsets = [2, 0, 0], sizes = [2, 8, 16], strides = [1, 1, 1]} : vector<8x8x16xf32> to vector<2x8x16xf32>
    %241 = vector.shape_cast %240 : vector<2x8x16xf32> to vector<16x16xf32>
    %242 = vector.extract_strided_slice %237 {offsets = [4, 0, 0], sizes = [2, 8, 16], strides = [1, 1, 1]} : vector<8x8x16xf32> to vector<2x8x16xf32>
    %243 = vector.shape_cast %242 : vector<2x8x16xf32> to vector<16x16xf32>
    %244 = vector.extract_strided_slice %237 {offsets = [6, 0, 0], sizes = [2, 8, 16], strides = [1, 1, 1]} : vector<8x8x16xf32> to vector<2x8x16xf32>
    %245 = vector.shape_cast %244 : vector<2x8x16xf32> to vector<16x16xf32>
    %246 = tpu.concatenate %239, %241, %243, %245 in 1 : vector<16x16xf32>, vector<16x16xf32>, vector<16x16xf32>, vector<16x16xf32> -> vector<16x64xf32>
    %247 = arith.truncf %246 : vector<16x64xf32> to vector<16x64xbf16>
    %c1_93 = arith.constant 1 : index
    %c0_94 = arith.constant 0 : index
    %c0_95 = arith.constant 0 : index
    %248 = vector.load %arg6[%c1_93, %c0_94, %c0_95] : memref<4x64x64xbf16, #tpu.memory_space<vmem>>, vector<1x64x64xbf16>
    %249 = vector.shape_cast %248 : vector<1x64x64xbf16> to vector<64x64xbf16>
    %cst_96 = arith.constant dense<0.000000e+00> : vector<16x64xf32>
    %250 = tpu.matmul %247, %249, %cst_96 {dimension_numbers = #tpu.dot_dimension_numbers<[1], [0], [0], [1], [0, 0, 1, 1], [], []>} : vector<16x64xbf16>, vector<64x64xbf16>, vector<16x64xf32> -> vector<16x64xf32>
    %c1_97 = arith.constant 1 : index
    %c0_98 = arith.constant 0 : index
    %c0_99 = arith.constant 0 : index
    %251 = vector.load %arg7[%c1_97, %c0_98, %c0_99] : memref<4x1x64xf32, #tpu.memory_space<vmem>>, vector<1x1x64xf32>
    %252 = vector.shape_cast %251 : vector<1x1x64xf32> to vector<1x64xf32>
    %253 = vector.broadcast %252 : vector<1x64xf32> to vector<16x64xf32>
    %254 = arith.addf %250, %253 : vector<16x64xf32>
    %255 = arith.addf %159, %254 : vector<16x64xf32>
    %c1_100 = arith.constant 1 : index
    %c0_101 = arith.constant 0 : index
    %c0_102 = arith.constant 0 : index
    %256 = vector.load %arg8[%c1_100, %c0_101, %c0_102] : memref<4x1x64xf32, #tpu.memory_space<vmem>>, vector<1x1x64xf32>
    %257 = vector.shape_cast %256 : vector<1x1x64xf32> to vector<1x64xf32>
    %c1_103 = arith.constant 1 : index
    %c0_104 = arith.constant 0 : index
    %c0_105 = arith.constant 0 : index
    %258 = vector.load %arg9[%c1_103, %c0_104, %c0_105] : memref<4x1x64xf32, #tpu.memory_space<vmem>>, vector<1x1x64xf32>
    %259 = vector.shape_cast %258 : vector<1x1x64xf32> to vector<1x64xf32>
    %cst_106 = arith.constant dense<0.000000e+00> : vector<16xf32>
    %260 = vector.multi_reduction <add>, %255, %cst_106 [1] : vector<16x64xf32> to vector<16xf32>
    %261 = vector.shape_cast %260 : vector<16xf32> to vector<16x1xf32>
    %cst_107 = arith.constant 6.400000e+01 : f32
    %262 = vector.broadcast %cst_107 : f32 to vector<16x1xf32>
    %263 = arith.divf %261, %262 : vector<16x1xf32>
    %264 = vector.broadcast %263 : vector<16x1xf32> to vector<16x64xf32>
    %265 = arith.subf %255, %264 : vector<16x64xf32>
    %266 = arith.mulf %265, %265 : vector<16x64xf32>
    %cst_108 = arith.constant dense<0.000000e+00> : vector<16xf32>
    %267 = vector.multi_reduction <add>, %266, %cst_108 [1] : vector<16x64xf32> to vector<16xf32>
    %268 = vector.shape_cast %267 : vector<16xf32> to vector<16x1xf32>
    %cst_109 = arith.constant 6.400000e+01 : f32
    %269 = vector.broadcast %cst_109 : f32 to vector<16x1xf32>
    %270 = arith.divf %268, %269 : vector<16x1xf32>
    %271 = vector.broadcast %263 : vector<16x1xf32> to vector<16x64xf32>
    %272 = arith.subf %255, %271 : vector<16x64xf32>
    %cst_110 = arith.constant 9.99999974E-6 : f32
    %273 = vector.broadcast %cst_110 : f32 to vector<16x1xf32>
    %274 = arith.addf %270, %273 : vector<16x1xf32>
    %275 = math.rsqrt %274 : vector<16x1xf32>
    %276 = vector.broadcast %275 : vector<16x1xf32> to vector<16x64xf32>
    %277 = arith.mulf %272, %276 : vector<16x64xf32>
    %278 = vector.broadcast %257 : vector<1x64xf32> to vector<16x64xf32>
    %279 = arith.mulf %277, %278 : vector<16x64xf32>
    %280 = vector.broadcast %259 : vector<1x64xf32> to vector<16x64xf32>
    %281 = arith.addf %279, %280 : vector<16x64xf32>
    %282 = arith.truncf %281 : vector<16x64xf32> to vector<16x64xbf16>
    %c1_111 = arith.constant 1 : index
    %c0_112 = arith.constant 0 : index
    %c0_113 = arith.constant 0 : index
    %283 = vector.load %arg10[%c1_111, %c0_112, %c0_113] : memref<4x64x256xbf16, #tpu.memory_space<vmem>>, vector<1x64x256xbf16>
    %284 = vector.shape_cast %283 : vector<1x64x256xbf16> to vector<64x256xbf16>
    %cst_114 = arith.constant dense<0.000000e+00> : vector<16x256xf32>
    %285 = tpu.matmul %282, %284, %cst_114 {dimension_numbers = #tpu.dot_dimension_numbers<[1], [0], [0], [1], [0, 0, 1, 1], [], []>} : vector<16x64xbf16>, vector<64x256xbf16>, vector<16x256xf32> -> vector<16x256xf32>
    %c1_115 = arith.constant 1 : index
    %c0_116 = arith.constant 0 : index
    %c0_117 = arith.constant 0 : index
    %286 = vector.load %arg11[%c1_115, %c0_116, %c0_117] : memref<4x1x256xf32, #tpu.memory_space<vmem>>, vector<1x1x256xf32>
    %287 = vector.shape_cast %286 : vector<1x1x256xf32> to vector<1x256xf32>
    %288 = vector.broadcast %287 : vector<1x256xf32> to vector<16x256xf32>
    %289 = arith.addf %285, %288 : vector<16x256xf32>
    %cst_118 = arith.constant 5.000000e-01 : f32
    %290 = vector.broadcast %cst_118 : f32 to vector<16x256xf32>
    %291 = arith.mulf %290, %289 : vector<16x256xf32>
    %cst_119 = arith.constant 4.471500e-02 : f32
    %292 = vector.broadcast %cst_119 : f32 to vector<16x256xf32>
    %293 = arith.mulf %292, %289 : vector<16x256xf32>
    %294 = arith.mulf %293, %289 : vector<16x256xf32>
    %295 = arith.mulf %294, %289 : vector<16x256xf32>
    %296 = arith.addf %289, %295 : vector<16x256xf32>
    %cst_120 = arith.constant 0.797884583 : f32
    %297 = vector.broadcast %cst_120 : f32 to vector<16x256xf32>
    %298 = arith.mulf %297, %296 : vector<16x256xf32>
    %299 = math.tanh %298 : vector<16x256xf32>
    %cst_121 = arith.constant 1.000000e+00 : f32
    %300 = vector.broadcast %cst_121 : f32 to vector<16x256xf32>
    %301 = arith.addf %300, %299 : vector<16x256xf32>
    %302 = arith.mulf %291, %301 : vector<16x256xf32>
    %303 = arith.truncf %302 : vector<16x256xf32> to vector<16x256xbf16>
    %c1_122 = arith.constant 1 : index
    %c0_123 = arith.constant 0 : index
    %c0_124 = arith.constant 0 : index
    %304 = vector.load %arg12[%c1_122, %c0_123, %c0_124] : memref<4x256x64xbf16, #tpu.memory_space<vmem>>, vector<1x256x64xbf16>
    %305 = vector.shape_cast %304 : vector<1x256x64xbf16> to vector<256x64xbf16>
    %cst_125 = arith.constant dense<0.000000e+00> : vector<16x64xf32>
    %306 = tpu.matmul %303, %305, %cst_125 {dimension_numbers = #tpu.dot_dimension_numbers<[1], [0], [0], [1], [0, 0, 1, 1], [], []>} : vector<16x256xbf16>, vector<256x64xbf16>, vector<16x64xf32> -> vector<16x64xf32>
    %c1_126 = arith.constant 1 : index
    %c0_127 = arith.constant 0 : index
    %c0_128 = arith.constant 0 : index
    %307 = vector.load %arg13[%c1_126, %c0_127, %c0_128] : memref<4x1x64xf32, #tpu.memory_space<vmem>>, vector<1x1x64xf32>
    %308 = vector.shape_cast %307 : vector<1x1x64xf32> to vector<1x64xf32>
    %309 = vector.broadcast %308 : vector<1x64xf32> to vector<16x64xf32>
    %310 = arith.addf %306, %309 : vector<16x64xf32>
    %311 = arith.addf %255, %310 : vector<16x64xf32>
    %c2 = arith.constant 2 : index
    %c0_129 = arith.constant 0 : index
    %c0_130 = arith.constant 0 : index
    %312 = vector.load %arg1[%c2, %c0_129, %c0_130] : memref<4x1x64xf32, #tpu.memory_space<vmem>>, vector<1x1x64xf32>
    %313 = vector.shape_cast %312 : vector<1x1x64xf32> to vector<1x64xf32>
    %c2_131 = arith.constant 2 : index
    %c0_132 = arith.constant 0 : index
    %c0_133 = arith.constant 0 : index
    %314 = vector.load %arg2[%c2_131, %c0_132, %c0_133] : memref<4x1x64xf32, #tpu.memory_space<vmem>>, vector<1x1x64xf32>
    %315 = vector.shape_cast %314 : vector<1x1x64xf32> to vector<1x64xf32>
    %cst_134 = arith.constant dense<0.000000e+00> : vector<16xf32>
    %316 = vector.multi_reduction <add>, %311, %cst_134 [1] : vector<16x64xf32> to vector<16xf32>
    %317 = vector.shape_cast %316 : vector<16xf32> to vector<16x1xf32>
    %cst_135 = arith.constant 6.400000e+01 : f32
    %318 = vector.broadcast %cst_135 : f32 to vector<16x1xf32>
    %319 = arith.divf %317, %318 : vector<16x1xf32>
    %320 = vector.broadcast %319 : vector<16x1xf32> to vector<16x64xf32>
    %321 = arith.subf %311, %320 : vector<16x64xf32>
    %322 = arith.mulf %321, %321 : vector<16x64xf32>
    %cst_136 = arith.constant dense<0.000000e+00> : vector<16xf32>
    %323 = vector.multi_reduction <add>, %322, %cst_136 [1] : vector<16x64xf32> to vector<16xf32>
    %324 = vector.shape_cast %323 : vector<16xf32> to vector<16x1xf32>
    %cst_137 = arith.constant 6.400000e+01 : f32
    %325 = vector.broadcast %cst_137 : f32 to vector<16x1xf32>
    %326 = arith.divf %324, %325 : vector<16x1xf32>
    %327 = vector.broadcast %319 : vector<16x1xf32> to vector<16x64xf32>
    %328 = arith.subf %311, %327 : vector<16x64xf32>
    %cst_138 = arith.constant 9.99999974E-6 : f32
    %329 = vector.broadcast %cst_138 : f32 to vector<16x1xf32>
    %330 = arith.addf %326, %329 : vector<16x1xf32>
    %331 = math.rsqrt %330 : vector<16x1xf32>
    %332 = vector.broadcast %331 : vector<16x1xf32> to vector<16x64xf32>
    %333 = arith.mulf %328, %332 : vector<16x64xf32>
    %334 = vector.broadcast %313 : vector<1x64xf32> to vector<16x64xf32>
    %335 = arith.mulf %333, %334 : vector<16x64xf32>
    %336 = vector.broadcast %315 : vector<1x64xf32> to vector<16x64xf32>
    %337 = arith.addf %335, %336 : vector<16x64xf32>
    %338 = arith.truncf %337 : vector<16x64xf32> to vector<16x64xbf16>
    %c2_139 = arith.constant 2 : index
    %c0_140 = arith.constant 0 : index
    %c0_141 = arith.constant 0 : index
    %339 = vector.load %arg3[%c2_139, %c0_140, %c0_141] : memref<4x64x64xbf16, #tpu.memory_space<vmem>>, vector<1x64x64xbf16>
    %340 = vector.shape_cast %339 : vector<1x64x64xbf16> to vector<64x64xbf16>
    %cst_142 = arith.constant dense<0.000000e+00> : vector<16x64xf32>
    %341 = tpu.matmul %338, %340, %cst_142 {dimension_numbers = #tpu.dot_dimension_numbers<[1], [0], [0], [1], [0, 0, 1, 1], [], []>} : vector<16x64xbf16>, vector<64x64xbf16>, vector<16x64xf32> -> vector<16x64xf32>
    %c2_143 = arith.constant 2 : index
    %c0_144 = arith.constant 0 : index
    %c0_145 = arith.constant 0 : index
    %342 = vector.load %arg4[%c2_143, %c0_144, %c0_145] : memref<4x64x64xbf16, #tpu.memory_space<vmem>>, vector<1x64x64xbf16>
    %343 = vector.shape_cast %342 : vector<1x64x64xbf16> to vector<64x64xbf16>
    %cst_146 = arith.constant dense<0.000000e+00> : vector<16x64xf32>
    %344 = tpu.matmul %338, %343, %cst_146 {dimension_numbers = #tpu.dot_dimension_numbers<[1], [0], [0], [1], [0, 0, 1, 1], [], []>} : vector<16x64xbf16>, vector<64x64xbf16>, vector<16x64xf32> -> vector<16x64xf32>
    %c2_147 = arith.constant 2 : index
    %c0_148 = arith.constant 0 : index
    %c0_149 = arith.constant 0 : index
    %345 = vector.load %arg5[%c2_147, %c0_148, %c0_149] : memref<4x64x64xbf16, #tpu.memory_space<vmem>>, vector<1x64x64xbf16>
    %346 = vector.shape_cast %345 : vector<1x64x64xbf16> to vector<64x64xbf16>
    %cst_150 = arith.constant dense<0.000000e+00> : vector<16x64xf32>
    %347 = tpu.matmul %338, %346, %cst_150 {dimension_numbers = #tpu.dot_dimension_numbers<[1], [0], [0], [1], [0, 0, 1, 1], [], []>} : vector<16x64xbf16>, vector<64x64xbf16>, vector<16x64xf32> -> vector<16x64xf32>
    %348 = vector.extract_strided_slice %341 {offsets = [0, 0], sizes = [16, 16], strides = [1, 1]} : vector<16x64xf32> to vector<16x16xf32>
    %349 = vector.shape_cast %348 : vector<16x16xf32> to vector<2x8x16xf32>
    %350 = vector.extract_strided_slice %341 {offsets = [0, 16], sizes = [16, 16], strides = [1, 1]} : vector<16x64xf32> to vector<16x16xf32>
    %351 = vector.shape_cast %350 : vector<16x16xf32> to vector<2x8x16xf32>
    %352 = vector.extract_strided_slice %341 {offsets = [0, 32], sizes = [16, 16], strides = [1, 1]} : vector<16x64xf32> to vector<16x16xf32>
    %353 = vector.shape_cast %352 : vector<16x16xf32> to vector<2x8x16xf32>
    %354 = vector.extract_strided_slice %341 {offsets = [0, 48], sizes = [16, 16], strides = [1, 1]} : vector<16x64xf32> to vector<16x16xf32>
    %355 = vector.shape_cast %354 : vector<16x16xf32> to vector<2x8x16xf32>
    %356 = tpu.concatenate %349, %351, %353, %355 in 0 : vector<2x8x16xf32>, vector<2x8x16xf32>, vector<2x8x16xf32>, vector<2x8x16xf32> -> vector<8x8x16xf32>
    %357 = vector.extract_strided_slice %344 {offsets = [0, 0], sizes = [16, 16], strides = [1, 1]} : vector<16x64xf32> to vector<16x16xf32>
    %358 = vector.shape_cast %357 : vector<16x16xf32> to vector<2x8x16xf32>
    %359 = vector.extract_strided_slice %344 {offsets = [0, 16], sizes = [16, 16], strides = [1, 1]} : vector<16x64xf32> to vector<16x16xf32>
    %360 = vector.shape_cast %359 : vector<16x16xf32> to vector<2x8x16xf32>
    %361 = vector.extract_strided_slice %344 {offsets = [0, 32], sizes = [16, 16], strides = [1, 1]} : vector<16x64xf32> to vector<16x16xf32>
    %362 = vector.shape_cast %361 : vector<16x16xf32> to vector<2x8x16xf32>
    %363 = vector.extract_strided_slice %344 {offsets = [0, 48], sizes = [16, 16], strides = [1, 1]} : vector<16x64xf32> to vector<16x16xf32>
    %364 = vector.shape_cast %363 : vector<16x16xf32> to vector<2x8x16xf32>
    %365 = tpu.concatenate %358, %360, %362, %364 in 0 : vector<2x8x16xf32>, vector<2x8x16xf32>, vector<2x8x16xf32>, vector<2x8x16xf32> -> vector<8x8x16xf32>
    %366 = vector.extract_strided_slice %347 {offsets = [0, 0], sizes = [16, 16], strides = [1, 1]} : vector<16x64xf32> to vector<16x16xf32>
    %367 = vector.shape_cast %366 : vector<16x16xf32> to vector<2x8x16xf32>
    %368 = vector.extract_strided_slice %347 {offsets = [0, 16], sizes = [16, 16], strides = [1, 1]} : vector<16x64xf32> to vector<16x16xf32>
    %369 = vector.shape_cast %368 : vector<16x16xf32> to vector<2x8x16xf32>
    %370 = vector.extract_strided_slice %347 {offsets = [0, 32], sizes = [16, 16], strides = [1, 1]} : vector<16x64xf32> to vector<16x16xf32>
    %371 = vector.shape_cast %370 : vector<16x16xf32> to vector<2x8x16xf32>
    %372 = vector.extract_strided_slice %347 {offsets = [0, 48], sizes = [16, 16], strides = [1, 1]} : vector<16x64xf32> to vector<16x16xf32>
    %373 = vector.shape_cast %372 : vector<16x16xf32> to vector<2x8x16xf32>
    %374 = tpu.concatenate %367, %369, %371, %373 in 0 : vector<2x8x16xf32>, vector<2x8x16xf32>, vector<2x8x16xf32>, vector<2x8x16xf32> -> vector<8x8x16xf32>
    "tpu.trace_start"() <{level = 10 : i32, message = "ztd,zsd->zts"}> : () -> ()
    %cst_151 = arith.constant dense<0.000000e+00> : vector<8x8x8xf32>
    %375 = tpu.matmul %356, %365, %cst_151 {dimension_numbers = #tpu.dot_dimension_numbers<[2], [2], [1], [1], [0, 0, 0, 1, 1, 1], [0], [0]>} : vector<8x8x16xf32>, vector<8x8x16xf32>, vector<8x8x8xf32> -> vector<8x8x8xf32>
    "tpu.trace_stop"() : () -> ()
    %cst_152 = arith.constant 1.250000e-01 : f32
    %376 = vector.broadcast %cst_152 : f32 to vector<8x8x8xf32>
    %377 = arith.mulf %375, %376 : vector<8x8x8xf32>
    %378 = vector.broadcast %7 : vector<1x8x8xf32> to vector<8x8x8xf32>
    %379 = arith.addf %377, %378 : vector<8x8x8xf32>
    %cst_153 = arith.constant dense<0xFF800000> : vector<8x8xf32>
    %380 = vector.multi_reduction <maximumf>, %379, %cst_153 [2] : vector<8x8x8xf32> to vector<8x8xf32>
    %381 = vector.shape_cast %380 : vector<8x8xf32> to vector<8x8x1xf32>
    %382 = vector.broadcast %381 : vector<8x8x1xf32> to vector<8x8x8xf32>
    %383 = arith.subf %379, %382 : vector<8x8x8xf32>
    %384 = math.exp %383 : vector<8x8x8xf32>
    %cst_154 = arith.constant dense<0.000000e+00> : vector<8x8xf32>
    %385 = vector.multi_reduction <add>, %384, %cst_154 [2] : vector<8x8x8xf32> to vector<8x8xf32>
    %386 = vector.shape_cast %385 : vector<8x8xf32> to vector<8x8x1xf32>
    %387 = vector.broadcast %386 : vector<8x8x1xf32> to vector<8x8x8xf32>
    %388 = arith.divf %384, %387 : vector<8x8x8xf32>
    "tpu.trace_start"() <{level = 10 : i32, message = "zts,zsd->ztd"}> : () -> ()
    %cst_155 = arith.constant dense<0.000000e+00> : vector<8x8x16xf32>
    %389 = tpu.matmul %388, %374, %cst_155 {dimension_numbers = #tpu.dot_dimension_numbers<[2], [1], [1], [2], [0, 0, 0, 1, 1, 2], [0], [0]>} : vector<8x8x8xf32>, vector<8x8x16xf32>, vector<8x8x16xf32> -> vector<8x8x16xf32>
    "tpu.trace_stop"() : () -> ()
    %390 = vector.extract_strided_slice %389 {offsets = [0, 0, 0], sizes = [2, 8, 16], strides = [1, 1, 1]} : vector<8x8x16xf32> to vector<2x8x16xf32>
    %391 = vector.shape_cast %390 : vector<2x8x16xf32> to vector<16x16xf32>
    %392 = vector.extract_strided_slice %389 {offsets = [2, 0, 0], sizes = [2, 8, 16], strides = [1, 1, 1]} : vector<8x8x16xf32> to vector<2x8x16xf32>
    %393 = vector.shape_cast %392 : vector<2x8x16xf32> to vector<16x16xf32>
    %394 = vector.extract_strided_slice %389 {offsets = [4, 0, 0], sizes = [2, 8, 16], strides = [1, 1, 1]} : vector<8x8x16xf32> to vector<2x8x16xf32>
    %395 = vector.shape_cast %394 : vector<2x8x16xf32> to vector<16x16xf32>
    %396 = vector.extract_strided_slice %389 {offsets = [6, 0, 0], sizes = [2, 8, 16], strides = [1, 1, 1]} : vector<8x8x16xf32> to vector<2x8x16xf32>
    %397 = vector.shape_cast %396 : vector<2x8x16xf32> to vector<16x16xf32>
    %398 = tpu.concatenate %391, %393, %395, %397 in 1 : vector<16x16xf32>, vector<16x16xf32>, vector<16x16xf32>, vector<16x16xf32> -> vector<16x64xf32>
    %399 = arith.truncf %398 : vector<16x64xf32> to vector<16x64xbf16>
    %c2_156 = arith.constant 2 : index
    %c0_157 = arith.constant 0 : index
    %c0_158 = arith.constant 0 : index
    %400 = vector.load %arg6[%c2_156, %c0_157, %c0_158] : memref<4x64x64xbf16, #tpu.memory_space<vmem>>, vector<1x64x64xbf16>
    %401 = vector.shape_cast %400 : vector<1x64x64xbf16> to vector<64x64xbf16>
    %cst_159 = arith.constant dense<0.000000e+00> : vector<16x64xf32>
    %402 = tpu.matmul %399, %401, %cst_159 {dimension_numbers = #tpu.dot_dimension_numbers<[1], [0], [0], [1], [0, 0, 1, 1], [], []>} : vector<16x64xbf16>, vector<64x64xbf16>, vector<16x64xf32> -> vector<16x64xf32>
    %c2_160 = arith.constant 2 : index
    %c0_161 = arith.constant 0 : index
    %c0_162 = arith.constant 0 : index
    %403 = vector.load %arg7[%c2_160, %c0_161, %c0_162] : memref<4x1x64xf32, #tpu.memory_space<vmem>>, vector<1x1x64xf32>
    %404 = vector.shape_cast %403 : vector<1x1x64xf32> to vector<1x64xf32>
    %405 = vector.broadcast %404 : vector<1x64xf32> to vector<16x64xf32>
    %406 = arith.addf %402, %405 : vector<16x64xf32>
    %407 = arith.addf %311, %406 : vector<16x64xf32>
    %c2_163 = arith.constant 2 : index
    %c0_164 = arith.constant 0 : index
    %c0_165 = arith.constant 0 : index
    %408 = vector.load %arg8[%c2_163, %c0_164, %c0_165] : memref<4x1x64xf32, #tpu.memory_space<vmem>>, vector<1x1x64xf32>
    %409 = vector.shape_cast %408 : vector<1x1x64xf32> to vector<1x64xf32>
    %c2_166 = arith.constant 2 : index
    %c0_167 = arith.constant 0 : index
    %c0_168 = arith.constant 0 : index
    %410 = vector.load %arg9[%c2_166, %c0_167, %c0_168] : memref<4x1x64xf32, #tpu.memory_space<vmem>>, vector<1x1x64xf32>
    %411 = vector.shape_cast %410 : vector<1x1x64xf32> to vector<1x64xf32>
    %cst_169 = arith.constant dense<0.000000e+00> : vector<16xf32>
    %412 = vector.multi_reduction <add>, %407, %cst_169 [1] : vector<16x64xf32> to vector<16xf32>
    %413 = vector.shape_cast %412 : vector<16xf32> to vector<16x1xf32>
    %cst_170 = arith.constant 6.400000e+01 : f32
    %414 = vector.broadcast %cst_170 : f32 to vector<16x1xf32>
    %415 = arith.divf %413, %414 : vector<16x1xf32>
    %416 = vector.broadcast %415 : vector<16x1xf32> to vector<16x64xf32>
    %417 = arith.subf %407, %416 : vector<16x64xf32>
    %418 = arith.mulf %417, %417 : vector<16x64xf32>
    %cst_171 = arith.constant dense<0.000000e+00> : vector<16xf32>
    %419 = vector.multi_reduction <add>, %418, %cst_171 [1] : vector<16x64xf32> to vector<16xf32>
    %420 = vector.shape_cast %419 : vector<16xf32> to vector<16x1xf32>
    %cst_172 = arith.constant 6.400000e+01 : f32
    %421 = vector.broadcast %cst_172 : f32 to vector<16x1xf32>
    %422 = arith.divf %420, %421 : vector<16x1xf32>
    %423 = vector.broadcast %415 : vector<16x1xf32> to vector<16x64xf32>
    %424 = arith.subf %407, %423 : vector<16x64xf32>
    %cst_173 = arith.constant 9.99999974E-6 : f32
    %425 = vector.broadcast %cst_173 : f32 to vector<16x1xf32>
    %426 = arith.addf %422, %425 : vector<16x1xf32>
    %427 = math.rsqrt %426 : vector<16x1xf32>
    %428 = vector.broadcast %427 : vector<16x1xf32> to vector<16x64xf32>
    %429 = arith.mulf %424, %428 : vector<16x64xf32>
    %430 = vector.broadcast %409 : vector<1x64xf32> to vector<16x64xf32>
    %431 = arith.mulf %429, %430 : vector<16x64xf32>
    %432 = vector.broadcast %411 : vector<1x64xf32> to vector<16x64xf32>
    %433 = arith.addf %431, %432 : vector<16x64xf32>
    %434 = arith.truncf %433 : vector<16x64xf32> to vector<16x64xbf16>
    %c2_174 = arith.constant 2 : index
    %c0_175 = arith.constant 0 : index
    %c0_176 = arith.constant 0 : index
    %435 = vector.load %arg10[%c2_174, %c0_175, %c0_176] : memref<4x64x256xbf16, #tpu.memory_space<vmem>>, vector<1x64x256xbf16>
    %436 = vector.shape_cast %435 : vector<1x64x256xbf16> to vector<64x256xbf16>
    %cst_177 = arith.constant dense<0.000000e+00> : vector<16x256xf32>
    %437 = tpu.matmul %434, %436, %cst_177 {dimension_numbers = #tpu.dot_dimension_numbers<[1], [0], [0], [1], [0, 0, 1, 1], [], []>} : vector<16x64xbf16>, vector<64x256xbf16>, vector<16x256xf32> -> vector<16x256xf32>
    %c2_178 = arith.constant 2 : index
    %c0_179 = arith.constant 0 : index
    %c0_180 = arith.constant 0 : index
    %438 = vector.load %arg11[%c2_178, %c0_179, %c0_180] : memref<4x1x256xf32, #tpu.memory_space<vmem>>, vector<1x1x256xf32>
    %439 = vector.shape_cast %438 : vector<1x1x256xf32> to vector<1x256xf32>
    %440 = vector.broadcast %439 : vector<1x256xf32> to vector<16x256xf32>
    %441 = arith.addf %437, %440 : vector<16x256xf32>
    %cst_181 = arith.constant 5.000000e-01 : f32
    %442 = vector.broadcast %cst_181 : f32 to vector<16x256xf32>
    %443 = arith.mulf %442, %441 : vector<16x256xf32>
    %cst_182 = arith.constant 4.471500e-02 : f32
    %444 = vector.broadcast %cst_182 : f32 to vector<16x256xf32>
    %445 = arith.mulf %444, %441 : vector<16x256xf32>
    %446 = arith.mulf %445, %441 : vector<16x256xf32>
    %447 = arith.mulf %446, %441 : vector<16x256xf32>
    %448 = arith.addf %441, %447 : vector<16x256xf32>
    %cst_183 = arith.constant 0.797884583 : f32
    %449 = vector.broadcast %cst_183 : f32 to vector<16x256xf32>
    %450 = arith.mulf %449, %448 : vector<16x256xf32>
    %451 = math.tanh %450 : vector<16x256xf32>
    %cst_184 = arith.constant 1.000000e+00 : f32
    %452 = vector.broadcast %cst_184 : f32 to vector<16x256xf32>
    %453 = arith.addf %452, %451 : vector<16x256xf32>
    %454 = arith.mulf %443, %453 : vector<16x256xf32>
    %455 = arith.truncf %454 : vector<16x256xf32> to vector<16x256xbf16>
    %c2_185 = arith.constant 2 : index
    %c0_186 = arith.constant 0 : index
    %c0_187 = arith.constant 0 : index
    %456 = vector.load %arg12[%c2_185, %c0_186, %c0_187] : memref<4x256x64xbf16, #tpu.memory_space<vmem>>, vector<1x256x64xbf16>
    %457 = vector.shape_cast %456 : vector<1x256x64xbf16> to vector<256x64xbf16>
    %cst_188 = arith.constant dense<0.000000e+00> : vector<16x64xf32>
    %458 = tpu.matmul %455, %457, %cst_188 {dimension_numbers = #tpu.dot_dimension_numbers<[1], [0], [0], [1], [0, 0, 1, 1], [], []>} : vector<16x256xbf16>, vector<256x64xbf16>, vector<16x64xf32> -> vector<16x64xf32>
    %c2_189 = arith.constant 2 : index
    %c0_190 = arith.constant 0 : index
    %c0_191 = arith.constant 0 : index
    %459 = vector.load %arg13[%c2_189, %c0_190, %c0_191] : memref<4x1x64xf32, #tpu.memory_space<vmem>>, vector<1x1x64xf32>
    %460 = vector.shape_cast %459 : vector<1x1x64xf32> to vector<1x64xf32>
    %461 = vector.broadcast %460 : vector<1x64xf32> to vector<16x64xf32>
    %462 = arith.addf %458, %461 : vector<16x64xf32>
    %463 = arith.addf %407, %462 : vector<16x64xf32>
    %c3 = arith.constant 3 : index
    %c0_192 = arith.constant 0 : index
    %c0_193 = arith.constant 0 : index
    %464 = vector.load %arg1[%c3, %c0_192, %c0_193] : memref<4x1x64xf32, #tpu.memory_space<vmem>>, vector<1x1x64xf32>
    %465 = vector.shape_cast %464 : vector<1x1x64xf32> to vector<1x64xf32>
    %c3_194 = arith.constant 3 : index
    %c0_195 = arith.constant 0 : index
    %c0_196 = arith.constant 0 : index
    %466 = vector.load %arg2[%c3_194, %c0_195, %c0_196] : memref<4x1x64xf32, #tpu.memory_space<vmem>>, vector<1x1x64xf32>
    %467 = vector.shape_cast %466 : vector<1x1x64xf32> to vector<1x64xf32>
    %cst_197 = arith.constant dense<0.000000e+00> : vector<16xf32>
    %468 = vector.multi_reduction <add>, %463, %cst_197 [1] : vector<16x64xf32> to vector<16xf32>
    %469 = vector.shape_cast %468 : vector<16xf32> to vector<16x1xf32>
    %cst_198 = arith.constant 6.400000e+01 : f32
    %470 = vector.broadcast %cst_198 : f32 to vector<16x1xf32>
    %471 = arith.divf %469, %470 : vector<16x1xf32>
    %472 = vector.broadcast %471 : vector<16x1xf32> to vector<16x64xf32>
    %473 = arith.subf %463, %472 : vector<16x64xf32>
    %474 = arith.mulf %473, %473 : vector<16x64xf32>
    %cst_199 = arith.constant dense<0.000000e+00> : vector<16xf32>
    %475 = vector.multi_reduction <add>, %474, %cst_199 [1] : vector<16x64xf32> to vector<16xf32>
    %476 = vector.shape_cast %475 : vector<16xf32> to vector<16x1xf32>
    %cst_200 = arith.constant 6.400000e+01 : f32
    %477 = vector.broadcast %cst_200 : f32 to vector<16x1xf32>
    %478 = arith.divf %476, %477 : vector<16x1xf32>
    %479 = vector.broadcast %471 : vector<16x1xf32> to vector<16x64xf32>
    %480 = arith.subf %463, %479 : vector<16x64xf32>
    %cst_201 = arith.constant 9.99999974E-6 : f32
    %481 = vector.broadcast %cst_201 : f32 to vector<16x1xf32>
    %482 = arith.addf %478, %481 : vector<16x1xf32>
    %483 = math.rsqrt %482 : vector<16x1xf32>
    %484 = vector.broadcast %483 : vector<16x1xf32> to vector<16x64xf32>
    %485 = arith.mulf %480, %484 : vector<16x64xf32>
    %486 = vector.broadcast %465 : vector<1x64xf32> to vector<16x64xf32>
    %487 = arith.mulf %485, %486 : vector<16x64xf32>
    %488 = vector.broadcast %467 : vector<1x64xf32> to vector<16x64xf32>
    %489 = arith.addf %487, %488 : vector<16x64xf32>
    %490 = arith.truncf %489 : vector<16x64xf32> to vector<16x64xbf16>
    %c3_202 = arith.constant 3 : index
    %c0_203 = arith.constant 0 : index
    %c0_204 = arith.constant 0 : index
    %491 = vector.load %arg3[%c3_202, %c0_203, %c0_204] : memref<4x64x64xbf16, #tpu.memory_space<vmem>>, vector<1x64x64xbf16>
    %492 = vector.shape_cast %491 : vector<1x64x64xbf16> to vector<64x64xbf16>
    %cst_205 = arith.constant dense<0.000000e+00> : vector<16x64xf32>
    %493 = tpu.matmul %490, %492, %cst_205 {dimension_numbers = #tpu.dot_dimension_numbers<[1], [0], [0], [1], [0, 0, 1, 1], [], []>} : vector<16x64xbf16>, vector<64x64xbf16>, vector<16x64xf32> -> vector<16x64xf32>
    %c3_206 = arith.constant 3 : index
    %c0_207 = arith.constant 0 : index
    %c0_208 = arith.constant 0 : index
    %494 = vector.load %arg4[%c3_206, %c0_207, %c0_208] : memref<4x64x64xbf16, #tpu.memory_space<vmem>>, vector<1x64x64xbf16>
    %495 = vector.shape_cast %494 : vector<1x64x64xbf16> to vector<64x64xbf16>
    %cst_209 = arith.constant dense<0.000000e+00> : vector<16x64xf32>
    %496 = tpu.matmul %490, %495, %cst_209 {dimension_numbers = #tpu.dot_dimension_numbers<[1], [0], [0], [1], [0, 0, 1, 1], [], []>} : vector<16x64xbf16>, vector<64x64xbf16>, vector<16x64xf32> -> vector<16x64xf32>
    %c3_210 = arith.constant 3 : index
    %c0_211 = arith.constant 0 : index
    %c0_212 = arith.constant 0 : index
    %497 = vector.load %arg5[%c3_210, %c0_211, %c0_212] : memref<4x64x64xbf16, #tpu.memory_space<vmem>>, vector<1x64x64xbf16>
    %498 = vector.shape_cast %497 : vector<1x64x64xbf16> to vector<64x64xbf16>
    %cst_213 = arith.constant dense<0.000000e+00> : vector<16x64xf32>
    %499 = tpu.matmul %490, %498, %cst_213 {dimension_numbers = #tpu.dot_dimension_numbers<[1], [0], [0], [1], [0, 0, 1, 1], [], []>} : vector<16x64xbf16>, vector<64x64xbf16>, vector<16x64xf32> -> vector<16x64xf32>
    %500 = vector.extract_strided_slice %493 {offsets = [0, 0], sizes = [16, 16], strides = [1, 1]} : vector<16x64xf32> to vector<16x16xf32>
    %501 = vector.shape_cast %500 : vector<16x16xf32> to vector<2x8x16xf32>
    %502 = vector.extract_strided_slice %493 {offsets = [0, 16], sizes = [16, 16], strides = [1, 1]} : vector<16x64xf32> to vector<16x16xf32>
    %503 = vector.shape_cast %502 : vector<16x16xf32> to vector<2x8x16xf32>
    %504 = vector.extract_strided_slice %493 {offsets = [0, 32], sizes = [16, 16], strides = [1, 1]} : vector<16x64xf32> to vector<16x16xf32>
    %505 = vector.shape_cast %504 : vector<16x16xf32> to vector<2x8x16xf32>
    %506 = vector.extract_strided_slice %493 {offsets = [0, 48], sizes = [16, 16], strides = [1, 1]} : vector<16x64xf32> to vector<16x16xf32>
    %507 = vector.shape_cast %506 : vector<16x16xf32> to vector<2x8x16xf32>
    %508 = tpu.concatenate %501, %503, %505, %507 in 0 : vector<2x8x16xf32>, vector<2x8x16xf32>, vector<2x8x16xf32>, vector<2x8x16xf32> -> vector<8x8x16xf32>
    %509 = vector.extract_strided_slice %496 {offsets = [0, 0], sizes = [16, 16], strides = [1, 1]} : vector<16x64xf32> to vector<16x16xf32>
    %510 = vector.shape_cast %509 : vector<16x16xf32> to vector<2x8x16xf32>
    %511 = vector.extract_strided_slice %496 {offsets = [0, 16], sizes = [16, 16], strides = [1, 1]} : vector<16x64xf32> to vector<16x16xf32>
    %512 = vector.shape_cast %511 : vector<16x16xf32> to vector<2x8x16xf32>
    %513 = vector.extract_strided_slice %496 {offsets = [0, 32], sizes = [16, 16], strides = [1, 1]} : vector<16x64xf32> to vector<16x16xf32>
    %514 = vector.shape_cast %513 : vector<16x16xf32> to vector<2x8x16xf32>
    %515 = vector.extract_strided_slice %496 {offsets = [0, 48], sizes = [16, 16], strides = [1, 1]} : vector<16x64xf32> to vector<16x16xf32>
    %516 = vector.shape_cast %515 : vector<16x16xf32> to vector<2x8x16xf32>
    %517 = tpu.concatenate %510, %512, %514, %516 in 0 : vector<2x8x16xf32>, vector<2x8x16xf32>, vector<2x8x16xf32>, vector<2x8x16xf32> -> vector<8x8x16xf32>
    %518 = vector.extract_strided_slice %499 {offsets = [0, 0], sizes = [16, 16], strides = [1, 1]} : vector<16x64xf32> to vector<16x16xf32>
    %519 = vector.shape_cast %518 : vector<16x16xf32> to vector<2x8x16xf32>
    %520 = vector.extract_strided_slice %499 {offsets = [0, 16], sizes = [16, 16], strides = [1, 1]} : vector<16x64xf32> to vector<16x16xf32>
    %521 = vector.shape_cast %520 : vector<16x16xf32> to vector<2x8x16xf32>
    %522 = vector.extract_strided_slice %499 {offsets = [0, 32], sizes = [16, 16], strides = [1, 1]} : vector<16x64xf32> to vector<16x16xf32>
    %523 = vector.shape_cast %522 : vector<16x16xf32> to vector<2x8x16xf32>
    %524 = vector.extract_strided_slice %499 {offsets = [0, 48], sizes = [16, 16], strides = [1, 1]} : vector<16x64xf32> to vector<16x16xf32>
    %525 = vector.shape_cast %524 : vector<16x16xf32> to vector<2x8x16xf32>
    %526 = tpu.concatenate %519, %521, %523, %525 in 0 : vector<2x8x16xf32>, vector<2x8x16xf32>, vector<2x8x16xf32>, vector<2x8x16xf32> -> vector<8x8x16xf32>
    "tpu.trace_start"() <{level = 10 : i32, message = "ztd,zsd->zts"}> : () -> ()
    %cst_214 = arith.constant dense<0.000000e+00> : vector<8x8x8xf32>
    %527 = tpu.matmul %508, %517, %cst_214 {dimension_numbers = #tpu.dot_dimension_numbers<[2], [2], [1], [1], [0, 0, 0, 1, 1, 1], [0], [0]>} : vector<8x8x16xf32>, vector<8x8x16xf32>, vector<8x8x8xf32> -> vector<8x8x8xf32>
    "tpu.trace_stop"() : () -> ()
    %cst_215 = arith.constant 1.250000e-01 : f32
    %528 = vector.broadcast %cst_215 : f32 to vector<8x8x8xf32>
    %529 = arith.mulf %527, %528 : vector<8x8x8xf32>
    %530 = vector.broadcast %7 : vector<1x8x8xf32> to vector<8x8x8xf32>
    %531 = arith.addf %529, %530 : vector<8x8x8xf32>
    %cst_216 = arith.constant dense<0xFF800000> : vector<8x8xf32>
    %532 = vector.multi_reduction <maximumf>, %531, %cst_216 [2] : vector<8x8x8xf32> to vector<8x8xf32>
    %533 = vector.shape_cast %532 : vector<8x8xf32> to vector<8x8x1xf32>
    %534 = vector.broadcast %533 : vector<8x8x1xf32> to vector<8x8x8xf32>
    %535 = arith.subf %531, %534 : vector<8x8x8xf32>
    %536 = math.exp %535 : vector<8x8x8xf32>
    %cst_217 = arith.constant dense<0.000000e+00> : vector<8x8xf32>
    %537 = vector.multi_reduction <add>, %536, %cst_217 [2] : vector<8x8x8xf32> to vector<8x8xf32>
    %538 = vector.shape_cast %537 : vector<8x8xf32> to vector<8x8x1xf32>
    %539 = vector.broadcast %538 : vector<8x8x1xf32> to vector<8x8x8xf32>
    %540 = arith.divf %536, %539 : vector<8x8x8xf32>
    "tpu.trace_start"() <{level = 10 : i32, message = "zts,zsd->ztd"}> : () -> ()
    %cst_218 = arith.constant dense<0.000000e+00> : vector<8x8x16xf32>
    %541 = tpu.matmul %540, %526, %cst_218 {dimension_numbers = #tpu.dot_dimension_numbers<[2], [1], [1], [2], [0, 0, 0, 1, 1, 2], [0], [0]>} : vector<8x8x8xf32>, vector<8x8x16xf32>, vector<8x8x16xf32> -> vector<8x8x16xf32>
    "tpu.trace_stop"() : () -> ()
    %542 = vector.extract_strided_slice %541 {offsets = [0, 0, 0], sizes = [2, 8, 16], strides = [1, 1, 1]} : vector<8x8x16xf32> to vector<2x8x16xf32>
    %543 = vector.shape_cast %542 : vector<2x8x16xf32> to vector<16x16xf32>
    %544 = vector.extract_strided_slice %541 {offsets = [2, 0, 0], sizes = [2, 8, 16], strides = [1, 1, 1]} : vector<8x8x16xf32> to vector<2x8x16xf32>
    %545 = vector.shape_cast %544 : vector<2x8x16xf32> to vector<16x16xf32>
    %546 = vector.extract_strided_slice %541 {offsets = [4, 0, 0], sizes = [2, 8, 16], strides = [1, 1, 1]} : vector<8x8x16xf32> to vector<2x8x16xf32>
    %547 = vector.shape_cast %546 : vector<2x8x16xf32> to vector<16x16xf32>
    %548 = vector.extract_strided_slice %541 {offsets = [6, 0, 0], sizes = [2, 8, 16], strides = [1, 1, 1]} : vector<8x8x16xf32> to vector<2x8x16xf32>
    %549 = vector.shape_cast %548 : vector<2x8x16xf32> to vector<16x16xf32>
    %550 = tpu.concatenate %543, %545, %547, %549 in 1 : vector<16x16xf32>, vector<16x16xf32>, vector<16x16xf32>, vector<16x16xf32> -> vector<16x64xf32>
    %551 = arith.truncf %550 : vector<16x64xf32> to vector<16x64xbf16>
    %c3_219 = arith.constant 3 : index
    %c0_220 = arith.constant 0 : index
    %c0_221 = arith.constant 0 : index
    %552 = vector.load %arg6[%c3_219, %c0_220, %c0_221] : memref<4x64x64xbf16, #tpu.memory_space<vmem>>, vector<1x64x64xbf16>
    %553 = vector.shape_cast %552 : vector<1x64x64xbf16> to vector<64x64xbf16>
    %cst_222 = arith.constant dense<0.000000e+00> : vector<16x64xf32>
    %554 = tpu.matmul %551, %553, %cst_222 {dimension_numbers = #tpu.dot_dimension_numbers<[1], [0], [0], [1], [0, 0, 1, 1], [], []>} : vector<16x64xbf16>, vector<64x64xbf16>, vector<16x64xf32> -> vector<16x64xf32>
    %c3_223 = arith.constant 3 : index
    %c0_224 = arith.constant 0 : index
    %c0_225 = arith.constant 0 : index
    %555 = vector.load %arg7[%c3_223, %c0_224, %c0_225] : memref<4x1x64xf32, #tpu.memory_space<vmem>>, vector<1x1x64xf32>
    %556 = vector.shape_cast %555 : vector<1x1x64xf32> to vector<1x64xf32>
    %557 = vector.broadcast %556 : vector<1x64xf32> to vector<16x64xf32>
    %558 = arith.addf %554, %557 : vector<16x64xf32>
    %559 = arith.addf %463, %558 : vector<16x64xf32>
    %c3_226 = arith.constant 3 : index
    %c0_227 = arith.constant 0 : index
    %c0_228 = arith.constant 0 : index
    %560 = vector.load %arg8[%c3_226, %c0_227, %c0_228] : memref<4x1x64xf32, #tpu.memory_space<vmem>>, vector<1x1x64xf32>
    %561 = vector.shape_cast %560 : vector<1x1x64xf32> to vector<1x64xf32>
    %c3_229 = arith.constant 3 : index
    %c0_230 = arith.constant 0 : index
    %c0_231 = arith.constant 0 : index
    %562 = vector.load %arg9[%c3_229, %c0_230, %c0_231] : memref<4x1x64xf32, #tpu.memory_space<vmem>>, vector<1x1x64xf32>
    %563 = vector.shape_cast %562 : vector<1x1x64xf32> to vector<1x64xf32>
    %cst_232 = arith.constant dense<0.000000e+00> : vector<16xf32>
    %564 = vector.multi_reduction <add>, %559, %cst_232 [1] : vector<16x64xf32> to vector<16xf32>
    %565 = vector.shape_cast %564 : vector<16xf32> to vector<16x1xf32>
    %cst_233 = arith.constant 6.400000e+01 : f32
    %566 = vector.broadcast %cst_233 : f32 to vector<16x1xf32>
    %567 = arith.divf %565, %566 : vector<16x1xf32>
    %568 = vector.broadcast %567 : vector<16x1xf32> to vector<16x64xf32>
    %569 = arith.subf %559, %568 : vector<16x64xf32>
    %570 = arith.mulf %569, %569 : vector<16x64xf32>
    %cst_234 = arith.constant dense<0.000000e+00> : vector<16xf32>
    %571 = vector.multi_reduction <add>, %570, %cst_234 [1] : vector<16x64xf32> to vector<16xf32>
    %572 = vector.shape_cast %571 : vector<16xf32> to vector<16x1xf32>
    %cst_235 = arith.constant 6.400000e+01 : f32
    %573 = vector.broadcast %cst_235 : f32 to vector<16x1xf32>
    %574 = arith.divf %572, %573 : vector<16x1xf32>
    %575 = vector.broadcast %567 : vector<16x1xf32> to vector<16x64xf32>
    %576 = arith.subf %559, %575 : vector<16x64xf32>
    %cst_236 = arith.constant 9.99999974E-6 : f32
    %577 = vector.broadcast %cst_236 : f32 to vector<16x1xf32>
    %578 = arith.addf %574, %577 : vector<16x1xf32>
    %579 = math.rsqrt %578 : vector<16x1xf32>
    %580 = vector.broadcast %579 : vector<16x1xf32> to vector<16x64xf32>
    %581 = arith.mulf %576, %580 : vector<16x64xf32>
    %582 = vector.broadcast %561 : vector<1x64xf32> to vector<16x64xf32>
    %583 = arith.mulf %581, %582 : vector<16x64xf32>
    %584 = vector.broadcast %563 : vector<1x64xf32> to vector<16x64xf32>
    %585 = arith.addf %583, %584 : vector<16x64xf32>
    %586 = arith.truncf %585 : vector<16x64xf32> to vector<16x64xbf16>
    %c3_237 = arith.constant 3 : index
    %c0_238 = arith.constant 0 : index
    %c0_239 = arith.constant 0 : index
    %587 = vector.load %arg10[%c3_237, %c0_238, %c0_239] : memref<4x64x256xbf16, #tpu.memory_space<vmem>>, vector<1x64x256xbf16>
    %588 = vector.shape_cast %587 : vector<1x64x256xbf16> to vector<64x256xbf16>
    %cst_240 = arith.constant dense<0.000000e+00> : vector<16x256xf32>
    %589 = tpu.matmul %586, %588, %cst_240 {dimension_numbers = #tpu.dot_dimension_numbers<[1], [0], [0], [1], [0, 0, 1, 1], [], []>} : vector<16x64xbf16>, vector<64x256xbf16>, vector<16x256xf32> -> vector<16x256xf32>
    %c3_241 = arith.constant 3 : index
    %c0_242 = arith.constant 0 : index
    %c0_243 = arith.constant 0 : index
    %590 = vector.load %arg11[%c3_241, %c0_242, %c0_243] : memref<4x1x256xf32, #tpu.memory_space<vmem>>, vector<1x1x256xf32>
    %591 = vector.shape_cast %590 : vector<1x1x256xf32> to vector<1x256xf32>
    %592 = vector.broadcast %591 : vector<1x256xf32> to vector<16x256xf32>
    %593 = arith.addf %589, %592 : vector<16x256xf32>
    %cst_244 = arith.constant 5.000000e-01 : f32
    %594 = vector.broadcast %cst_244 : f32 to vector<16x256xf32>
    %595 = arith.mulf %594, %593 : vector<16x256xf32>
    %cst_245 = arith.constant 4.471500e-02 : f32
    %596 = vector.broadcast %cst_245 : f32 to vector<16x256xf32>
    %597 = arith.mulf %596, %593 : vector<16x256xf32>
    %598 = arith.mulf %597, %593 : vector<16x256xf32>
    %599 = arith.mulf %598, %593 : vector<16x256xf32>
    %600 = arith.addf %593, %599 : vector<16x256xf32>
    %cst_246 = arith.constant 0.797884583 : f32
    %601 = vector.broadcast %cst_246 : f32 to vector<16x256xf32>
    %602 = arith.mulf %601, %600 : vector<16x256xf32>
    %603 = math.tanh %602 : vector<16x256xf32>
    %cst_247 = arith.constant 1.000000e+00 : f32
    %604 = vector.broadcast %cst_247 : f32 to vector<16x256xf32>
    %605 = arith.addf %604, %603 : vector<16x256xf32>
    %606 = arith.mulf %595, %605 : vector<16x256xf32>
    %607 = arith.truncf %606 : vector<16x256xf32> to vector<16x256xbf16>
    %c3_248 = arith.constant 3 : index
    %c0_249 = arith.constant 0 : index
    %c0_250 = arith.constant 0 : index
    %608 = vector.load %arg12[%c3_248, %c0_249, %c0_250] : memref<4x256x64xbf16, #tpu.memory_space<vmem>>, vector<1x256x64xbf16>
    %609 = vector.shape_cast %608 : vector<1x256x64xbf16> to vector<256x64xbf16>
    %cst_251 = arith.constant dense<0.000000e+00> : vector<16x64xf32>
    %610 = tpu.matmul %607, %609, %cst_251 {dimension_numbers = #tpu.dot_dimension_numbers<[1], [0], [0], [1], [0, 0, 1, 1], [], []>} : vector<16x256xbf16>, vector<256x64xbf16>, vector<16x64xf32> -> vector<16x64xf32>
    %c3_252 = arith.constant 3 : index
    %c0_253 = arith.constant 0 : index
    %c0_254 = arith.constant 0 : index
    %611 = vector.load %arg13[%c3_252, %c0_253, %c0_254] : memref<4x1x64xf32, #tpu.memory_space<vmem>>, vector<1x1x64xf32>
    %612 = vector.shape_cast %611 : vector<1x1x64xf32> to vector<1x64xf32>
    %613 = vector.broadcast %612 : vector<1x64xf32> to vector<16x64xf32>
    %614 = arith.addf %610, %613 : vector<16x64xf32>
    %615 = arith.addf %559, %614 : vector<16x64xf32>
    %c0_255 = arith.constant 0 : index
    %c0_256 = arith.constant 0 : index
    %616 = vector.load %arg14[%c0_255, %c0_256] : memref<1x64xf32, #tpu.memory_space<vmem>>, vector<1x64xf32>
    %c0_257 = arith.constant 0 : index
    %c0_258 = arith.constant 0 : index
    %617 = vector.load %arg15[%c0_257, %c0_258] : memref<1x64xf32, #tpu.memory_space<vmem>>, vector<1x64xf32>
    %cst_259 = arith.constant dense<0.000000e+00> : vector<16xf32>
    %618 = vector.multi_reduction <add>, %615, %cst_259 [1] : vector<16x64xf32> to vector<16xf32>
    %619 = vector.shape_cast %618 : vector<16xf32> to vector<16x1xf32>
    %cst_260 = arith.constant 6.400000e+01 : f32
    %620 = vector.broadcast %cst_260 : f32 to vector<16x1xf32>
    %621 = arith.divf %619, %620 : vector<16x1xf32>
    %622 = vector.broadcast %621 : vector<16x1xf32> to vector<16x64xf32>
    %623 = arith.subf %615, %622 : vector<16x64xf32>
    %624 = arith.mulf %623, %623 : vector<16x64xf32>
    %cst_261 = arith.constant dense<0.000000e+00> : vector<16xf32>
    %625 = vector.multi_reduction <add>, %624, %cst_261 [1] : vector<16x64xf32> to vector<16xf32>
    %626 = vector.shape_cast %625 : vector<16xf32> to vector<16x1xf32>
    %cst_262 = arith.constant 6.400000e+01 : f32
    %627 = vector.broadcast %cst_262 : f32 to vector<16x1xf32>
    %628 = arith.divf %626, %627 : vector<16x1xf32>
    %629 = vector.broadcast %621 : vector<16x1xf32> to vector<16x64xf32>
    %630 = arith.subf %615, %629 : vector<16x64xf32>
    %cst_263 = arith.constant 9.99999974E-6 : f32
    %631 = vector.broadcast %cst_263 : f32 to vector<16x1xf32>
    %632 = arith.addf %628, %631 : vector<16x1xf32>
    %633 = math.rsqrt %632 : vector<16x1xf32>
    %634 = vector.broadcast %633 : vector<16x1xf32> to vector<16x64xf32>
    %635 = arith.mulf %630, %634 : vector<16x64xf32>
    %636 = vector.broadcast %616 : vector<1x64xf32> to vector<16x64xf32>
    %637 = arith.mulf %635, %636 : vector<16x64xf32>
    %638 = vector.broadcast %617 : vector<1x64xf32> to vector<16x64xf32>
    %639 = arith.addf %637, %638 : vector<16x64xf32>
    %640 = arith.truncf %639 : vector<16x64xf32> to vector<16x64xbf16>
    %c0_264 = arith.constant 0 : index
    %c0_265 = arith.constant 0 : index
    %641 = vector.load %arg16[%c0_264, %c0_265] : memref<64x128xbf16, #tpu.memory_space<vmem>>, vector<64x128xbf16>
    %cst_266 = arith.constant dense<0.000000e+00> : vector<16x128xf32>
    %642 = tpu.matmul %640, %641, %cst_266 {dimension_numbers = #tpu.dot_dimension_numbers<[1], [0], [0], [1], [0, 0, 1, 1], [], []>} : vector<16x64xbf16>, vector<64x128xbf16>, vector<16x128xf32> -> vector<16x128xf32>
    %c0_267 = arith.constant 0 : index
    %c0_268 = arith.constant 0 : index
    %643 = vector.load %arg17[%c0_267, %c0_268] : memref<1x128xf32, #tpu.memory_space<vmem>>, vector<1x128xf32>
    %644 = vector.broadcast %643 : vector<1x128xf32> to vector<16x128xf32>
    %645 = arith.addf %642, %644 : vector<16x128xf32>
    %c0_269 = arith.constant 0 : index
    %c0_270 = arith.constant 0 : index
    %646 = vector.load %arg18[%c0_269, %c0_270] : memref<16x128xf32, #tpu.memory_space<vmem>>, vector<16x128xf32>
    tpu.vector_store %arg18[%c0_269, %c0_270], %645 {strides = array<i32>} : memref<16x128xf32, #tpu.memory_space<vmem>>, vector<16x128xf32>,
    return
  }
}

</mosaic_0001>

<bundles_post_ra>
// kernel: forward.1
= control target key start
LH: loop header
LB: loop body
LE: loop exit
PB: predicated region body
PF: predicated region fallthrough
CT: control target
= control target key end

     0   :  { %s11962_s0 = inlined_call_operand.vmem [shape: f32[16,64], index: 0, kind: input, shape index: {}]   ;;  %s11963_s1 = inlined_call_operand.vmem [shape: f32[4,1,64], index: 1, kind: input, shape index: {}]   ;;  %s11964_s2 = inlined_call_operand.vmem [shape: f32[4,1,64], index: 2, kind: input, shape index: {}]   ;;  %s11965_s3 = inlined_call_operand.vmem [shape: bf16[4,64,64], index: 3, kind: input, shape index: {}]   ;;  %s11966_s4 = inlined_call_operand.vmem [shape: bf16[4,64,64], index: 4, kind: input, shape index: {}]   ;;  %s11967_s5 = inlined_call_operand.vmem [shape: bf16[4,64,64], index: 5, kind: input, shape index: {}]   ;;  %s11968_s6 = inlined_call_operand.vmem [shape: bf16[4,64,64], index: 6, kind: input, shape index: {}]   ;;  %s11969_s7 = inlined_call_operand.vmem [shape: f32[4,1,64], index: 7, kind: input, shape index: {}]   ;;  %s11970_s8 = inlined_call_operand.vmem [shape: f32[4,1,64], index: 8, kind: input, shape index: {}]   ;;  %s11971_s9 = inlined_call_operand.vmem [shape: f32[4,1,64], index: 9, kind: input, shape index: {}]   ;;  %s11972_s10 = inlined_call_operand.vmem [shape: bf16[4,64,256], index: 10, kind: input, shape index: {}]   ;;  %s11973_s11 = inlined_call_operand.vmem [shape: f32[4,1,256], index: 11, kind: input, shape index: {}]   ;;  %s11974_s12 = inlined_call_operand.vmem [shape: bf16[4,256,64], index: 12, kind: input, shape index: {}]   ;;  %s11975_s13 = inlined_call_operand.vmem [shape: f32[4,1,64], index: 13, kind: input, shape index: {}]   ;;  %s11976_s14 = inlined_call_operand.vmem [shape: f32[1,64], index: 14, kind: input, shape index: {}]   ;;  %s11977_s15 = inlined_call_operand.vmem [shape: f32[1,64], index: 15, kind: input, shape index: {}]   ;;  %s11978_s16 = inlined_call_operand.vmem [shape: bf16[64,128], index: 16, kind: input, shape index: {}]   ;;  %s11979_s17 = inlined_call_operand.vmem [shape: f32[1,128], index: 17, kind: input, shape index: {}]   ;;  %s11980_s18 = inlined_call_operand.hbm [shape: f32[16,128], index: 18, kind: output, shape index: {}]  }
   0x1   :  { %11997 = sst [smem:[#allocation5_spill]] %s11962_s0 }
   0x2   :  { %11998 = sst [smem:[#allocation6_spill]] %s11963_s1 }
   0x3   :  { %11999 = sst [smem:[#allocation7_spill]] %s11964_s2 }
   0x4   :  { %12000 = sst [smem:[#allocation8_spill]] %s11977_s15 }
   0x5   :  { %12001 = sst [smem:[#allocation9_spill]] %s11979_s17 }
   0x6   :  { %12002 = sst [smem:[#allocation10_spill]] %s11980_s18 }
   0x7   :  { %s12003_s29 = sld [smem:[#allocation5_spill]]  ;;  %vm71_vm0 = vcmask 523264  }
   0xd   :  { %v61_v0 = vld [vmem:[%s12003_s29] sm:$0xff]  ;;  %v62_v1 = vld [vmem:[%s12003_s29 + $0x8] sm:$0xff] }
   0xe   :  { %v72_v2 = vsel %vm71_vm0, %v61_v0, 0.0  ;;  %v75_v3 = vsel %vm71_vm0, %v62_v1, 0.0 }
   0xf   :  { %73 = vadd.xlane.f32.xlu0 %v72_v2 }
  0x13   :  { %76 = vadd.xlane.f32.xlu0 %v75_v3 }
  0x14   :  { %23 = vsyncpa [#allocation3], 0  ;;  %v10015_v14 = vld [vmem:[%s11965_s3] sm:$0xff]   ;;  %v10417_v16 = vmov 0.0   ;;  %v10017_v17 = vld [vmem:[%s11965_s3 + $0x8] sm:$0xff]   ;;  %vm10418_vm1 = vmmov 0  }
  0x15   :  { %v10016_v15 = vld [vmem:[%s11966_s4] sm:$0xff]   ;;  %9418 = vmatprep.subr.bf16.mxu0 %v10417_v16  ;;  %9430 = vmatprep.subr.bf16.mxu1 %v10417_v16  ;;  %v10018_v18 = vld [vmem:[%s11966_s4 + $0x8] sm:$0xff]   ;;  %v10019_v19 = vld [vmem:[%s11965_s3 + $0x10] sm:$0xff]   ;;  %s12004_s22 = sld [smem:[#allocation6_spill]]  ;;  %s12005_s24 = sld [smem:[#allocation7_spill]]  ;;  %vm386_vm2 = vcmask 130048  }
  0x16   :  { %9419 = vmatpush3.bf16.msra.mxu0 %v10015_v14  ;;  %9431 = vmatpush3.bf16.msra.mxu1 %v10016_v15  ;;  %v10020_v20 = vld [vmem:[%s11966_s4 + $0x10] sm:$0xff]   ;;  %v10021_v21 = vld [vmem:[%s11965_s3 + $0x18] sm:$0xff]   ;;  %v10023_v39 = vld [vmem:[%s11967_s5] sm:$0xff]   ;;  %s11994_s20 = smov 112   ;;  %s11992_s21 = smov 96   ;;  %vm995_vm4 = vcmask 64512  }
  0x17   :  { %9420 = vmatprep.subr.bf16.mxu0 %v10417_v16  ;;  %9432 = vmatprep.subr.bf16.mxu1 %v10417_v16  ;;  %v10022_v22 = vld [vmem:[%s11966_s4 + $0x18] sm:$0xff]   ;;  %v10024_v41 = vld [vmem:[%s11967_s5 + $0x8] sm:$0xff]   ;;  %v10025_v42 = vld [vmem:[%s11967_s5 + $0x10] sm:$0xff]   ;;  %s11990_s2 = smov 80   ;;  %s11988_s0 = smov 16   ;;  %vm1694_vm5 = vcmask 261120  }
  0x18   :  { %9426 = vmatprep.mubr.msk.bf16.mxu0 %vm10418_vm1, %v10417_v16  ;;  %9438 = vmatprep.mubr.msk.bf16.mxu1 %vm10418_vm1, %v10417_v16  ;;  %v10026_v43 = vld [vmem:[%s11967_s5 + $0x18] sm:$0xff]   ;;  %s11986_s23 = smov 32   ;;  %s11984_s25 = smov 48   ;;  %vm1697_vm6 = vcmask 392192  }
  0x19   :  { %s12006_s27 = smov 16   ;;  %s12007_s28 = smov 32  }
  0x1a   :  { %9421 = vmatpush3.bf16.msra.mxu0 %v10017_v17  ;;  %9433 = vmatpush3.bf16.msra.mxu1 %v10018_v18  ;;  %s12008_s30 = smov 48   ;;  %s12009_s26 = smov 112  }
  0x1b   :  { %9422 = vmatprep.subr.bf16.mxu0 %v10417_v16  ;;  %9434 = vmatprep.subr.bf16.mxu1 %v10417_v16  ;;  %v8572_v31 = vld [vmem:[%s12004_s22] ss:$0 sm:$0xff]  ;;  %s12010_s19 = smov 96  }
  0x1c   :  { %v8573_v35 = vld [vmem:[%s12005_s24] ss:$0 sm:$0xff] }
  0x1e   :  { %9423 = vmatpush3.bf16.msra.mxu0 %v10019_v19  ;;  %9435 = vmatpush3.bf16.msra.mxu1 %v10020_v20 }
  0x1f   :  { %9424 = vmatprep.subr.bf16.mxu0 %v10417_v16  ;;  %9436 = vmatprep.subr.bf16.mxu1 %v10417_v16 }
  0x22   :  { %9425 = vmatpush3.bf16.msra.mxu0 %v10021_v21  ;;  %9437 = vmatpush3.bf16.msra.mxu1 %v10022_v22 }
  0x23   :  { %9442 = vmatprep.subr.bf16.mxu0 %v10417_v16  ;;  %9454 = vmatprep.subr.mxu1 %v10417_v16 }
  0x9c   :  { %v74_v4 = vpop.xlane.xlu0 %73 }
  0x9d   :  { %v79_v5 = vmul.f32 0.015625, %v74_v4  ;;  %v63_v4 = vlaneseq }
  0x9f   :  { %v81_v6 = vsub.f32 %v61_v0, %v79_v5  ;;  %v10664_v5 = vshrl.u32 %v63_v4, 7 }
  0xa0   :  { %v77_v7 = vpop.xlane.xlu0 %76 }
  0xa1   :  { %v80_v8 = vmul.f32 0.015625, %v77_v7  ;;  %v83_v9 = vmul.f32 %v81_v6, %v81_v6 }
  0xa3   :  { %v82_v10 = vsub.f32 %v62_v1, %v80_v8  ;;  %v85_v11 = vsel %vm71_vm0, %v83_v9, 0.0  ;;  %v10422_v8 = vmov -1e+30  }
  0xa4   :  { %86 = vadd.xlane.f32.xlu1 %v85_v11 }
  0xa5   :  { %v84_v12 = vmul.f32 %v82_v10, %v82_v10 }
  0xa7   :  { %v88_v13 = vsel %vm71_vm0, %v84_v12, 0.0 }
  0xa8   :  { %89 = vadd.xlane.f32.xlu1 %v88_v13 }
 0x131   :  { %v87_v23 = vpop.xlane.xlu1 %86 }
 0x132   :  { %v91_v24 = vmul.f32 0.015625, %v87_v23 }
 0x134   :  { %v93_v25 = vadd.f32 1e-05, %v91_v24 }
 0x135   :  { %v90_v26 = vpop.xlane.xlu1 %89 }
 0x136   :  { %10195 = vrsqrt.f32 %v93_v25  ;;  %v92_v27 = vmul.f32 0.015625, %v90_v26 }
 0x138   :  { %v94_v28 = vadd.f32 1e-05, %v92_v27 }
 0x13a   :  { %10197 = vrsqrt.f32 %v94_v28 }
 0x140   :  { %v10196_v29 = vpop.eup %10195 }
 0x141   :  { %v97_v30 = vmul.f32 %v10196_v29, %v81_v6  ;;  %v66_v6 = vand.u32 127, %v63_v4 }
 0x143   :  { %v105_v34 = vmul.f32 %v8572_v31, %v97_v30  ;;  %vm67_vm3 = vcmp.ge.s32.totalorder %v10664_v5, %v66_v6 }
 0x144   :  { %v10198_v32 = vpop.eup %10197  ;;  %v10667_v9 = vsel %vm67_vm3, 0.0, %v10422_v8 }
 0x145   :  { %v98_v33 = vmul.f32 %v10198_v32, %v82_v10  ;;  %v113_v37 = vadd.f32 %v8573_v35, %v105_v34 }
 0x147   :  { %v106_v36 = vmul.f32 %v8572_v31, %v98_v33 }
 0x149   :  { %v114_v38 = vadd.f32 %v8573_v35, %v106_v36 }
 0x14b   :  { %v115_v40 = vpack.c.bf16 %v114_v38, %v113_v37 }
 0x14d   :  { %9427 = vmatmul.mubr.msk.bf16.vlgmr.msra.gmra.mrb[0].mxu0 %vm71_vm0, %v115_v40  ;;  %9439 = vmatmul.mubr.msk.bf16.vlgmr.msra.gmra.mrb[0].mxu1 %vm71_vm0, %v115_v40 }
 0x14e   :  { %9443 = vmatpush3.bf16.msra.mxu0 %v10023_v39  ;;  %9450 = vmatprep.mubr.msk.bf16.mxu0 %vm10418_vm1, %v10417_v16 }
 0x14f   :  { %9444 = vmatprep.subr.bf16.mxu0 %v10417_v16  ;;  %9456 = vmatprep.mubr.msk.f32.mxu1 %vm10418_vm1, %v10417_v16 }
 0x152   :  { %9445 = vmatpush3.bf16.msra.mxu0 %v10024_v41 }
 0x153   :  { %9446 = vmatprep.subr.bf16.mxu0 %v10417_v16 }
 0x156   :  { %9447 = vmatpush3.bf16.msra.mxu0 %v10025_v42 }
 0x157   :  { %9448 = vmatprep.subr.bf16.mxu0 %v10417_v16 }
 0x15a   :  { %9449 = vmatpush3.bf16.msra.mxu0 %v10026_v43 }
 0x15b   :  { %9494 = vmatprep.subr.mxu0 %v10417_v16 }
 0x15d   :  { %9451 = vmatmul.mubr.msk.bf16.vlgmr.msra.gmra.mrb[4].mxu0 %vm71_vm0, %v115_v40 }
 0x15e   :  { %9496 = vmatprep.mubr.msk.f32.mxu0 %vm10418_vm1, %v10417_v16 }
 0x220   :  { %v185_v44 = vpop.f32.mrb[0].mxu0  ;;  %v258_v45 = vpop.f32.mrb[0].mxu1 }
 0x221   :  { %354 = vrot.lane.b32.xlu0 %v258_v45, %s11994_s20  ;;  %v9440_v46 = vpop.f32.mrb[1].mxu1  ;;  %9455 = vmatpush3.xpose.msk.msra.mxu1 %vm386_vm2, %v258_v45  ;;  %v9428_v47 = vpop.f32.mrb[1].mxu0 }
 0x222   :  { %340 = vrot.lane.b32.xlu1 %v185_v44, %s11994_s20  ;;  %v188_v48 = vpop.f32.mrb[2].mxu0  ;;  %v261_v49 = vpop.f32.mrb[2].mxu1  ;;  %9459 = vmatprep.subr.mxu1 %v10417_v16 }
 0x223   :  { %v9429_v50 = vpop.f32.mrb[3].mxu0  ;;  %v9441_v51 = vpop.f32.mrb[3].mxu1 }
 0x224   :  { %9457 = vmatmul.mubr.msk.f32.vlgmr.msra.gmra.mrb[4].mxu1 %vm386_vm2, %v185_v44 }
 0x225   :  { %358 = vrot.lane.b32.xlu0 %v258_v45, %s11992_s21  ;;  %9460 = vmatpush3.xpose.msk.msra.mxu1 %vm386_vm2, %v261_v49 }
 0x226   :  { %356 = vrot.lane.b32.xlu1 %v261_v49, %s11994_s20  ;;  %9461 = vmatprep.mubr.msk.f32.mxu1 %vm10418_vm1, %v10417_v16 }
 0x227   :  { %9464 = vmatprep.subr.mxu1 %v10417_v16 }
 0x228   :  { %9462 = vmatmul.mubr.msk.f32.vlgmr.msra.gmra.mrb[6].mxu1 %vm386_vm2, %v188_v48 }
 0x229   :  { %360 = vrot.lane.b32.xlu0 %v261_v49, %s11992_s21  ;;  %9466 = vmatprep.mubr.msk.f32.mxu1 %vm10418_vm1, %v10417_v16 }
 0x22a   :  { %342 = vrot.lane.b32.xlu1 %v188_v48, %s11994_s20 }
 0x22d   :  { %362 = vrot.lane.b32.xlu0 %v258_v45, %s11990_s2 }
 0x22e   :  { %344 = vrot.lane.b32.xlu1 %v185_v44, %s11992_s21 }
 0x230   :  { %v10622_v52 = vpop.f32.mrb[4].mxu0 }
 0x231   :  { %v9452_v53 = vpop.f32.mrb[5].mxu0  ;;  %9495 = vmatpush3.msra.mxu0 %v10622_v52  ;;  %364 = vrot.lane.b32.xlu0 %v261_v49, %s11990_s2 }
 0x232   :  { %346 = vrot.lane.b32.xlu1 %v188_v48, %s11992_s21  ;;  %v10627_v54 = vpop.f32.mrb[6].mxu0  ;;  %9504 = vmatprep.subr.mxu0 %v10417_v16 }
 0x233   :  { %v9453_v55 = vpop.f32.mrb[7].mxu0 }
 0x236   :  { %348 = vrot.lane.b32.xlu1 %v185_v44, %s11990_s2 }
 0x23a   :  { %350 = vrot.lane.b32.xlu1 %v188_v48, %s11990_s2 }
 0x293   :  { %v355_v56 = vpop.permute.xlu0 %354 }
 0x294   :  { %v341_v57 = vpop.permute.xlu1 %340  ;;  %9465 = vmatpush3.xpose.msk.msra.mxu1 %vm386_vm2, %v355_v56 }
 0x295   :  { %9469 = vmatprep.subr.mxu1 %v10417_v16 }
 0x297   :  { %v359_v58 = vpop.permute.xlu0 %358  ;;  %9467 = vmatmul.mubr.msk.f32.vlgmr.msra.gmra.mrb[8].mxu1 %vm386_vm2, %v341_v57 }
 0x298   :  { %v357_v59 = vpop.permute.xlu1 %356  ;;  %9471 = vmatprep.mubr.msk.f32.mxu1 %vm10418_vm1, %v10417_v16 }
 0x299   :  { %9470 = vmatpush3.xpose.msk.msra.mxu1 %vm386_vm2, %v357_v59 }
 0x29a   :  { %9474 = vmatprep.subr.mxu1 %v10417_v16 }
 0x29b   :  { %v361_v61 = vpop.permute.xlu0 %360 }
 0x29c   :  { %v343_v60 = vpop.permute.xlu1 %342 }
 0x29d   :  { %9472 = vmatmul.mubr.msk.f32.vlgmr.msra.gmra.mrb[10].mxu1 %vm386_vm2, %v343_v60 }
 0x29e   :  { %9475 = vmatpush3.xpose.msk.msra.mxu1 %vm386_vm2, %v359_v58  ;;  %9476 = vmatprep.mubr.msk.f32.mxu1 %vm10418_vm1, %v10417_v16 }
 0x29f   :  { %9479 = vmatprep.subr.mxu1 %v10417_v16  ;;  %v363_v63 = vpop.permute.xlu0 %362 }
 0x2a0   :  { %v345_v62 = vpop.permute.xlu1 %344 }
 0x2a1   :  { %9477 = vmatmul.mubr.msk.f32.vlgmr.msra.gmra.mrb[12].mxu1 %vm386_vm2, %v345_v62 }
 0x2a2   :  { %9480 = vmatpush3.xpose.msk.msra.mxu1 %vm386_vm2, %v361_v61  ;;  %9481 = vmatprep.mubr.msk.f32.mxu1 %vm10418_vm1, %v10417_v16 }
 0x2a3   :  { %9484 = vmatprep.subr.mxu1 %v10417_v16  ;;  %v365_v2 = vpop.permute.xlu0 %364 }
 0x2a4   :  { %v347_v0 = vpop.permute.xlu1 %346 }
 0x2a5   :  { %9482 = vmatmul.mubr.msk.f32.vlgmr.msra.gmra.mrb[14].mxu1 %vm386_vm2, %v347_v0 }
 0x2a6   :  { %9485 = vmatpush3.xpose.msk.msra.mxu1 %vm386_vm2, %v363_v63  ;;  %9486 = vmatprep.mubr.msk.f32.mxu1 %vm10418_vm1, %v10417_v16 }
 0x2a7   :  { %9489 = vmatprep.subr.mxu1 %v10417_v16 }
 0x2a8   :  { %v349_v1 = vpop.permute.xlu1 %348 }
 0x2a9   :  { %9487 = vmatmul.mubr.msk.f32.vlgmr.msra.gmra.mrb[16].mxu1 %vm386_vm2, %v349_v1 }
 0x2aa   :  { %9490 = vmatpush3.xpose.msk.msra.mxu1 %vm386_vm2, %v365_v2  ;;  %9491 = vmatprep.mubr.msk.f32.mxu1 %vm10418_vm1, %v10417_v16 }
 0x2ab   :  { %9499 = vmatprep.subr.mxu1 %v10417_v16 }
 0x2ac   :  { %v351_v3 = vpop.permute.xlu1 %350 }
 0x2ad   :  { %9492 = vmatmul.mubr.msk.f32.vlgmr.msra.gmra.mrb[18].mxu1 %vm386_vm2, %v351_v3 }
 0x2ae   :  { %9500 = vmatpush3.msra.mxu1 %v10627_v54  ;;  %9501 = vmatprep.mubr.msk.f32.mxu1 %vm10418_vm1, %v10417_v16 }
 0x2af   :  { %9509 = vmatprep.subr.mxu1 %v10417_v16 }
 0x2f7   :  { %v457_v7 = vpop.f32.mrb[4].mxu1 }
 0x2f8   :  { %v979_v10 = vmul.f32 0.125, %v457_v7  ;;  %v9458_v11 = vpop.f32.mrb[5].mxu1 }
 0x2fa   :  { %v987_v12 = vadd.f32 %v979_v10, %v10667_v9 }
 0x2fb   :  { %v531_v13 = vpop.f32.mrb[6].mxu1 }
 0x2fc   :  { %v980_v14 = vmul.f32 0.125, %v531_v13  ;;  %v9463_v15 = vpop.f32.mrb[7].mxu1  ;;  %v996_v17 = vsel %vm995_vm4, %v987_v12, -inf }
 0x2fd   :  { %997 = vmax.xlane.f32.xlu0 %v996_v17 }
 0x2fe   :  { %v988_v18 = vadd.f32 %v980_v14, %v10667_v9 }
 0x300   :  { %v999_v19 = vsel %vm995_vm4, %v988_v18, -inf }
 0x301   :  { %1000 = vmax.xlane.f32.xlu1 %v999_v19 }
 0x36a   :  { %v605_v20 = vpop.f32.mrb[8].mxu1 }
 0x36b   :  { %v981_v21 = vmul.f32 0.125, %v605_v20  ;;  %v9468_v22 = vpop.f32.mrb[9].mxu1 }
 0x36d   :  { %v989_v23 = vadd.f32 %v981_v21, %v10667_v9 }
 0x36f   :  { %v1002_v24 = vsel %vm995_vm4, %v989_v23, -inf }
 0x370   :  { %v679_v25 = vpop.f32.mrb[10].mxu1  ;;  %1003 = vmax.xlane.f32.xlu0 %v1002_v24 }
 0x371   :  { %v982_v26 = vmul.f32 0.125, %v679_v25  ;;  %v9473_v27 = vpop.f32.mrb[11].mxu1 }
 0x373   :  { %v990_v28 = vadd.f32 %v982_v26, %v10667_v9 }
 0x374   :  { %v753_v29 = vpop.f32.mrb[12].mxu1 }
 0x375   :  { %v983_v30 = vmul.f32 0.125, %v753_v29  ;;  %v9478_v31 = vpop.f32.mrb[13].mxu1  ;;  %v1005_v32 = vsel %vm995_vm4, %v990_v28, -inf }
 0x376   :  { %1006 = vmax.xlane.f32.xlu0 %v1005_v32 }
 0x377   :  { %v991_v33 = vadd.f32 %v983_v30, %v10667_v9 }
 0x378   :  { %v827_v34 = vpop.f32.mrb[14].mxu1 }
 0x379   :  { %v984_v35 = vmul.f32 0.125, %v827_v34  ;;  %v9483_v36 = vpop.f32.mrb[15].mxu1  ;;  %v1008_v37 = vsel %vm995_vm4, %v991_v33, -inf }
 0x37a   :  { %1009 = vmax.xlane.f32.xlu0 %v1008_v37 }
 0x37b   :  { %v992_v38 = vadd.f32 %v984_v35, %v10667_v9 }
 0x37c   :  { %v901_v39 = vpop.f32.mrb[16].mxu1 }
 0x37d   :  { %v985_v40 = vmul.f32 0.125, %v901_v39  ;;  %v9488_v41 = vpop.f32.mrb[17].mxu1  ;;  %v1011_v42 = vsel %vm995_vm4, %v992_v38, -inf }
 0x37e   :  { %1012 = vmax.xlane.f32.xlu1 %v1011_v42 }
 0x37f   :  { %v993_v43 = vadd.f32 %v985_v40, %v10667_v9 }
 0x380   :  { %v975_v44 = vpop.f32.mrb[18].mxu1 }
 0x381   :  { %v986_v45 = vmul.f32 0.125, %v975_v44  ;;  %v9493_v46 = vpop.f32.mrb[19].mxu1  ;;  %v1014_v47 = vsel %vm995_vm4, %v993_v43, -inf }
 0x382   :  { %1015 = vmax.xlane.f32.xlu0 %v1014_v47 }
 0x383   :  { %v994_v48 = vadd.f32 %v986_v45, %v10667_v9 }
 0x385   :  { %v1017_v49 = vsel %vm995_vm4, %v994_v48, -inf }
 0x386   :  { %1018 = vmax.xlane.f32.xlu1 %v1017_v49 }
 0x38a   :  { %v998_v50 = vpop.xlane.xlu0 %997 }
 0x38b   :  { %v1020_v51 = vsub.f32 %v987_v12, %v998_v50 }
 0x38d   :  { %v1028_v53 = vmul.f32 1.442695, %v1020_v51 }
 0x38e   :  { %v1001_v55 = vpop.xlane.xlu1 %1000 }
 0x38f   :  { %10199 = vpow2.f32 %v1028_v53  ;;  %v1021_v56 = vsub.f32 %v988_v18, %v1001_v55 }
 0x391   :  { %v1030_v57 = vmul.f32 1.442695, %v1021_v56 }
 0x393   :  { %10201 = vpow2.f32 %v1030_v57 }
 0x397   :  { %370 = vrot.lane.b32.xlu1 %v10627_v54, %s11994_s20 }
 0x398   :  { %368 = vrot.lane.b32.xlu0 %v10622_v52, %s11994_s20 }
 0x399   :  { %v10200_v58 = vpop.eup %10199 }
 0x39a   :  { %v1044_v59 = vsel %vm995_vm4, %v10200_v58, 0.0 }
 0x39b   :  { %374 = vrot.lane.b32.xlu1 %v10622_v52, %s11992_s21 }
 0x39d   :  { %v10202_v60 = vpop.eup %10201 }
 0x39e   :  { %v1047_v61 = vsel %vm995_vm4, %v10202_v60, 0.0 }
 0x39f   :  { %376 = vrot.lane.b32.xlu1 %v10627_v54, %s11992_s21 }
 0x3b7   :  { %1045 = vadd.xlane.f32.xlu0 %v1044_v59 }
 0x3c3   :  { %1048 = vadd.xlane.f32.xlu1 %v1047_v61 }
 0x3fd   :  { %v1004_v62 = vpop.xlane.xlu0 %1003 }
 0x3fe   :  { %v1022_v63 = vsub.f32 %v989_v23, %v1004_v62 }
 0x400   :  { %v1032_v0 = vmul.f32 1.442695, %v1022_v63 }
 0x402   :  { %10203 = vpow2.f32 %v1032_v0 }
 0x403   :  { %v1007_v1 = vpop.xlane.xlu0 %1006 }
 0x404   :  { %v1023_v2 = vsub.f32 %v990_v28, %v1007_v1  ;;  %v10027_v1 = vld [vmem:[%s11968_s6] sm:$0xff]  }
 0x406   :  { %v1034_v3 = vmul.f32 1.442695, %v1023_v2 }
 0x407   :  { %v1010_v4 = vpop.xlane.xlu0 %1009 }
 0x408   :  { %10205 = vpow2.f32 %v1034_v3  ;;  %v1024_v6 = vsub.f32 %v991_v33, %v1010_v4  ;;  %v10028_v4 = vld [vmem:[%s11968_s6 + $0x8] sm:$0xff]  }
 0x40a   :  { %v1036_v7 = vmul.f32 1.442695, %v1024_v6 }
 0x40b   :  { %v1013_v8 = vpop.xlane.xlu1 %1012 }
 0x40c   :  { %v10204_v10 = vpop.eup %10203  ;;  %10207 = vpow2.f32 %v1036_v7  ;;  %v1025_v11 = vsub.f32 %v992_v38, %v1013_v8 }
 0x40d   :  { %v1050_v12 = vsel %vm995_vm4, %v10204_v10, 0.0 }
 0x40e   :  { %v1038_v13 = vmul.f32 1.442695, %v1025_v11  ;;  %1051 = vadd.xlane.f32.xlu0 %v1050_v12 }
 0x40f   :  { %v1016_v14 = vpop.xlane.xlu0 %1015 }
 0x410   :  { %10209 = vpow2.f32 %v1038_v13  ;;  %v1026_v15 = vsub.f32 %v993_v43, %v1016_v14  ;;  %v10030_v13 = vld [vmem:[%s11968_s6 + $0x18] sm:$0xff]  }
 0x412   :  { %v10206_v17 = vpop.eup %10205  ;;  %v1040_v18 = vmul.f32 1.442695, %v1026_v15 }
 0x413   :  { %v1019_v19 = vpop.xlane.xlu1 %1018  ;;  %v1053_v20 = vsel %vm995_vm4, %v10206_v17, 0.0  ;;  %v369_v31 = vpop.permute.xlu0 %368 }
 0x414   :  { %10211 = vpow2.f32 %v1040_v18  ;;  %v1027_v21 = vsub.f32 %v994_v48, %v1019_v19  ;;  %1054 = vadd.xlane.f32.xlu1 %v1053_v20 }
 0x416   :  { %v10208_v22 = vpop.eup %10207  ;;  %v1042_v23 = vmul.f32 1.442695, %v1027_v21 }
 0x417   :  { %v1056_v24 = vsel %vm995_vm4, %v10208_v22, 0.0  ;;  %v371_v32 = vpop.permute.xlu1 %370 }
 0x418   :  { %10213 = vpow2.f32 %v1042_v23  ;;  %1057 = vadd.xlane.f32.xlu0 %v1056_v24 }
 0x41a   :  { %v10698_v25 = vpop.eup %10209 }
 0x41b   :  { %v1059_v26 = vsel %vm995_vm4, %v10698_v25, 0.0  ;;  %v375_v34 = vpop.permute.xlu1 %374 }
 0x41c   :  { %1060 = vadd.xlane.f32.xlu1 %v1059_v26 }
 0x41e   :  { %v10702_v27 = vpop.eup %10211 }
 0x41f   :  { %v1062_v28 = vsel %vm995_vm4, %v10702_v27, 0.0  ;;  %v377_v35 = vpop.permute.xlu1 %376 }
 0x420   :  { %1063 = vadd.xlane.f32.xlu0 %v1062_v28 }
 0x422   :  { %v10706_v29 = vpop.eup %10213 }
 0x423   :  { %v1065_v30 = vsel %vm995_vm4, %v10706_v29, 0.0 }
 0x424   :  { %1066 = vadd.xlane.f32.xlu1 %v1065_v30 }
 0x435   :  { %382 = vrot.lane.b32.xlu1 %v10627_v54, %s11990_s2 }
 0x436   :  { %380 = vrot.lane.b32.xlu0 %v10622_v52, %s11990_s2 }
 0x444   :  { %v1046_v33 = vpop.xlane.xlu0 %1045 }
 0x445   :  { %10215 = vrcp.f32 %v1046_v33 }
 0x44f   :  { %v10216_v36 = vpop.eup %10215 }
 0x450   :  { %v1049_v37 = vpop.xlane.xlu1 %1048  ;;  %v1069_v38 = vmul.f32 %v10216_v36, %v10200_v58 }
 0x451   :  { %10217 = vrcp.f32 %v1049_v37 }
 0x452   :  { %9497 = vmatmul.mubr.msk.f32.vlgmr.msra.gmra.mrb[8].mxu0 %vm995_vm4, %v1069_v38 }
 0x453   :  { %9505 = vmatpush3.msra.mxu0 %v369_v31  ;;  %9506 = vmatprep.mubr.msk.f32.mxu0 %vm10418_vm1, %v10417_v16 }
 0x454   :  { %9514 = vmatprep.subr.mxu0 %v10417_v16 }
 0x45b   :  { %v10218_v54 = vpop.eup %10217 }
 0x45c   :  { %v1071_v52 = vmul.f32 %v10218_v54, %v10202_v60  ;;  %v8613_v54 = vld [vmem:[%s11969_s7] ss:$0 sm:$0xff] }
 0x45e   :  { %9502 = vmatmul.mubr.msk.f32.vlgmr.msra.gmra.mrb[20].mxu1 %vm995_vm4, %v1071_v52 }
 0x45f   :  { %9510 = vmatpush3.msra.mxu1 %v371_v32  ;;  %9511 = vmatprep.mubr.msk.f32.mxu1 %vm10418_vm1, %v10417_v16 }
 0x460   :  { %9519 = vmatprep.subr.mxu1 %v10417_v16 }
 0x49b   :  { %v1052_v39 = vpop.xlane.xlu0 %1051 }
 0x49c   :  { %10219 = vrcp.f32 %v1052_v39 }
 0x4a1   :  { %v1055_v40 = vpop.xlane.xlu1 %1054 }
 0x4a2   :  { %10221 = vrcp.f32 %v1055_v40 }
 0x4a5   :  { %v1058_v41 = vpop.xlane.xlu0 %1057 }
 0x4a6   :  { %v10220_v42 = vpop.eup %10219  ;;  %10223 = vrcp.f32 %v1058_v41 }
 0x4a7   :  { %v1073_v43 = vmul.f32 %v10220_v42, %v10204_v10  ;;  %v10029_v10 = vld [vmem:[%s11968_s6 + $0x10] sm:$0xff]   ;;  %v10391_v42 = vld [vmem:[%s12003_s29] sm:$0xff] }
 0x4a9   :  { %v1061_v44 = vpop.xlane.xlu1 %1060  ;;  %9507 = vmatmul.mubr.msk.f32.vlgmr.msra.gmra.mrb[10].mxu0 %vm995_vm4, %v1073_v43 }
 0x4aa   :  { %10225 = vrcp.f32 %v1061_v44  ;;  %9515 = vmatpush3.msra.mxu0 %v375_v34  ;;  %9516 = vmatprep.mubr.msk.f32.mxu0 %vm10418_vm1, %v10417_v16 }
 0x4ab   :  { %9524 = vmatprep.subr.mxu0 %v10417_v16 }
 0x4ac   :  { %v10222_v45 = vpop.eup %10221 }
 0x4ad   :  { %v1064_v46 = vpop.xlane.xlu0 %1063  ;;  %v1075_v47 = vmul.f32 %v10222_v45, %v10206_v17 }
 0x4ae   :  { %10227 = vrcp.f32 %v1064_v46  ;;  %v10392_v46 = vld [vmem:[%s12003_s29 + $0x8] sm:$0xff] }
 0x4af   :  { %9512 = vmatmul.mubr.msk.f32.vlgmr.msra.gmra.mrb[22].mxu1 %vm995_vm4, %v1075_v47 }
 0x4b0   :  { %v10224_v48 = vpop.eup %10223  ;;  %9520 = vmatpush3.msra.mxu1 %v377_v35  ;;  %9521 = vmatprep.mubr.msk.f32.mxu1 %vm10418_vm1, %v10417_v16 }
 0x4b1   :  { %v381_v49 = vpop.permute.xlu0 %380  ;;  %v1067_v50 = vpop.xlane.xlu1 %1066  ;;  %v1077_v51 = vmul.f32 %v10224_v48, %v10208_v22  ;;  %9529 = vmatprep.subr.mxu1 %v10417_v16 }
 0x4b2   :  { %10229 = vrcp.f32 %v1067_v50 }
 0x4b3   :  { %9517 = vmatmul.mubr.msk.f32.vlgmr.msra.gmra.mrb[12].mxu0 %vm995_vm4, %v1077_v51 }
 0x4b4   :  { %v10226_v53 = vpop.eup %10225  ;;  %9525 = vmatpush3.msra.mxu0 %v381_v49  ;;  %9526 = vmatprep.mubr.msk.f32.mxu0 %vm10418_vm1, %v10417_v16 }
 0x4b5   :  { %v383_v55 = vpop.permute.xlu1 %382  ;;  %v1079_v56 = vmul.f32 %v10226_v53, %v10698_v25  ;;  %9534 = vmatprep.subr.bf16.mxu0 %v10417_v16 }
 0x4b7   :  { %9522 = vmatmul.mubr.msk.f32.vlgmr.msra.gmra.mrb[24].mxu1 %vm995_vm4, %v1079_v56 }
 0x4b8   :  { %v10228_v57 = vpop.eup %10227  ;;  %9530 = vmatpush3.msra.mxu1 %v383_v55  ;;  %9531 = vmatprep.mubr.msk.f32.mxu1 %vm10418_vm1, %v10417_v16 }
 0x4b9   :  { %v1081_v58 = vmul.f32 %v10228_v57, %v10702_v27 }
 0x4bb   :  { %9527 = vmatmul.mubr.msk.f32.vlgmr.msra.gmra.mrb[14].mxu0 %vm995_vm4, %v1081_v58 }
 0x4bc   :  { %v10230_v59 = vpop.eup %10229  ;;  %9542 = vmatprep.mubr.msk.bf16.mxu0 %vm10418_vm1, %v10417_v16  ;;  %9535 = vmatpush3.bf16.msra.mxu0 %v10027_v1  ;;  %v10034_v1 = vld [vmem:[%s11972_s10 + $0x10] ss:$8 sps:$4 sm:$0xff]  }
 0x4bd   :  { %v1083_v60 = vmul.f32 %v10230_v59, %v10706_v29  ;;  %9536 = vmatprep.subr.bf16.mxu0 %v10417_v16 }
 0x4bf   :  { %9532 = vmatmul.mubr.msk.f32.vlgmr.msra.gmra.mrb[26].mxu1 %vm995_vm4, %v1083_v60 }
 0x4c0   :  { %9537 = vmatpush3.bf16.msra.mxu0 %v10028_v4  ;;  %v10040_v4 = vld [vmem:[%s11972_s10 + $0x30] ss:$8 sps:$4 sm:$0xff]  }
 0x4c1   :  { %9538 = vmatprep.subr.bf16.mxu0 %v10417_v16 }
 0x4c4   :  { %9539 = vmatpush3.bf16.msra.mxu0 %v10029_v10 }
 0x4c5   :  { %9540 = vmatprep.subr.bf16.mxu0 %v10417_v16 }
 0x4c8   :  { %9541 = vmatpush3.bf16.msra.mxu0 %v10030_v13 }
 0x525   :  { %v1153_v61 = vpop.f32.mrb[8].mxu0 }
 0x526   :  { %v9498_v62 = vpop.f32.mrb[9].mxu0 }
 0x527   :  { %v10033_v62 = vld [vmem:[%s11972_s10 + $0x4] ss:$8 sps:$4 sm:$0xff]  }
 0x528   :  { %1894 = vmatprep.subr.bf16.mxu1 %v10033_v62 }
 0x531   :  { %v1226_v63 = vpop.f32.mrb[20].mxu1 }
 0x532   :  { %v9503_v0 = vpop.f32.mrb[21].mxu1 }
 0x533   :  { %v10036_v0 = vld [vmem:[%s11972_s10 + $0x14] ss:$8 sps:$4 sm:$0xff]  }
 0x57c   :  { %v1299_v2 = vpop.f32.mrb[10].mxu0 }
 0x57d   :  { %v9508_v3 = vpop.f32.mrb[11].mxu0 }
 0x57e   :  { %v10037_v3 = vld [vmem:[%s11972_s10 + $0x20] ss:$8 sps:$4 sm:$0xff]  }
 0x582   :  { %v1372_v6 = vpop.f32.mrb[22].mxu1 }
 0x583   :  { %v9955_v7 = vpack.i.bf16 %v1372_v6, %v1299_v2  ;;  %v9513_v8 = vpop.f32.mrb[23].mxu1  ;;  %v10039_v2 = vld [vmem:[%s11972_s10 + $0x24] ss:$8 sps:$4 sm:$0xff]   ;;  %v10042_v6 = vld [vmem:[%s11972_s10 + $0x34] ss:$8 sps:$4 sm:$0xff]  }
 0x585   :  { %9956 = vrot.lane.b32.xlu0 %v9955_v7, %s11988_s0  ;;  %v10426_v7 = vmov 0   ;;  %s12012_s0 = sld [smem:[#allocation8_spill]] }
 0x586   :  { %v1445_v11 = vpop.f32.mrb[12].mxu0  ;;  %1926 = vmatprep.mubr.bf16.mxu1 %v10426_v7 }
 0x587   :  { %v9518_v12 = vpop.f32.mrb[13].mxu0 }
 0x58a   :  { %v1518_v14 = vpop.f32.mrb[24].mxu1 }
 0x58b   :  { %v9960_v15 = vpack.i.bf16 %v1518_v14, %v1445_v11  ;;  %v9523_v17 = vpop.f32.mrb[25].mxu1 }
 0x58d   :  { %9961 = vrot.lane.b32.xlu1 %v9960_v15, %s11986_s23 }
 0x58e   :  { %v1591_v18 = vpop.f32.mrb[14].mxu0 }
 0x58f   :  { %v9528_v19 = vpop.f32.mrb[15].mxu0 }
 0x592   :  { %v1664_v20 = vpop.f32.mrb[26].mxu1 }
 0x593   :  { %v9965_v21 = vpack.i.bf16 %v1664_v20, %v1591_v18  ;;  %v9533_v22 = vpop.f32.mrb[27].mxu1  ;;  %v8619_v18 = vld [vmem:[%s11970_s8] ss:$0 sm:$0xff] }
 0x594   :  { %v8620_v22 = vld [vmem:[%s11971_s9] ss:$0 sm:$0xff] }
 0x595   :  { %9966 = vrot.lane.b32.xlu0 %v9965_v21, %s11984_s25 }
 0x5f7   :  { %v9957_v23 = vpop.permute.xlu0 %9956 }
 0x5f8   :  { %v9959_v25 = vunpack.i.h.bf16 %v9957_v23  ;;  %v9958_v26 = vunpack.i.l.bf16 %v9957_v23 }
 0x5fa   :  { %v1693_v30 = vsel %vm386_vm2, %v1226_v63, %v9959_v25  ;;  %v1692_v31 = vsel %vm386_vm2, %v1153_v61, %v9958_v26  ;;  %v10031_v63 = vld [vmem:[%s11972_s10] ss:$8 sps:$4 sm:$0xff]  }
 0x5fb   :  { %1895 = vmatpush1.bf16.msra.mxu1 %v10031_v63 }
 0x5fc   :  { %1896 = vmatprep.subr.bf16.mxu1 %v10036_v0 }
 0x5ff   :  { %v9962_v24 = vpop.permute.xlu1 %9961  ;;  %1897 = vmatpush1.bf16.msra.mxu1 %v10034_v1 }
 0x600   :  { %v9964_v27 = vunpack.i.h.bf16 %v9962_v24  ;;  %v9963_v28 = vunpack.i.l.bf16 %v9962_v24  ;;  %1898 = vmatprep.subr.bf16.mxu1 %v10039_v2 }
 0x602   :  { %v1696_v34 = vsel %vm1694_vm5, %v1693_v30, %v9964_v27  ;;  %v1695_v35 = vsel %vm1694_vm5, %v1692_v31, %v9963_v28  ;;  %v10043_v27 = vld [vmem:[%s11974_s12 + $0x40] sm:$0xff]   ;;  %v10046_v30 = vld [vmem:[%s11974_s12 + $0x8] sm:$0xff]   ;;  %v10047_v31 = vld [vmem:[%s11974_s12 + $0x50] sm:$0xff]  }
 0x603   :  { %1899 = vmatpush1.bf16.msra.mxu1 %v10037_v3  ;;  %v10044_v28 = vld [vmem:[%s11974_s12] sm:$0xff]   ;;  %9169 = vmatprep.subr.bf16.mxu0 %v10043_v27 }
 0x604   :  { %1900 = vmatprep.subr.bf16.mxu1 %v10042_v6 }
 0x607   :  { %v9967_v29 = vpop.permute.xlu0 %9966  ;;  %1901 = vmatpush1.bf16.msra.mxu1 %v10040_v4 }
 0x608   :  { %v9969_v32 = vunpack.i.h.bf16 %v9967_v29  ;;  %v9968_v33 = vunpack.i.l.bf16 %v9967_v29  ;;  %9546 = vmatprep.subr.bf16.mxu1 %v10417_v16  ;;  %v10045_v29 = vld [vmem:[%s11974_s12 + $0x48] sm:$0xff]  }
 0x60a   :  { %v1699_v36 = vsel %vm1697_vm6, %v1696_v34, %v9969_v32  ;;  %v1698_v37 = vsel %vm1697_vm6, %v1695_v35, %v9968_v33  ;;  %v10048_v32 = vld [vmem:[%s11974_s12 + $0x10] sm:$0xff]   ;;  %v10049_v33 = vld [vmem:[%s11974_s12 + $0x58] sm:$0xff]   ;;  %v10051_v35 = vld [vmem:[%s11974_s12 + $0x60] sm:$0xff]  }
 0x60b   :  { %v1700_v38 = vpack.c.bf16 %v1699_v36, %v1698_v37  ;;  %v10050_v34 = vld [vmem:[%s11974_s12 + $0x18] sm:$0xff]   ;;  %v10052_v36 = vld [vmem:[%s11974_s12 + $0x20] sm:$0xff]   ;;  %v10053_v37 = vld [vmem:[%s11974_s12 + $0x68] sm:$0xff]  }
 0x60d   :  { %9543 = vmatmul.mubr.msk.bf16.vlgmr.msra.gmra.mrb[16].mxu0 %vm71_vm0, %v1700_v38  ;;  %v10054_v38 = vld [vmem:[%s11974_s12 + $0x28] sm:$0xff]  }
 0x60e   :  { %9170 = vmatpush3.bf16.msra.mxu0 %v10044_v28 }
 0x60f   :  { %9171 = vmatprep.subr.bf16.mxu0 %v10045_v29 }
 0x612   :  { %9172 = vmatpush3.bf16.msra.mxu0 %v10046_v30 }
 0x613   :  { %9173 = vmatprep.subr.bf16.mxu0 %v10047_v31 }
 0x616   :  { %9174 = vmatpush3.bf16.msra.mxu0 %v10048_v32 }
 0x617   :  { %9175 = vmatprep.subr.bf16.mxu0 %v10049_v33 }
 0x61a   :  { %9176 = vmatpush3.bf16.msra.mxu0 %v10050_v34 }
 0x61b   :  { %9177 = vmatprep.subr.bf16.mxu0 %v10051_v35 }
 0x61e   :  { %9178 = vmatpush3.bf16.msra.mxu0 %v10052_v36  ;;  %v8630_v36 = vld [vmem:[%s11975_s13] ss:$0 sm:$0xff] }
 0x61f   :  { %9179 = vmatprep.subr.bf16.mxu0 %v10053_v37 }
 0x622   :  { %9180 = vmatpush3.bf16.msra.mxu0 %v10054_v38 }
 0x6e0   :  { %v1777_v52 = vpop.f32.mrb[16].mxu0 }
 0x6e1   :  { %v1778_v39 = vadd.f32 %v8613_v54, %v1777_v52  ;;  %v9544_v40 = vpop.f32.mrb[17].mxu0  ;;  %v10056_v52 = vld [vmem:[%s11974_s12 + $0x30] sm:$0xff]  }
 0x6e2   :  { %v1780_v41 = vpop.f32.mrb[18].mxu0  ;;  %v10058_v40 = vld [vmem:[%s11974_s12 + $0x38] sm:$0xff]  }
 0x6e3   :  { %v10775_v43 = vadd.f32 %v10391_v42, %v1778_v39  ;;  %v1781_v44 = vadd.f32 %v8613_v54, %v1780_v41  ;;  %v9545_v45 = vpop.f32.mrb[19].mxu0  ;;  %v10055_v54 = vld [vmem:[%s11974_s12 + $0x70] sm:$0xff]   ;;  %v10057_v39 = vld [vmem:[%s11974_s12 + $0x78] sm:$0xff]   ;;  %v10875_v41 = vsub.s32 0, %v10664_v5  ;;  %v1839_v42 = vld [vmem:[%s11973_s11] sm:$0x3] }
 0x6e4   :  { %9181 = vmatprep.subr.bf16.mxu0 %v10055_v54 }
 0x6e5   :  { %v10780_v47 = vadd.f32 %v10392_v46, %v1781_v44  ;;  %v1788_v48 = vsel %vm71_vm0, %v10775_v43, 0.0  ;;  %9182 = vmatpush3.bf16.msra.mxu0 %v10056_v52  ;;  %v10881_v44 = vsub.s32 1, %v10664_v5  ;;  %v1844_v45 = vrot.slane %v1839_v42, %v10875_v41 }
 0x6e6   :  { %1789 = vadd.xlane.f32.xlu1 %v1788_v48  ;;  %9183 = vmatprep.subr.bf16.mxu0 %v10057_v39 }
 0x6e7   :  { %v1791_v49 = vsel %vm71_vm0, %v10780_v47, 0.0  ;;  %v1848_v46 = vrot.slane %v1839_v42, %v10881_v44 }
 0x6e8   :  { %1792 = vadd.xlane.f32.xlu0 %v1791_v49 }
 0x6e9   :  { %9184 = vmatpush3.bf16.msra.mxu0 %v10058_v40 }
 0x6ea   :  { %9570 = vmatprep.subr.bf16.mxu0 %v10417_v16 }
 0x773   :  { %v1790_v50 = vpop.xlane.xlu1 %1789 }
 0x774   :  { %v1794_v51 = vmul.f32 0.015625, %v1790_v50 }
 0x775   :  { %v1793_v53 = vpop.xlane.xlu0 %1792 }
 0x776   :  { %v1796_v55 = vsub.f32 %v10775_v43, %v1794_v51  ;;  %v1795_v56 = vmul.f32 0.015625, %v1793_v53 }
 0x778   :  { %v1797_v57 = vsub.f32 %v10780_v47, %v1795_v56  ;;  %v1798_v58 = vmul.f32 %v1796_v55, %v1796_v55 }
 0x77a   :  { %v1800_v59 = vsel %vm71_vm0, %v1798_v58, 0.0  ;;  %v1799_v60 = vmul.f32 %v1797_v57, %v1797_v57 }
 0x77b   :  { %1801 = vadd.xlane.f32.xlu0 %v1800_v59 }
 0x77c   :  { %v1803_v61 = vsel %vm71_vm0, %v1799_v60, 0.0 }
 0x77f   :  { %1804 = vadd.xlane.f32.xlu0 %v1803_v61 }
 0x808   :  { %v1802_v8 = vpop.xlane.xlu0 %1801 }
 0x809   :  { %v1806_v10 = vmul.f32 0.015625, %v1802_v8 }
 0x80b   :  { %v1808_v11 = vadd.f32 1e-05, %v1806_v10 }
 0x80c   :  { %v1805_v12 = vpop.xlane.xlu0 %1804 }
 0x80d   :  { %10231 = vrsqrt.f32 %v1808_v11  ;;  %v1807_v13 = vmul.f32 0.015625, %v1805_v12 }
 0x80f   :  { %v1809_v14 = vadd.f32 1e-05, %v1807_v13 }
 0x811   :  { %10233 = vrsqrt.f32 %v1809_v14 }
 0x817   :  { %v10232_v15 = vpop.eup %10231 }
 0x818   :  { %v1812_v17 = vmul.f32 %v10232_v15, %v1796_v55 }
 0x81a   :  { %v1820_v20 = vmul.f32 %v8619_v18, %v1812_v17 }
 0x81b   :  { %v10234_v19 = vpop.eup %10233 }
 0x81c   :  { %v1813_v21 = vmul.f32 %v10234_v19, %v1797_v57  ;;  %v1828_v24 = vadd.f32 %v8620_v22, %v1820_v20 }
 0x81e   :  { %v1821_v23 = vmul.f32 %v8619_v18, %v1813_v21 }
 0x820   :  { %v1829_v25 = vadd.f32 %v8620_v22, %v1821_v23 }
 0x822   :  { %v1830_v26 = vpack.c.bf16 %v1829_v25, %v1828_v24 }
 0x824   :  { %8629 = vmatmul.mubr.msk.bf16.vlgmr.msra.gmra.mrb[28].mxu1 %vm71_vm0, %v1830_v26 }
 0x825   :  { %9554 = vmatprep.mubr.msk.bf16.mxu1 %vm10418_vm1, %v10417_v16 }
 0x8f7   :  { %v1928_v48 = vpop.f32.mrb[28].mxu1 }
 0x8f8   :  { %v1929_v49 = vadd.f32 %v1928_v48, %v1844_v45  ;;  %v1930_v50 = vpop.f32.mrb[29].mxu1 }
 0x8f9   :  { %v1931_v51 = vadd.f32 %v1930_v50, %v1848_v46  ;;  %v1932_v53 = vpop.f32.mrb[30].mxu1 }
 0x8fa   :  { %v1941_v55 = vmul.f32 0.044715, %v1929_v49  ;;  %v1933_v56 = vadd.f32 %v1932_v53, %v1844_v45  ;;  %v1934_v57 = vpop.f32.mrb[31].mxu1  ;;  %v1937_v23 = vmul.f32 0.5, %v1929_v49 }
 0x8fb   :  { %v1942_v58 = vmul.f32 0.044715, %v1931_v51  ;;  %v1935_v59 = vadd.f32 %v1934_v57, %v1848_v46  ;;  %v1938_v26 = vmul.f32 0.5, %v1931_v51 }
 0x8fc   :  { %v1945_v60 = vmul.f32 %v1941_v55, %v1929_v49  ;;  %v1943_v61 = vmul.f32 0.044715, %v1933_v56  ;;  %v1939_v24 = vmul.f32 0.5, %v1933_v56 }
 0x8fd   :  { %v1946_v62 = vmul.f32 %v1942_v58, %v1931_v51  ;;  %v1944_v63 = vmul.f32 0.044715, %v1935_v59  ;;  %v1940_v27 = vmul.f32 0.5, %v1935_v59 }
 0x8fe   :  { %v1949_v5 = vmul.f32 %v1945_v60, %v1929_v49  ;;  %v1947_v0 = vmul.f32 %v1943_v61, %v1933_v56  ;;  %v10059_v60 = vld [vmem:[%s11965_s3 + $0x20] sm:$0xff]  }
 0x8ff   :  { %v1950_v1 = vmul.f32 %v1946_v62, %v1931_v51  ;;  %v1948_v2 = vmul.f32 %v1944_v63, %v1935_v59  ;;  %v10060_v61 = vld [vmem:[%s11967_s5 + $0x20] sm:$0xff]   ;;  %9547 = vmatpush3.bf16.msra.mxu1 %v10059_v60  ;;  %v10061_v62 = vld [vmem:[%s11965_s3 + $0x28] sm:$0xff]  }
 0x900   :  { %v1953_v3 = vadd.f32 %v1949_v5, %v1929_v49  ;;  %v1951_v4 = vmul.f32 %v1947_v0, %v1933_v56  ;;  %9548 = vmatprep.subr.bf16.mxu1 %v10417_v16  ;;  %v10062_v63 = vld [vmem:[%s11967_s5 + $0x28] sm:$0xff]   ;;  %v10063_v5 = vld [vmem:[%s11965_s3 + $0x30] sm:$0xff]  }
 0x901   :  { %v1952_v6 = vmul.f32 %v1948_v2, %v1935_v59  ;;  %v1954_v8 = vadd.f32 %v1950_v1, %v1931_v51  ;;  %v10064_v0 = vld [vmem:[%s11967_s5 + $0x30] sm:$0xff]   ;;  %v10065_v1 = vld [vmem:[%s11965_s3 + $0x38] sm:$0xff]  }
 0x902   :  { %v1957_v10 = vmul.f32 0.7978846, %v1953_v3  ;;  %v1955_v11 = vadd.f32 %v1951_v4, %v1933_v56  ;;  %v10066_v2 = vld [vmem:[%s11967_s5 + $0x38] sm:$0xff]  }
 0x903   :  { %v1956_v12 = vadd.f32 %v1952_v6, %v1935_v59  ;;  %v1958_v13 = vmul.f32 0.7978846, %v1954_v8  ;;  %9549 = vmatpush3.bf16.msra.mxu1 %v10061_v62 }
 0x904   :  { %10235 = vtanh.f32 %v1957_v10  ;;  %v1959_v14 = vmul.f32 0.7978846, %v1955_v11  ;;  %9550 = vmatprep.subr.bf16.mxu1 %v10417_v16 }
 0x905   :  { %v1960_v15 = vmul.f32 0.7978846, %v1956_v12  ;;  %10237 = vtanh.f32 %v1958_v13  ;;  %v8649_v13 = vld [vmem:[%s12004_s22 + $0x1] ss:$0 sm:$0xff] }
 0x906   :  { %10239 = vtanh.f32 %v1959_v14 }
 0x907   :  { %10241 = vtanh.f32 %v1960_v15  ;;  %9551 = vmatpush3.bf16.msra.mxu1 %v10063_v5 }
 0x908   :  { %9552 = vmatprep.subr.bf16.mxu1 %v10417_v16 }
 0x90b   :  { %9553 = vmatpush3.bf16.msra.mxu1 %v10065_v1 }
 0x90c   :  { %9558 = vmatprep.subr.bf16.mxu1 %v10417_v16 }
 0x90e   :  { %v10236_v17 = vpop.eup %10235 }
 0x90f   :  { %v10238_v18 = vpop.eup %10237  ;;  %v1965_v19 = vadd.f32 1.0, %v10236_v17 }
 0x910   :  { %v10240_v20 = vpop.eup %10239  ;;  %v1966_v21 = vadd.f32 1.0, %v10238_v18 }
 0x911   :  { %v10242_v22 = vpop.eup %10241  ;;  %v1967_v25 = vadd.f32 1.0, %v10240_v20  ;;  %v1969_v29 = vmul.f32 %v1965_v19, %v1937_v23  ;;  %v8650_v19 = vld [vmem:[%s12005_s24 + $0x1] ss:$0 sm:$0xff] }
 0x912   :  { %v1968_v28 = vadd.f32 1.0, %v10242_v22  ;;  %v1970_v31 = vmul.f32 %v1966_v21, %v1938_v26  ;;  %v10067_v23 = vld [vmem:[%s11966_s4 + $0x20] sm:$0xff]   ;;  %v10069_v26 = vld [vmem:[%s11966_s4 + $0x30] sm:$0xff]  }
 0x913   :  { %v1971_v30 = vmul.f32 %v1967_v25, %v1939_v24  ;;  %v10068_v25 = vld [vmem:[%s11966_s4 + $0x28] sm:$0xff]  }
 0x914   :  { %v1972_v32 = vmul.f32 %v1968_v28, %v1940_v27  ;;  %v10070_v27 = vld [vmem:[%s11966_s4 + $0x38] sm:$0xff]  }
 0x915   :  { %v1973_v33 = vpack.c.bf16 %v1971_v30, %v1969_v29 }
 0x916   :  { %v1974_v34 = vpack.c.bf16 %v1972_v32, %v1970_v31 }
 0x918   :  { %2142 = vmatprep.mubr.bf16.mxu0 %v1974_v34 }
 0x919   :  { %2143 = vmatmul.mubr.bf16.vlgmr.msra.gmra.mrb[20].mxu0 %v1973_v33 }
 0x91a   :  { %9578 = vmatprep.mubr.msk.bf16.mxu0 %vm10418_vm1, %v10417_v16  ;;  %9571 = vmatpush3.bf16.msra.mxu0 %v10060_v61 }
 0x91b   :  { %9572 = vmatprep.subr.bf16.mxu0 %v10417_v16 }
 0x91e   :  { %9573 = vmatpush3.bf16.msra.mxu0 %v10062_v63 }
 0x91f   :  { %9574 = vmatprep.subr.bf16.mxu0 %v10417_v16 }
 0x922   :  { %9575 = vmatpush3.bf16.msra.mxu0 %v10064_v0 }
 0x923   :  { %9576 = vmatprep.subr.bf16.mxu0 %v10417_v16 }
 0x926   :  { %9577 = vmatpush3.bf16.msra.mxu0 %v10066_v2 }
 0x927   :  { %9602 = vmatprep.subr.mxu0 %v10417_v16 }
 0x9ec   :  { %v9185_v35 = vpop.f32.mrb[20].mxu0 }
 0x9ed   :  { %v9186_v37 = vpop.f32.mrb[21].mxu0 }
 0x9ee   :  { %v9187_v38 = vadd.f32 %v9186_v37, %v9185_v35  ;;  %v9188_v54 = vpop.f32.mrb[22].mxu0 }
 0x9ef   :  { %v9189_v52 = vpop.f32.mrb[23].mxu0 }
 0x9f0   :  { %v2145_v39 = vadd.f32 %v9187_v38, %v8630_v36  ;;  %v9190_v40 = vadd.f32 %v9189_v52, %v9188_v54 }
 0x9f2   :  { %v10891_v42 = vadd.f32 %v2145_v39, %v10775_v43  ;;  %v2148_v45 = vadd.f32 %v9190_v40, %v8630_v36 }
 0x9f4   :  { %v10894_v46 = vadd.f32 %v2148_v45, %v10780_v47  ;;  %v2157_v48 = vsel %vm71_vm0, %v10891_v42, 0.0 }
 0x9f5   :  { %2158 = vadd.xlane.f32.xlu1 %v2157_v48 }
 0x9f6   :  { %v2160_v49 = vsel %vm71_vm0, %v10894_v46, 0.0 }
 0x9f7   :  { %2161 = vadd.xlane.f32.xlu0 %v2160_v49 }
 0xa82   :  { %v2159_v50 = vpop.xlane.xlu1 %2158 }
 0xa83   :  { %v2163_v51 = vmul.f32 0.015625, %v2159_v50 }
 0xa84   :  { %v2162_v53 = vpop.xlane.xlu0 %2161 }
 0xa85   :  { %v2165_v55 = vsub.f32 %v10891_v42, %v2163_v51  ;;  %v2164_v56 = vmul.f32 0.015625, %v2162_v53 }
 0xa87   :  { %v2166_v43 = vsub.f32 %v10894_v46, %v2164_v56  ;;  %v2167_v57 = vmul.f32 %v2165_v55, %v2165_v55 }
 0xa89   :  { %v2169_v47 = vsel %vm71_vm0, %v2167_v57, 0.0  ;;  %v2168_v58 = vmul.f32 %v2166_v43, %v2166_v43 }
 0xa8a   :  { %2170 = vadd.xlane.f32.xlu1 %v2169_v47 }
 0xa8b   :  { %v2172_v59 = vsel %vm71_vm0, %v2168_v58, 0.0 }
 0xa8c   :  { %2173 = vadd.xlane.f32.xlu0 %v2172_v59 }
 0xb17   :  { %v2171_v3 = vpop.xlane.xlu1 %2170 }
 0xb18   :  { %v2175_v4 = vmul.f32 0.015625, %v2171_v3 }
 0xb19   :  { %v2174_v6 = vpop.xlane.xlu0 %2173 }
 0xb1a   :  { %v2177_v8 = vadd.f32 1e-05, %v2175_v4  ;;  %v2176_v10 = vmul.f32 0.015625, %v2174_v6 }
 0xb1c   :  { %10243 = vrsqrt.f32 %v2177_v8  ;;  %v2178_v11 = vadd.f32 1e-05, %v2176_v10 }
 0xb1e   :  { %10245 = vrsqrt.f32 %v2178_v11 }
 0xb26   :  { %v10244_v12 = vpop.eup %10243 }
 0xb27   :  { %v2181_v14 = vmul.f32 %v10244_v12, %v2165_v55 }
 0xb28   :  { %v10246_v15 = vpop.eup %10245 }
 0xb29   :  { %v2189_v17 = vmul.f32 %v8649_v13, %v2181_v14  ;;  %v2182_v18 = vmul.f32 %v10246_v15, %v2166_v43 }
 0xb2b   :  { %v2190_v20 = vmul.f32 %v8649_v13, %v2182_v18  ;;  %v2197_v21 = vadd.f32 %v8650_v19, %v2189_v17 }
 0xb2d   :  { %v2198_v22 = vadd.f32 %v8650_v19, %v2190_v20 }
 0xb2f   :  { %v2199_v24 = vpack.c.bf16 %v2198_v22, %v2197_v21 }
 0xb31   :  { %9555 = vmatmul.mubr.msk.bf16.vlgmr.msra.gmra.mrb[32].mxu1 %vm71_vm0, %v2199_v24  ;;  %9579 = vmatmul.mubr.msk.bf16.vlgmr.msra.gmra.mrb[24].mxu0 %vm71_vm0, %v2199_v24 }
 0xb32   :  { %9559 = vmatpush3.bf16.msra.mxu1 %v10067_v23  ;;  %9566 = vmatprep.mubr.msk.bf16.mxu1 %vm10418_vm1, %v10417_v16 }
 0xb33   :  { %9560 = vmatprep.subr.bf16.mxu1 %v10417_v16  ;;  %9604 = vmatprep.mubr.msk.f32.mxu0 %vm10418_vm1, %v10417_v16 }
 0xb36   :  { %9561 = vmatpush3.bf16.msra.mxu1 %v10068_v25 }
 0xb37   :  { %9562 = vmatprep.subr.bf16.mxu1 %v10417_v16 }
 0xb3a   :  { %9563 = vmatpush3.bf16.msra.mxu1 %v10069_v26 }
 0xb3b   :  { %9564 = vmatprep.subr.bf16.mxu1 %v10417_v16 }
 0xb3e   :  { %9565 = vmatpush3.bf16.msra.mxu1 %v10070_v27 }
 0xb3f   :  { %9582 = vmatprep.subr.mxu1 %v10417_v16 }
 0xb41   :  { %9567 = vmatmul.mubr.msk.bf16.vlgmr.msra.gmra.mrb[36].mxu1 %vm71_vm0, %v2199_v24 }
 0xb42   :  { %9584 = vmatprep.mubr.msk.f32.mxu1 %vm10418_vm1, %v10417_v16 }
 0xc04   :  { %v2270_v28 = vpop.f32.mrb[32].mxu1  ;;  %v10967_v29 = vpop.f32.mrb[24].mxu0 }
 0xc05   :  { %v9580_v30 = vpop.f32.mrb[25].mxu0  ;;  %2427 = vrot.lane.b32.xlu0 %v2270_v28, %s11994_s20  ;;  %v9556_v31 = vpop.f32.mrb[33].mxu1 }
 0xc06   :  { %v2273_v32 = vpop.f32.mrb[34].mxu1  ;;  %v10970_v33 = vpop.f32.mrb[26].mxu0 }
 0xc07   :  { %v9581_v34 = vpop.f32.mrb[27].mxu0  ;;  %2429 = vrot.lane.b32.xlu1 %v2273_v32, %s11994_s20  ;;  %v9557_v35 = vpop.f32.mrb[35].mxu1 }
 0xc09   :  { %2433 = vrot.lane.b32.xlu0 %v2273_v32, %s11992_s21 }
 0xc14   :  { %v2344_v36 = vpop.f32.mrb[36].mxu1 }
 0xc15   :  { %2441 = vrot.lane.b32.xlu1 %v2344_v36, %s11994_s20  ;;  %v9568_v37 = vpop.f32.mrb[37].mxu1  ;;  %9583 = vmatpush3.xpose.msk.msra.mxu1 %vm386_vm2, %v2344_v36 }
 0xc16   :  { %v2347_v38 = vpop.f32.mrb[38].mxu1  ;;  %9587 = vmatprep.subr.mxu1 %v10417_v16 }
 0xc17   :  { %2447 = vrot.lane.b32.xlu0 %v2347_v38, %s11992_s21  ;;  %v9569_v54 = vpop.f32.mrb[39].mxu1 }
 0xc18   :  { %9585 = vmatmul.mubr.msk.f32.vlgmr.msra.gmra.mrb[40].mxu1 %vm386_vm2, %v2270_v28 }
 0xc19   :  { %2445 = vrot.lane.b32.xlu1 %v2344_v36, %s11992_s21  ;;  %9588 = vmatpush3.xpose.msk.msra.mxu1 %vm386_vm2, %v2347_v38 }
 0xc1a   :  { %9589 = vmatprep.mubr.msk.f32.mxu1 %vm10418_vm1, %v10417_v16  ;;  %9592 = vmatprep.subr.mxu1 %v10417_v16 }
 0xc1b   :  { %2451 = vrot.lane.b32.xlu0 %v2347_v38, %s11990_s2 }
 0xc1c   :  { %9590 = vmatmul.mubr.msk.f32.vlgmr.msra.gmra.mrb[42].mxu1 %vm386_vm2, %v2273_v32 }
 0xc1d   :  { %2443 = vrot.lane.b32.xlu1 %v2347_v38, %s11994_s20  ;;  %9594 = vmatprep.mubr.msk.f32.mxu1 %vm10418_vm1, %v10417_v16 }
 0xc1f   :  { %2437 = vrot.lane.b32.xlu0 %v2273_v32, %s11990_s2 }
 0xc21   :  { %2431 = vrot.lane.b32.xlu1 %v2270_v28, %s11992_s21 }
 0xc25   :  { %2449 = vrot.lane.b32.xlu1 %v2344_v36, %s11990_s2 }
 0xc29   :  { %2435 = vrot.lane.b32.xlu1 %v2270_v28, %s11990_s2 }
 0xc77   :  { %v2428_v39 = vpop.permute.xlu0 %2427 }
 0xc79   :  { %v2430_v52 = vpop.permute.xlu1 %2429 }
 0xc7b   :  { %v2434_v45 = vpop.permute.xlu0 %2433 }
 0xc87   :  { %v2442_v40 = vpop.permute.xlu1 %2441 }
 0xc88   :  { %9593 = vmatpush3.xpose.msk.msra.mxu1 %vm386_vm2, %v2442_v40 }
 0xc89   :  { %9597 = vmatprep.subr.mxu1 %v10417_v16  ;;  %v2448_v49 = vpop.permute.xlu0 %2447 }
 0xc8b   :  { %v2446_v48 = vpop.permute.xlu1 %2445  ;;  %9595 = vmatmul.mubr.msk.f32.vlgmr.msra.gmra.mrb[44].mxu1 %vm386_vm2, %v2428_v39 }
 0xc8c   :  { %9603 = vmatpush3.xpose.msk.msra.mxu0 %vm386_vm2, %v2446_v48  ;;  %9599 = vmatprep.mubr.msk.f32.mxu1 %vm10418_vm1, %v10417_v16 }
 0xc8d   :  { %9612 = vmatprep.subr.mxu0 %v10417_v16  ;;  %v2452_v53 = vpop.permute.xlu0 %2451 }
 0xc8f   :  { %v2444_v50 = vpop.permute.xlu1 %2443 }
 0xc90   :  { %9598 = vmatpush3.xpose.msk.msra.mxu1 %vm386_vm2, %v2444_v50 }
 0xc91   :  { %9607 = vmatprep.subr.mxu1 %v10417_v16  ;;  %v2438_v56 = vpop.permute.xlu0 %2437 }
 0xc93   :  { %v2432_v51 = vpop.permute.xlu1 %2431  ;;  %9600 = vmatmul.mubr.msk.f32.vlgmr.msra.gmra.mrb[46].mxu1 %vm386_vm2, %v2430_v52 }
 0xc94   :  { %9605 = vmatmul.mubr.msk.f32.vlgmr.msra.gmra.mrb[28].mxu0 %vm386_vm2, %v2432_v51  ;;  %9608 = vmatpush3.xpose.msk.msra.mxu1 %vm386_vm2, %v2448_v49 }
 0xc95   :  { %9609 = vmatprep.mubr.msk.f32.mxu1 %vm10418_vm1, %v10417_v16  ;;  %9617 = vmatprep.subr.mxu1 %v10417_v16 }
 0xc96   :  { %9614 = vmatprep.mubr.msk.f32.mxu0 %vm10418_vm1, %v10417_v16 }
 0xc97   :  { %v2450_v55 = vpop.permute.xlu1 %2449  ;;  %9610 = vmatmul.mubr.msk.f32.vlgmr.msra.gmra.mrb[48].mxu1 %vm386_vm2, %v2434_v45 }
 0xc98   :  { %9613 = vmatpush3.xpose.msk.msra.mxu0 %vm386_vm2, %v2450_v55  ;;  %9618 = vmatpush3.xpose.msk.msra.mxu1 %vm386_vm2, %v2452_v53 }
 0xc99   :  { %9619 = vmatprep.mubr.msk.f32.mxu1 %vm10418_vm1, %v10417_v16  ;;  %9622 = vmatprep.subr.mxu0 %v10417_v16 }
 0xc9a   :  { %9627 = vmatprep.subr.mxu1 %v10417_v16 }
 0xc9b   :  { %v2436_v43 = vpop.permute.xlu1 %2435  ;;  %9620 = vmatmul.mubr.msk.f32.vlgmr.msra.gmra.mrb[50].mxu1 %vm386_vm2, %v2438_v56 }
 0xc9c   :  { %9615 = vmatmul.mubr.msk.f32.vlgmr.msra.gmra.mrb[30].mxu0 %vm386_vm2, %v2436_v43  ;;  %9628 = vmatpush3.msra.mxu1 %v10970_v33 }
 0xc9d   :  { %9623 = vmatpush3.msra.mxu0 %v10967_v29  ;;  %9629 = vmatprep.mubr.msk.f32.mxu1 %vm10418_vm1, %v10417_v16 }
 0xc9e   :  { %9637 = vmatprep.subr.mxu1 %v10417_v16  ;;  %9624 = vmatprep.mubr.msk.f32.mxu0 %vm10418_vm1, %v10417_v16 }
 0xc9f   :  { %9632 = vmatprep.subr.mxu0 %v10417_v16 }
 0xceb   :  { %v2543_v57 = vpop.f32.mrb[40].mxu1 }
 0xcec   :  { %v3065_v47 = vmul.f32 0.125, %v2543_v57  ;;  %v9586_v58 = vpop.f32.mrb[41].mxu1 }
 0xcee   :  { %v3073_v59 = vadd.f32 %v3065_v47, %v10667_v9 }
 0xcef   :  { %v2617_v60 = vpop.f32.mrb[42].mxu1 }
 0xcf0   :  { %v3066_v61 = vmul.f32 0.125, %v2617_v60  ;;  %v9591_v62 = vpop.f32.mrb[43].mxu1  ;;  %v3081_v63 = vsel %vm995_vm4, %v3073_v59, -inf }
 0xcf1   :  { %3082 = vmax.xlane.f32.xlu1 %v3081_v63 }
 0xcf2   :  { %v3074_v5 = vadd.f32 %v3066_v61, %v10667_v9 }
 0xcf4   :  { %v3084_v0 = vsel %vm995_vm4, %v3074_v5, -inf }
 0xcf5   :  { %3085 = vmax.xlane.f32.xlu0 %v3084_v0 }
 0xd5e   :  { %v2691_v1 = vpop.f32.mrb[44].mxu1 }
 0xd5f   :  { %v3067_v2 = vmul.f32 0.125, %v2691_v1  ;;  %v9596_v3 = vpop.f32.mrb[45].mxu1 }
 0xd61   :  { %v3075_v4 = vadd.f32 %v3067_v2, %v10667_v9 }
 0xd63   :  { %v3087_v6 = vsel %vm995_vm4, %v3075_v4, -inf }
 0xd64   :  { %3088 = vmax.xlane.f32.xlu0 %v3087_v6 }
 0xd66   :  { %v2765_v8 = vpop.f32.mrb[46].mxu1 }
 0xd67   :  { %v3068_v10 = vmul.f32 0.125, %v2765_v8  ;;  %v9601_v11 = vpop.f32.mrb[47].mxu1  ;;  %v2839_v12 = vpop.f32.mrb[28].mxu0 }
 0xd68   :  { %v3069_v13 = vmul.f32 0.125, %v2839_v12  ;;  %v9606_v14 = vpop.f32.mrb[29].mxu0 }
 0xd69   :  { %v3076_v15 = vadd.f32 %v3068_v10, %v10667_v9 }
 0xd6a   :  { %v2913_v17 = vpop.f32.mrb[48].mxu1  ;;  %v3077_v18 = vadd.f32 %v3069_v13, %v10667_v9 }
 0xd6b   :  { %v3070_v19 = vmul.f32 0.125, %v2913_v17  ;;  %v9611_v20 = vpop.f32.mrb[49].mxu1  ;;  %v3090_v21 = vsel %vm995_vm4, %v3076_v15, -inf }
 0xd6c   :  { %3091 = vmax.xlane.f32.xlu0 %v3090_v21  ;;  %v3093_v22 = vsel %vm995_vm4, %v3077_v18, -inf }
 0xd6d   :  { %3094 = vmax.xlane.f32.xlu1 %v3093_v22  ;;  %v3078_v23 = vadd.f32 %v3070_v19, %v10667_v9 }
 0xd6e   :  { %v3061_v24 = vpop.f32.mrb[50].mxu1 }
 0xd6f   :  { %v3072_v25 = vmul.f32 0.125, %v3061_v24  ;;  %v2987_v26 = vpop.f32.mrb[30].mxu0  ;;  %v9621_v27 = vpop.f32.mrb[51].mxu1  ;;  %v3096_v28 = vsel %vm995_vm4, %v3078_v23, -inf }
 0xd70   :  { %v3071_v30 = vmul.f32 0.125, %v2987_v26  ;;  %v9616_v31 = vpop.f32.mrb[31].mxu0  ;;  %3097 = vmax.xlane.f32.xlu0 %v3096_v28 }
 0xd71   :  { %v3080_v32 = vadd.f32 %v3072_v25, %v10667_v9 }
 0xd72   :  { %v3079_v34 = vadd.f32 %v3071_v30, %v10667_v9 }
 0xd73   :  { %v3102_v35 = vsel %vm995_vm4, %v3080_v32, -inf }
 0xd74   :  { %3103 = vmax.xlane.f32.xlu0 %v3102_v35  ;;  %v3099_v36 = vsel %vm995_vm4, %v3079_v34, -inf }
 0xd75   :  { %3100 = vmax.xlane.f32.xlu1 %v3099_v36 }
 0xd7e   :  { %v3083_v52 = vpop.xlane.xlu1 %3082 }
 0xd7f   :  { %v3105_v39 = vsub.f32 %v3073_v59, %v3083_v52 }
 0xd81   :  { %v3113_v40 = vmul.f32 1.442695, %v3105_v39 }
 0xd82   :  { %v3086_v37 = vpop.xlane.xlu0 %3085 }
 0xd83   :  { %v3106_v38 = vsub.f32 %v3074_v5, %v3086_v37 }
 0xd85   :  { %v3115_v54 = vmul.f32 1.442695, %v3106_v38 }
 0xd86   :  { %2455 = vrot.lane.b32.xlu1 %v10967_v29, %s11994_s20 }
 0xd87   :  { %10247 = vpow2.f32 %v3115_v54 }
 0xd88   :  { %10249 = vpow2.f32 %v3113_v40 }
 0xd8a   :  { %2461 = vrot.lane.b32.xlu1 %v10967_v29, %s11992_s21  ;;  %2457 = vrot.lane.b32.xlu0 %v10970_v33, %s11994_s20  ;;  %s12011_s20 = smov 80  }
 0xd8e   :  { %2463 = vrot.lane.b32.xlu1 %v10970_v33, %s11992_s21 }
 0xd91   :  { %v10248_v45 = vpop.eup %10247 }
 0xd92   :  { %v3132_v48 = vsel %vm995_vm4, %v10248_v45, 0.0  ;;  %v10250_v49 = vpop.eup %10249 }
 0xd93   :  { %v3129_v50 = vsel %vm995_vm4, %v10250_v49, 0.0 }
 0xda9   :  { %3133 = vadd.xlane.f32.xlu0 %v3132_v48 }
 0xdb2   :  { %3130 = vadd.xlane.f32.xlu1 %v3129_v50 }
 0xdf1   :  { %v3089_v51 = vpop.xlane.xlu0 %3088 }
 0xdf2   :  { %v3107_v53 = vsub.f32 %v3075_v4, %v3089_v51 }
 0xdf4   :  { %v3117_v55 = vmul.f32 1.442695, %v3107_v53 }
 0xdf6   :  { %10251 = vpow2.f32 %v3117_v55 }
 0xdf9   :  { %v3092_v56 = vpop.xlane.xlu0 %3091 }
 0xdfa   :  { %v3108_v43 = vsub.f32 %v3076_v15, %v3092_v56  ;;  %v3095_v57 = vpop.xlane.xlu1 %3094  ;;  %v10071_v56 = vld [vmem:[%s11968_s6 + $0x20] sm:$0xff]  }
 0xdfb   :  { %v3109_v47 = vsub.f32 %v3077_v18, %v3095_v57 }
 0xdfc   :  { %v3119_v58 = vmul.f32 1.442695, %v3108_v43 }
 0xdfd   :  { %v3121_v59 = vmul.f32 1.442695, %v3109_v47  ;;  %v3098_v60 = vpop.xlane.xlu0 %3097 }
 0xdfe   :  { %10253 = vpow2.f32 %v3119_v58  ;;  %v3110_v61 = vsub.f32 %v3078_v23, %v3098_v60  ;;  %v10072_v60 = vld [vmem:[%s11968_s6 + $0x28] sm:$0xff]  }
 0xdff   :  { %10255 = vpow2.f32 %v3121_v59 }
 0xe00   :  { %v10252_v62 = vpop.eup %10251  ;;  %v3123_v63 = vmul.f32 1.442695, %v3110_v61 }
 0xe01   :  { %v3104_v5 = vpop.xlane.xlu0 %3103  ;;  %v3135_v0 = vsel %vm995_vm4, %v10252_v62, 0.0 }
 0xe02   :  { %10257 = vpow2.f32 %v3123_v63  ;;  %v3112_v1 = vsub.f32 %v3080_v32, %v3104_v5  ;;  %v3101_v2 = vpop.xlane.xlu1 %3100  ;;  %3136 = vadd.xlane.f32.xlu1 %v3135_v0  ;;  %v10074_v5 = vld [vmem:[%s11968_s6 + $0x38] sm:$0xff]  }
 0xe03   :  { %v3111_v3 = vsub.f32 %v3079_v34, %v3101_v2 }
 0xe04   :  { %v3127_v4 = vmul.f32 1.442695, %v3112_v1 }
 0xe05   :  { %v3125_v6 = vmul.f32 1.442695, %v3111_v3  ;;  %v2458_v21 = vpop.permute.xlu0 %2457 }
 0xe06   :  { %10259 = vpow2.f32 %v3127_v4  ;;  %v2456_v20 = vpop.permute.xlu1 %2455 }
 0xe07   :  { %10261 = vpow2.f32 %v3125_v6 }
 0xe08   :  { %v10254_v8 = vpop.eup %10253 }
 0xe09   :  { %v10256_v10 = vpop.eup %10255  ;;  %v3138_v11 = vsel %vm995_vm4, %v10254_v8, 0.0 }
 0xe0a   :  { %3139 = vadd.xlane.f32.xlu0 %v3138_v11  ;;  %v3141_v12 = vsel %vm995_vm4, %v10256_v10, 0.0  ;;  %v2462_v22 = vpop.permute.xlu1 %2461 }
 0xe0b   :  { %3142 = vadd.xlane.f32.xlu1 %v3141_v12 }
 0xe0c   :  { %v10258_v13 = vpop.eup %10257 }
 0xe0d   :  { %v3144_v14 = vsel %vm995_vm4, %v10258_v13, 0.0 }
 0xe0e   :  { %3145 = vadd.xlane.f32.xlu0 %v3144_v14  ;;  %v2464_v24 = vpop.permute.xlu1 %2463 }
 0xe10   :  { %v11057_v15 = vpop.eup %10259 }
 0xe11   :  { %v11059_v17 = vpop.eup %10261  ;;  %v3150_v18 = vsel %vm995_vm4, %v11057_v15, 0.0 }
 0xe12   :  { %3151 = vadd.xlane.f32.xlu0 %v3150_v18  ;;  %v3147_v19 = vsel %vm995_vm4, %v11059_v17, 0.0 }
 0xe13   :  { %3148 = vadd.xlane.f32.xlu1 %v3147_v19 }
 0xe24   :  { %2467 = vrot.lane.b32.xlu1 %v10967_v29, %s11990_s2 }
 0xe28   :  { %2469 = vrot.lane.b32.xlu0 %v10970_v33, %s11990_s2 }
 0xe36   :  { %v3134_v23 = vpop.xlane.xlu0 %3133 }
 0xe37   :  { %10263 = vrcp.f32 %v3134_v23 }
 0xe3f   :  { %v3131_v25 = vpop.xlane.xlu1 %3130 }
 0xe40   :  { %10265 = vrcp.f32 %v3131_v25 }
 0xe41   :  { %v10264_v26 = vpop.eup %10263 }
 0xe42   :  { %v3156_v27 = vmul.f32 %v10264_v26, %v10248_v45 }
 0xe44   :  { %9630 = vmatmul.mubr.msk.f32.vlgmr.msra.gmra.mrb[52].mxu1 %vm995_vm4, %v3156_v27 }
 0xe45   :  { %9638 = vmatpush3.msra.mxu1 %v2458_v21  ;;  %9639 = vmatprep.mubr.msk.f32.mxu1 %vm10418_vm1, %v10417_v16 }
 0xe46   :  { %9647 = vmatprep.subr.mxu1 %v10417_v16 }
 0xe4a   :  { %v10266_v29 = vpop.eup %10265 }
 0xe4b   :  { %v3154_v33 = vmul.f32 %v10266_v29, %v10250_v49 }
 0xe4d   :  { %9625 = vmatmul.mubr.msk.f32.vlgmr.msra.gmra.mrb[32].mxu0 %vm995_vm4, %v3154_v33 }
 0xe4e   :  { %9633 = vmatpush3.msra.mxu0 %v2456_v20  ;;  %9634 = vmatprep.mubr.msk.f32.mxu0 %vm10418_vm1, %v10417_v16 }
 0xe4f   :  { %9642 = vmatprep.subr.mxu0 %v10417_v16 }
 0xe8f   :  { %v3137_v28 = vpop.xlane.xlu1 %3136 }
 0xe90   :  { %10267 = vrcp.f32 %v3137_v28 }
 0xe97   :  { %v3140_v30 = vpop.xlane.xlu0 %3139 }
 0xe98   :  { %10269 = vrcp.f32 %v3140_v30  ;;  %v3143_v31 = vpop.xlane.xlu1 %3142 }
 0xe99   :  { %10271 = vrcp.f32 %v3143_v31  ;;  %v8723_v31 = vld [vmem:[%s11969_s7 + $0x1] ss:$0 sm:$0xff] }
 0xe9a   :  { %v10268_v32 = vpop.eup %10267 }
 0xe9b   :  { %v3146_v34 = vpop.xlane.xlu0 %3145  ;;  %v3158_v35 = vmul.f32 %v10268_v32, %v10252_v62  ;;  %v10073_v62 = vld [vmem:[%s11968_s6 + $0x30] sm:$0xff]  }
 0xe9c   :  { %10273 = vrcp.f32 %v3146_v34 }
 0xe9d   :  { %9635 = vmatmul.mubr.msk.f32.vlgmr.msra.gmra.mrb[34].mxu0 %vm995_vm4, %v3158_v35 }
 0xe9e   :  { %9643 = vmatpush3.msra.mxu0 %v2462_v22  ;;  %9644 = vmatprep.mubr.msk.f32.mxu0 %vm10418_vm1, %v10417_v16 }
 0xe9f   :  { %v3152_v36 = vpop.xlane.xlu0 %3151  ;;  %9652 = vmatprep.subr.mxu0 %v10417_v16 }
 0xea0   :  { %10275 = vrcp.f32 %v3152_v36  ;;  %v3149_v37 = vpop.xlane.xlu1 %3148 }
 0xea1   :  { %10277 = vrcp.f32 %v3149_v37 }
 0xea2   :  { %v10270_v38 = vpop.eup %10269 }
 0xea3   :  { %v10272_v54 = vpop.eup %10271  ;;  %v3160_v52 = vmul.f32 %v10270_v38, %v10254_v8  ;;  %v2470_v49 = vpop.permute.xlu0 %2469 }
 0xea4   :  { %v2468_v39 = vpop.permute.xlu1 %2467  ;;  %v3162_v40 = vmul.f32 %v10272_v54, %v10256_v10 }
 0xea5   :  { %9640 = vmatmul.mubr.msk.f32.vlgmr.msra.gmra.mrb[54].mxu1 %vm995_vm4, %v3160_v52 }
 0xea6   :  { %v10274_v45 = vpop.eup %10273  ;;  %9648 = vmatpush3.msra.mxu1 %v2464_v24  ;;  %9645 = vmatmul.mubr.msk.f32.vlgmr.msra.gmra.mrb[36].mxu0 %vm995_vm4, %v3162_v40 }
 0xea7   :  { %9653 = vmatpush3.msra.mxu0 %v2468_v39  ;;  %9649 = vmatprep.mubr.msk.f32.mxu1 %vm10418_vm1, %v10417_v16  ;;  %v3164_v48 = vmul.f32 %v10274_v45, %v10258_v13 }
 0xea8   :  { %9657 = vmatprep.subr.mxu1 %v10417_v16  ;;  %9654 = vmatprep.mubr.msk.f32.mxu0 %vm10418_vm1, %v10417_v16 }
 0xea9   :  { %9650 = vmatmul.mubr.msk.f32.vlgmr.msra.gmra.mrb[56].mxu1 %vm995_vm4, %v3164_v48  ;;  %9662 = vmatprep.subr.bf16.mxu0 %v10417_v16 }
 0xeaa   :  { %v10276_v50 = vpop.eup %10275  ;;  %9658 = vmatpush3.msra.mxu1 %v2470_v49  ;;  %9659 = vmatprep.mubr.msk.f32.mxu1 %vm10418_vm1, %v10417_v16 }
 0xeab   :  { %v10278_v51 = vpop.eup %10277  ;;  %v3168_v53 = vmul.f32 %v10276_v50, %v11057_v15 }
 0xeac   :  { %v3166_v55 = vmul.f32 %v10278_v51, %v11059_v17 }
 0xead   :  { %9660 = vmatmul.mubr.msk.f32.vlgmr.msra.gmra.mrb[58].mxu1 %vm995_vm4, %v3168_v53 }
 0xeae   :  { %9655 = vmatmul.mubr.msk.f32.vlgmr.msra.gmra.mrb[38].mxu0 %vm995_vm4, %v3166_v55  ;;  %4015 = vmatprep.mubr.bf16.mxu1 %v10426_v7 }
 0xeaf   :  { %9670 = vmatprep.mubr.msk.bf16.mxu0 %vm10418_vm1, %v10417_v16  ;;  %9663 = vmatpush3.bf16.msra.mxu0 %v10071_v56 }
 0xeb0   :  { %9664 = vmatprep.subr.bf16.mxu0 %v10417_v16 }
 0xeb3   :  { %9665 = vmatpush3.bf16.msra.mxu0 %v10072_v60  ;;  %v10081_v60 = vld [vmem:[%s11972_s10 + $0x60] ss:$8 sps:$4 sm:$0xff]  }
 0xeb4   :  { %9666 = vmatprep.subr.bf16.mxu0 %v10417_v16 }
 0xeb7   :  { %9667 = vmatpush3.bf16.msra.mxu0 %v10073_v62  ;;  %v10086_v62 = vld [vmem:[%s11972_s10 + $0x74] ss:$8 sps:$4 sm:$0xff]  }
 0xeb8   :  { %9668 = vmatprep.subr.bf16.mxu0 %v10417_v16 }
 0xebb   :  { %9669 = vmatpush3.bf16.msra.mxu0 %v10074_v5 }
 0xf17   :  { %v3311_v43 = vpop.f32.mrb[52].mxu1 }
 0xf18   :  { %v9631_v57 = vpop.f32.mrb[53].mxu1 }
 0xf19   :  { %v10075_v57 = vld [vmem:[%s11972_s10 + $0x40] ss:$8 sps:$4 sm:$0xff]  }
 0xf20   :  { %v3238_v47 = vpop.f32.mrb[32].mxu0 }
 0xf21   :  { %v9626_v58 = vpop.f32.mrb[33].mxu0 }
 0xf22   :  { %v10078_v58 = vld [vmem:[%s11972_s10 + $0x50] ss:$8 sps:$4 sm:$0xff]  }
 0xf70   :  { %v3384_v59 = vpop.f32.mrb[34].mxu0 }
 0xf71   :  { %v9636_v61 = vpop.f32.mrb[35].mxu0 }
 0xf72   :  { %v10084_v61 = vld [vmem:[%s11972_s10 + $0x70] ss:$8 sps:$4 sm:$0xff]  }
 0xf78   :  { %v3457_v63 = vpop.f32.mrb[54].mxu1 }
 0xf79   :  { %v9970_v0 = vpack.i.bf16 %v3457_v63, %v3384_v59  ;;  %v9641_v1 = vpop.f32.mrb[55].mxu1  ;;  %v3530_v2 = vpop.f32.mrb[36].mxu0  ;;  %v10083_v59 = vld [vmem:[%s11972_s10 + $0x64] ss:$8 sps:$4 sm:$0xff]  }
 0xf7a   :  { %v9646_v3 = vpop.f32.mrb[37].mxu0 }
 0xf7b   :  { %9971 = vrot.lane.b32.xlu1 %v9970_v0, %s12006_s27 }
 0xf7c   :  { %v3603_v4 = vpop.f32.mrb[56].mxu1 }
 0xf7d   :  { %v9975_v6 = vpack.i.bf16 %v3603_v4, %v3530_v2  ;;  %v9651_v8 = vpop.f32.mrb[57].mxu1 }
 0xf7e   :  { %v8731_v8 = vld [vmem:[%s11970_s8 + $0x1] ss:$0 sm:$0xff] }
 0xf7f   :  { %9976 = vrot.lane.b32.xlu0 %v9975_v6, %s12007_s28 }
 0xf80   :  { %v3749_v10 = vpop.f32.mrb[58].mxu1 }
 0xf81   :  { %v3676_v11 = vpop.f32.mrb[38].mxu0  ;;  %v9661_v12 = vpop.f32.mrb[59].mxu1 }
 0xf82   :  { %v9980_v13 = vpack.i.bf16 %v3749_v10, %v3676_v11  ;;  %v9656_v14 = vpop.f32.mrb[39].mxu0 }
 0xf84   :  { %9981 = vrot.lane.b32.xlu1 %v9980_v13, %s12008_s30  ;;  %v8732_v13 = vld [vmem:[%s11971_s9 + $0x1] ss:$0 sm:$0xff] }
 0xfed   :  { %v9972_v15 = vpop.permute.xlu1 %9971 }
 0xfee   :  { %v9974_v18 = vunpack.i.h.bf16 %v9972_v15  ;;  %v9973_v19 = vunpack.i.l.bf16 %v9972_v15 }
 0xff0   :  { %v3778_v23 = vsel %vm386_vm2, %v3311_v43, %v9974_v18  ;;  %v3777_v24 = vsel %vm386_vm2, %v3238_v47, %v9973_v19  ;;  %v10077_v43 = vld [vmem:[%s11972_s10 + $0x44] ss:$8 sps:$4 sm:$0xff]   ;;  %v10080_v47 = vld [vmem:[%s11972_s10 + $0x54] ss:$8 sps:$4 sm:$0xff]  }
 0xff1   :  { %v9977_v17 = vpop.permute.xlu0 %9976  ;;  %3983 = vmatprep.subr.bf16.mxu1 %v10077_v43  ;;  %v10087_v19 = vld [vmem:[%s11974_s12 + $0xc0] sm:$0xff]  }
 0xff2   :  { %v9979_v20 = vunpack.i.h.bf16 %v9977_v17  ;;  %v9978_v21 = vunpack.i.l.bf16 %v9977_v17  ;;  %3984 = vmatpush1.bf16.msra.mxu1 %v10075_v57  ;;  %9243 = vmatprep.subr.bf16.mxu0 %v10087_v19 }
 0xff3   :  { %3985 = vmatprep.subr.bf16.mxu1 %v10080_v47 }
 0xff4   :  { %v3780_v27 = vsel %vm1694_vm5, %v3778_v23, %v9979_v20  ;;  %v3779_v29 = vsel %vm1694_vm5, %v3777_v24, %v9978_v21  ;;  %v10088_v20 = vld [vmem:[%s11974_s12 + $0x80] sm:$0xff]   ;;  %v10089_v21 = vld [vmem:[%s11974_s12 + $0xc8] sm:$0xff]   ;;  %v10091_v23 = vld [vmem:[%s11974_s12 + $0xd0] sm:$0xff]  }
 0xff5   :  { %v10092_v24 = vld [vmem:[%s11974_s12 + $0x90] sm:$0xff]  }
 0xff6   :  { %v9982_v22 = vpop.permute.xlu1 %9981  ;;  %3986 = vmatpush1.bf16.msra.mxu1 %v10078_v58 }
 0xff7   :  { %v9984_v25 = vunpack.i.h.bf16 %v9982_v22  ;;  %v9983_v26 = vunpack.i.l.bf16 %v9982_v22  ;;  %3987 = vmatprep.subr.bf16.mxu1 %v10083_v59  ;;  %v10090_v22 = vld [vmem:[%s11974_s12 + $0x88] sm:$0xff]  }
 0xff9   :  { %v3782_v33 = vsel %vm1697_vm6, %v3780_v27, %v9984_v25  ;;  %v3781_v28 = vsel %vm1697_vm6, %v3779_v29, %v9983_v26  ;;  %v10093_v25 = vld [vmem:[%s11974_s12 + $0xd8] sm:$0xff]   ;;  %v10095_v27 = vld [vmem:[%s11974_s12 + $0xe0] sm:$0xff]  }
 0xffa   :  { %v3783_v30 = vpack.c.bf16 %v3782_v33, %v3781_v28  ;;  %3988 = vmatpush1.bf16.msra.mxu1 %v10081_v60  ;;  %v10094_v26 = vld [vmem:[%s11974_s12 + $0x98] sm:$0xff]   ;;  %v10096_v29 = vld [vmem:[%s11974_s12 + $0xa0] sm:$0xff]   ;;  %v10097_v33 = vld [vmem:[%s11974_s12 + $0xe8] sm:$0xff]  }
 0xffb   :  { %3989 = vmatprep.subr.bf16.mxu1 %v10086_v62  ;;  %v10098_v28 = vld [vmem:[%s11974_s12 + $0xa8] sm:$0xff]  }
 0xffc   :  { %9671 = vmatmul.mubr.msk.bf16.vlgmr.msra.gmra.mrb[40].mxu0 %vm71_vm0, %v3783_v30  ;;  %v10099_v30 = vld [vmem:[%s11974_s12 + $0xf0] sm:$0xff]  }
 0xffd   :  { %9244 = vmatpush3.bf16.msra.mxu0 %v10088_v20 }
 0xffe   :  { %3990 = vmatpush1.bf16.msra.mxu1 %v10084_v61  ;;  %9245 = vmatprep.subr.bf16.mxu0 %v10089_v21 }
 0xfff   :  { %9674 = vmatprep.subr.bf16.mxu1 %v10417_v16 }
0x1001   :  { %9246 = vmatpush3.bf16.msra.mxu0 %v10090_v22 }
0x1002   :  { %9247 = vmatprep.subr.bf16.mxu0 %v10091_v23 }
0x1005   :  { %9248 = vmatpush3.bf16.msra.mxu0 %v10092_v24 }
0x1006   :  { %9249 = vmatprep.subr.bf16.mxu0 %v10093_v25 }
0x1009   :  { %9250 = vmatpush3.bf16.msra.mxu0 %v10094_v26 }
0x100a   :  { %9251 = vmatprep.subr.bf16.mxu0 %v10095_v27 }
0x100d   :  { %9252 = vmatpush3.bf16.msra.mxu0 %v10096_v29  ;;  %v8784_v29 = vld [vmem:[%s11975_s13 + $0x1] ss:$0 sm:$0xff] }
0x100e   :  { %9253 = vmatprep.subr.bf16.mxu0 %v10097_v33 }
0x1011   :  { %9254 = vmatpush3.bf16.msra.mxu0 %v10098_v28 }
0x1012   :  { %9255 = vmatprep.subr.bf16.mxu0 %v10099_v30 }
0x10cf   :  { %v3862_v32 = vpop.f32.mrb[40].mxu0 }
0x10d0   :  { %v3863_v34 = vadd.f32 %v8723_v31, %v3862_v32  ;;  %v9672_v35 = vpop.f32.mrb[41].mxu0  ;;  %v10101_v32 = vld [vmem:[%s11974_s12 + $0xf8] sm:$0xff]  }
0x10d1   :  { %v3865_v36 = vpop.f32.mrb[42].mxu0  ;;  %v8741_v35 = vld [vmem:[%s11973_s11 + $0x2] sm:$0x3] }
0x10d2   :  { %v11128_v37 = vadd.f32 %v3863_v34, %v10891_v42  ;;  %v3866_v38 = vadd.f32 %v8723_v31, %v3865_v36  ;;  %v9673_v54 = vpop.f32.mrb[43].mxu0  ;;  %v10100_v31 = vld [vmem:[%s11974_s12 + $0xb0] sm:$0xff]   ;;  %v10102_v34 = vld [vmem:[%s11974_s12 + $0xb8] sm:$0xff]   ;;  %v3933_v36 = vrot.slane %v8741_v35, %v10875_v41 }
0x10d3   :  { %9256 = vmatpush3.bf16.msra.mxu0 %v10100_v31 }
0x10d4   :  { %v11131_v52 = vadd.f32 %v3866_v38, %v10894_v46  ;;  %v3875_v39 = vsel %vm71_vm0, %v11128_v37, 0.0  ;;  %9257 = vmatprep.subr.bf16.mxu0 %v10101_v32  ;;  %v3937_v38 = vrot.slane %v8741_v35, %v10881_v44 }
0x10d5   :  { %3876 = vadd.xlane.f32.xlu0 %v3875_v39 }
0x10d6   :  { %v3878_v40 = vsel %vm71_vm0, %v11131_v52, 0.0 }
0x10d7   :  { %3879 = vadd.xlane.f32.xlu1 %v3878_v40  ;;  %9258 = vmatpush3.bf16.msra.mxu0 %v10102_v34 }
0x10d8   :  { %9698 = vmatprep.subr.bf16.mxu0 %v10417_v16 }
0x1162   :  { %v3877_v45 = vpop.xlane.xlu0 %3876 }
0x1163   :  { %v3881_v48 = vmul.f32 0.015625, %v3877_v45 }
0x1164   :  { %v3880_v49 = vpop.xlane.xlu1 %3879 }
0x1165   :  { %v3883_v50 = vsub.f32 %v11128_v37, %v3881_v48  ;;  %v3882_v42 = vmul.f32 0.015625, %v3880_v49 }
0x1167   :  { %v3884_v51 = vsub.f32 %v11131_v52, %v3882_v42  ;;  %v3885_v53 = vmul.f32 %v3883_v50, %v3883_v50 }
0x1169   :  { %v3887_v46 = vsel %vm71_vm0, %v3885_v53, 0.0  ;;  %v3886_v55 = vmul.f32 %v3884_v51, %v3884_v51 }
0x116a   :  { %3888 = vadd.xlane.f32.xlu0 %v3887_v46 }
0x116b   :  { %v3890_v56 = vsel %vm71_vm0, %v3886_v55, 0.0 }
0x116e   :  { %3891 = vadd.xlane.f32.xlu0 %v3890_v56 }
0x11f7   :  { %v3889_v63 = vpop.xlane.xlu0 %3888 }
0x11f8   :  { %v3893_v5 = vmul.f32 0.015625, %v3889_v63 }
0x11fa   :  { %v3895_v0 = vadd.f32 1e-05, %v3893_v5 }
0x11fb   :  { %v3892_v1 = vpop.xlane.xlu0 %3891 }
0x11fc   :  { %10279 = vrsqrt.f32 %v3895_v0  ;;  %v3894_v2 = vmul.f32 0.015625, %v3892_v1 }
0x11fe   :  { %v3896_v3 = vadd.f32 1e-05, %v3894_v2 }
0x1200   :  { %10281 = vrsqrt.f32 %v3896_v3 }
0x1206   :  { %v10280_v4 = vpop.eup %10279 }
0x1207   :  { %v3899_v6 = vmul.f32 %v10280_v4, %v3883_v50 }
0x1209   :  { %v3907_v11 = vmul.f32 %v8731_v8, %v3899_v6 }
0x120a   :  { %v10282_v10 = vpop.eup %10281 }
0x120b   :  { %v3900_v12 = vmul.f32 %v10282_v10, %v3884_v51  ;;  %v3915_v15 = vadd.f32 %v8732_v13, %v3907_v11 }
0x120d   :  { %v3908_v14 = vmul.f32 %v8731_v8, %v3900_v12 }
0x120f   :  { %v3916_v17 = vadd.f32 %v8732_v13, %v3908_v14 }
0x1211   :  { %v3917_v18 = vpack.c.bf16 %v3916_v17, %v3915_v15 }
0x1213   :  { %8750 = vmatmul.mubr.msk.bf16.vlgmr.msra.gmra.mrb[60].mxu1 %vm71_vm0, %v3917_v18 }
0x1214   :  { %9682 = vmatprep.mubr.msk.bf16.mxu1 %vm10418_vm1, %v10417_v16 }
0x12e6   :  { %v4017_v54 = vpop.f32.mrb[60].mxu1 }
0x12e7   :  { %v4018_v39 = vadd.f32 %v4017_v54, %v3933_v36  ;;  %v4019_v40 = vpop.f32.mrb[61].mxu1 }
0x12e8   :  { %v4020_v45 = vadd.f32 %v4019_v40, %v3937_v38  ;;  %v4021_v48 = vpop.f32.mrb[62].mxu1 }
0x12e9   :  { %v4030_v49 = vmul.f32 0.044715, %v4018_v39  ;;  %v4022_v50 = vadd.f32 %v4021_v48, %v3933_v36  ;;  %v4023_v42 = vpop.f32.mrb[63].mxu1  ;;  %v4026_v14 = vmul.f32 0.5, %v4018_v39 }
0x12ea   :  { %v4031_v51 = vmul.f32 0.044715, %v4020_v45  ;;  %v4024_v53 = vadd.f32 %v4023_v42, %v3937_v38  ;;  %v4027_v18 = vmul.f32 0.5, %v4020_v45 }
0x12eb   :  { %v4034_v46 = vmul.f32 %v4030_v49, %v4018_v39  ;;  %v4032_v55 = vmul.f32 0.044715, %v4022_v50  ;;  %v4028_v15 = vmul.f32 0.5, %v4022_v50 }
0x12ec   :  { %v4035_v56 = vmul.f32 %v4031_v51, %v4020_v45  ;;  %v4033_v43 = vmul.f32 0.044715, %v4024_v53  ;;  %v4029_v19 = vmul.f32 0.5, %v4024_v53 }
0x12ed   :  { %v4038_v57 = vmul.f32 %v4034_v46, %v4018_v39  ;;  %v4036_v47 = vmul.f32 %v4032_v55, %v4022_v50  ;;  %v10103_v46 = vld [vmem:[%s11965_s3 + $0x40] sm:$0xff]  }
0x12ee   :  { %v4039_v58 = vmul.f32 %v4035_v56, %v4020_v45  ;;  %v4037_v59 = vmul.f32 %v4033_v43, %v4024_v53  ;;  %v10104_v55 = vld [vmem:[%s11967_s5 + $0x40] sm:$0xff]   ;;  %9675 = vmatpush3.bf16.msra.mxu1 %v10103_v46  ;;  %v10105_v56 = vld [vmem:[%s11965_s3 + $0x48] sm:$0xff]  }
0x12ef   :  { %v4042_v60 = vadd.f32 %v4038_v57, %v4018_v39  ;;  %v4040_v61 = vmul.f32 %v4036_v47, %v4022_v50  ;;  %9676 = vmatprep.subr.bf16.mxu1 %v10417_v16  ;;  %v10106_v43 = vld [vmem:[%s11967_s5 + $0x48] sm:$0xff]   ;;  %v10107_v57 = vld [vmem:[%s11965_s3 + $0x50] sm:$0xff]  }
0x12f0   :  { %v4041_v62 = vmul.f32 %v4037_v59, %v4024_v53  ;;  %v4043_v63 = vadd.f32 %v4039_v58, %v4020_v45  ;;  %v10108_v47 = vld [vmem:[%s11967_s5 + $0x50] sm:$0xff]   ;;  %v10109_v58 = vld [vmem:[%s11965_s3 + $0x58] sm:$0xff]  }
0x12f1   :  { %v4046_v5 = vmul.f32 0.7978846, %v4042_v60  ;;  %v4044_v0 = vadd.f32 %v4040_v61, %v4022_v50  ;;  %v10110_v59 = vld [vmem:[%s11967_s5 + $0x58] sm:$0xff]  }
0x12f2   :  { %v4045_v1 = vadd.f32 %v4041_v62, %v4024_v53  ;;  %v4047_v2 = vmul.f32 0.7978846, %v4043_v63  ;;  %9677 = vmatpush3.bf16.msra.mxu1 %v10105_v56 }
0x12f3   :  { %10283 = vtanh.f32 %v4046_v5  ;;  %v4048_v3 = vmul.f32 0.7978846, %v4044_v0  ;;  %9678 = vmatprep.subr.bf16.mxu1 %v10417_v16 }
0x12f4   :  { %v4049_v4 = vmul.f32 0.7978846, %v4045_v1  ;;  %10285 = vtanh.f32 %v4047_v2  ;;  %v8803_v2 = vld [vmem:[%s12004_s22 + $0x2] ss:$0 sm:$0xff] }
0x12f5   :  { %10287 = vtanh.f32 %v4048_v3 }
0x12f6   :  { %10289 = vtanh.f32 %v4049_v4  ;;  %9679 = vmatpush3.bf16.msra.mxu1 %v10107_v57 }
0x12f7   :  { %9680 = vmatprep.subr.bf16.mxu1 %v10417_v16 }
0x12fa   :  { %9681 = vmatpush3.bf16.msra.mxu1 %v10109_v58 }
0x12fb   :  { %9686 = vmatprep.subr.bf16.mxu1 %v10417_v16 }
0x12fd   :  { %v10284_v6 = vpop.eup %10283 }
0x12fe   :  { %v10286_v8 = vpop.eup %10285  ;;  %v4054_v10 = vadd.f32 1.0, %v10284_v6 }
0x12ff   :  { %v10288_v11 = vpop.eup %10287  ;;  %v4055_v12 = vadd.f32 1.0, %v10286_v8 }
0x1300   :  { %v10290_v13 = vpop.eup %10289  ;;  %v4056_v17 = vadd.f32 1.0, %v10288_v11  ;;  %v4058_v21 = vmul.f32 %v4054_v10, %v4026_v14  ;;  %v8804_v10 = vld [vmem:[%s12005_s24 + $0x2] ss:$0 sm:$0xff] }
0x1301   :  { %v4057_v20 = vadd.f32 1.0, %v10290_v13  ;;  %v4059_v23 = vmul.f32 %v4055_v12, %v4027_v18  ;;  %v10111_v14 = vld [vmem:[%s11966_s4 + $0x40] sm:$0xff]   ;;  %v10113_v18 = vld [vmem:[%s11966_s4 + $0x50] sm:$0xff]  }
0x1302   :  { %v4060_v22 = vmul.f32 %v4056_v17, %v4028_v15  ;;  %v10112_v17 = vld [vmem:[%s11966_s4 + $0x48] sm:$0xff]  }
0x1303   :  { %v4061_v24 = vmul.f32 %v4057_v20, %v4029_v19  ;;  %v10114_v19 = vld [vmem:[%s11966_s4 + $0x58] sm:$0xff]  }
0x1304   :  { %v4062_v25 = vpack.c.bf16 %v4060_v22, %v4058_v21 }
0x1305   :  { %v4063_v26 = vpack.c.bf16 %v4061_v24, %v4059_v23 }
0x1307   :  { %4233 = vmatprep.mubr.bf16.mxu0 %v4063_v26 }
0x1308   :  { %4234 = vmatmul.mubr.bf16.vlgmr.msra.gmra.mrb[44].mxu0 %v4062_v25 }
0x1309   :  { %9706 = vmatprep.mubr.msk.bf16.mxu0 %vm10418_vm1, %v10417_v16  ;;  %9699 = vmatpush3.bf16.msra.mxu0 %v10104_v55 }
0x130a   :  { %9700 = vmatprep.subr.bf16.mxu0 %v10417_v16 }
0x130d   :  { %9701 = vmatpush3.bf16.msra.mxu0 %v10106_v43 }
0x130e   :  { %9702 = vmatprep.subr.bf16.mxu0 %v10417_v16 }
0x1311   :  { %9703 = vmatpush3.bf16.msra.mxu0 %v10108_v47 }
0x1312   :  { %9704 = vmatprep.subr.bf16.mxu0 %v10417_v16 }
0x1315   :  { %9705 = vmatpush3.bf16.msra.mxu0 %v10110_v59 }
0x1316   :  { %9730 = vmatprep.subr.mxu0 %v10417_v16 }
0x13db   :  { %v9259_v27 = vpop.f32.mrb[44].mxu0 }
0x13dc   :  { %v9260_v33 = vpop.f32.mrb[45].mxu0 }
0x13dd   :  { %v9261_v28 = vadd.f32 %v9260_v33, %v9259_v27  ;;  %v9262_v30 = vpop.f32.mrb[46].mxu0 }
0x13de   :  { %v9263_v31 = vpop.f32.mrb[47].mxu0 }
0x13df   :  { %v4236_v32 = vadd.f32 %v9261_v28, %v8784_v29  ;;  %v9264_v34 = vadd.f32 %v9263_v31, %v9262_v30 }
0x13e1   :  { %v11235_v35 = vadd.f32 %v4236_v32, %v11128_v37  ;;  %v4239_v36 = vadd.f32 %v9264_v34, %v8784_v29 }
0x13e3   :  { %v11238_v38 = vadd.f32 %v4239_v36, %v11131_v52  ;;  %v4248_v54 = vsel %vm71_vm0, %v11235_v35, 0.0 }
0x13e4   :  { %4249 = vadd.xlane.f32.xlu0 %v4248_v54 }
0x13e5   :  { %v4251_v39 = vsel %vm71_vm0, %v11238_v38, 0.0 }
0x13e6   :  { %4252 = vadd.xlane.f32.xlu1 %v4251_v39 }
0x1471   :  { %v4250_v40 = vpop.xlane.xlu0 %4249 }
0x1472   :  { %v4254_v45 = vmul.f32 0.015625, %v4250_v40 }
0x1473   :  { %v4253_v48 = vpop.xlane.xlu1 %4252 }
0x1474   :  { %v4256_v49 = vsub.f32 %v11235_v35, %v4254_v45  ;;  %v4255_v50 = vmul.f32 0.015625, %v4253_v48 }
0x1476   :  { %v4257_v37 = vsub.f32 %v11238_v38, %v4255_v50  ;;  %v4258_v42 = vmul.f32 %v4256_v49, %v4256_v49 }
0x1478   :  { %v4260_v52 = vsel %vm71_vm0, %v4258_v42, 0.0  ;;  %v4259_v51 = vmul.f32 %v4257_v37, %v4257_v37 }
0x1479   :  { %4261 = vadd.xlane.f32.xlu0 %v4260_v52 }
0x147a   :  { %v4263_v53 = vsel %vm71_vm0, %v4259_v51, 0.0 }
0x147b   :  { %4264 = vadd.xlane.f32.xlu1 %v4263_v53 }
0x1506   :  { %v4262_v60 = vpop.xlane.xlu0 %4261 }
0x1507   :  { %v4266_v61 = vmul.f32 0.015625, %v4262_v60 }
0x1508   :  { %v4265_v62 = vpop.xlane.xlu1 %4264 }
0x1509   :  { %v4268_v63 = vadd.f32 1e-05, %v4266_v61  ;;  %v4267_v5 = vmul.f32 0.015625, %v4265_v62 }
0x150b   :  { %10291 = vrsqrt.f32 %v4268_v63  ;;  %v4269_v0 = vadd.f32 1e-05, %v4267_v5 }
0x150d   :  { %10293 = vrsqrt.f32 %v4269_v0 }
0x1515   :  { %v10292_v1 = vpop.eup %10291 }
0x1516   :  { %v4272_v3 = vmul.f32 %v10292_v1, %v4256_v49 }
0x1517   :  { %v10294_v4 = vpop.eup %10293 }
0x1518   :  { %v4280_v6 = vmul.f32 %v8803_v2, %v4272_v3  ;;  %v4273_v8 = vmul.f32 %v10294_v4, %v4257_v37 }
0x151a   :  { %v4281_v11 = vmul.f32 %v8803_v2, %v4273_v8  ;;  %v4288_v12 = vadd.f32 %v8804_v10, %v4280_v6 }
0x151c   :  { %v4289_v13 = vadd.f32 %v8804_v10, %v4281_v11 }
0x151e   :  { %v4290_v15 = vpack.c.bf16 %v4289_v13, %v4288_v12 }
0x1520   :  { %9683 = vmatmul.mubr.msk.bf16.vlgmr.msra.gmra.mrb[64].mxu1 %vm71_vm0, %v4290_v15  ;;  %9707 = vmatmul.mubr.msk.bf16.vlgmr.msra.gmra.mrb[48].mxu0 %vm71_vm0, %v4290_v15 }
0x1521   :  { %9687 = vmatpush3.bf16.msra.mxu1 %v10111_v14  ;;  %9694 = vmatprep.mubr.msk.bf16.mxu1 %vm10418_vm1, %v10417_v16 }
0x1522   :  { %9688 = vmatprep.subr.bf16.mxu1 %v10417_v16  ;;  %9732 = vmatprep.mubr.msk.f32.mxu0 %vm10418_vm1, %v10417_v16 }
0x1525   :  { %9689 = vmatpush3.bf16.msra.mxu1 %v10112_v17 }
0x1526   :  { %9690 = vmatprep.subr.bf16.mxu1 %v10417_v16 }
0x1529   :  { %9691 = vmatpush3.bf16.msra.mxu1 %v10113_v18 }
0x152a   :  { %9692 = vmatprep.subr.bf16.mxu1 %v10417_v16 }
0x152d   :  { %9693 = vmatpush3.bf16.msra.mxu1 %v10114_v19 }
0x152e   :  { %9710 = vmatprep.subr.mxu1 %v10417_v16 }
0x1530   :  { %9695 = vmatmul.mubr.msk.bf16.vlgmr.msra.gmra.mrb[68].mxu1 %vm71_vm0, %v4290_v15 }
0x1531   :  { %9712 = vmatprep.mubr.msk.f32.mxu1 %vm10418_vm1, %v10417_v16 }
0x15f3   :  { %v4361_v20 = vpop.f32.mrb[64].mxu1  ;;  %v11311_v21 = vpop.f32.mrb[48].mxu0 }
0x15f4   :  { %v9708_v22 = vpop.f32.mrb[49].mxu0  ;;  %4518 = vrot.lane.b32.xlu1 %v4361_v20, %s12009_s26  ;;  %v9684_v23 = vpop.f32.mrb[65].mxu1 }
0x15f5   :  { %v4364_v24 = vpop.f32.mrb[66].mxu1  ;;  %v11314_v25 = vpop.f32.mrb[50].mxu0 }
0x15f6   :  { %v9685_v26 = vpop.f32.mrb[67].mxu1  ;;  %v9709_v27 = vpop.f32.mrb[51].mxu0 }
0x15f8   :  { %4520 = vrot.lane.b32.xlu1 %v4364_v24, %s12009_s26 }
0x15fc   :  { %4524 = vrot.lane.b32.xlu1 %v4364_v24, %s12010_s19 }
0x1603   :  { %v4435_v29 = vpop.f32.mrb[68].mxu1 }
0x1604   :  { %4532 = vrot.lane.b32.xlu0 %v4435_v29, %s12009_s26  ;;  %v9696_v33 = vpop.f32.mrb[69].mxu1  ;;  %9711 = vmatpush3.xpose.msk.msra.mxu1 %vm386_vm2, %v4435_v29 }
0x1605   :  { %v4438_v28 = vpop.f32.mrb[70].mxu1  ;;  %9715 = vmatprep.subr.mxu1 %v10417_v16 }
0x1606   :  { %4534 = vrot.lane.b32.xlu1 %v4438_v28, %s12009_s26  ;;  %v9697_v30 = vpop.f32.mrb[71].mxu1 }
0x1607   :  { %9713 = vmatmul.mubr.msk.f32.vlgmr.msra.gmra.mrb[72].mxu1 %vm386_vm2, %v4361_v20 }
0x1608   :  { %4522 = vrot.lane.b32.xlu0 %v4361_v20, %s12010_s19  ;;  %9716 = vmatpush3.xpose.msk.msra.mxu1 %vm386_vm2, %v4438_v28 }
0x1609   :  { %9717 = vmatprep.mubr.msk.f32.mxu1 %vm10418_vm1, %v10417_v16  ;;  %9720 = vmatprep.subr.mxu1 %v10417_v16 }
0x160a   :  { %4538 = vrot.lane.b32.xlu1 %v4438_v28, %s12010_s19 }
0x160b   :  { %9718 = vmatmul.mubr.msk.f32.vlgmr.msra.gmra.mrb[74].mxu1 %vm386_vm2, %v4364_v24 }
0x160c   :  { %4536 = vrot.lane.b32.xlu0 %v4435_v29, %s12010_s19  ;;  %9722 = vmatprep.mubr.msk.f32.mxu1 %vm10418_vm1, %v10417_v16 }
0x160e   :  { %4542 = vrot.lane.b32.xlu1 %v4438_v28, %s12011_s20 }
0x1610   :  { %4540 = vrot.lane.b32.xlu0 %v4435_v29, %s12011_s20 }
0x1612   :  { %4528 = vrot.lane.b32.xlu1 %v4364_v24, %s12011_s20 }
0x1614   :  { %4526 = vrot.lane.b32.xlu0 %v4361_v20, %s12011_s20 }
0x1666   :  { %v4519_v31 = vpop.permute.xlu1 %4518 }
0x166a   :  { %v4521_v32 = vpop.permute.xlu1 %4520 }
0x166e   :  { %v4525_v34 = vpop.permute.xlu1 %4524 }
0x1676   :  { %v4533_v36 = vpop.permute.xlu0 %4532 }
0x1677   :  { %9721 = vmatpush3.xpose.msk.msra.mxu1 %vm386_vm2, %v4533_v36 }
0x1678   :  { %v4535_v54 = vpop.permute.xlu1 %4534  ;;  %9725 = vmatprep.subr.mxu1 %v10417_v16 }
0x167a   :  { %v4523_v39 = vpop.permute.xlu0 %4522  ;;  %9723 = vmatmul.mubr.msk.f32.vlgmr.msra.gmra.mrb[76].mxu1 %vm386_vm2, %v4519_v31 }
0x167b   :  { %9726 = vmatpush3.xpose.msk.msra.mxu1 %vm386_vm2, %v4535_v54  ;;  %9727 = vmatprep.mubr.msk.f32.mxu1 %vm10418_vm1, %v10417_v16 }
0x167c   :  { %v4539_v40 = vpop.permute.xlu1 %4538  ;;  %9735 = vmatprep.subr.mxu1 %v10417_v16 }
0x167e   :  { %v4537_v45 = vpop.permute.xlu0 %4536  ;;  %9728 = vmatmul.mubr.msk.f32.vlgmr.msra.gmra.mrb[78].mxu1 %vm386_vm2, %v4521_v32 }
0x167f   :  { %9731 = vmatpush3.xpose.msk.msra.mxu0 %vm386_vm2, %v4537_v45  ;;  %9736 = vmatpush3.xpose.msk.msra.mxu1 %vm386_vm2, %v4539_v40 }
0x1680   :  { %v4543_v48 = vpop.permute.xlu1 %4542  ;;  %9737 = vmatprep.mubr.msk.f32.mxu1 %vm10418_vm1, %v10417_v16  ;;  %9740 = vmatprep.subr.mxu0 %v10417_v16 }
0x1681   :  { %9745 = vmatprep.subr.mxu1 %v10417_v16 }
0x1682   :  { %9733 = vmatmul.mubr.msk.f32.vlgmr.msra.gmra.mrb[52].mxu0 %vm386_vm2, %v4523_v39  ;;  %v4541_v49 = vpop.permute.xlu0 %4540  ;;  %9738 = vmatmul.mubr.msk.f32.vlgmr.msra.gmra.mrb[80].mxu1 %vm386_vm2, %v4525_v34 }
0x1683   :  { %9741 = vmatpush3.xpose.msk.msra.mxu0 %vm386_vm2, %v4541_v49  ;;  %9746 = vmatpush3.xpose.msk.msra.mxu1 %vm386_vm2, %v4543_v48 }
0x1684   :  { %v4529_v50 = vpop.permute.xlu1 %4528  ;;  %9747 = vmatprep.mubr.msk.f32.mxu1 %vm10418_vm1, %v10417_v16  ;;  %9742 = vmatprep.mubr.msk.f32.mxu0 %vm10418_vm1, %v10417_v16 }
0x1685   :  { %9750 = vmatprep.subr.mxu0 %v10417_v16  ;;  %9755 = vmatprep.subr.mxu1 %v10417_v16 }
0x1686   :  { %v4527_v37 = vpop.permute.xlu0 %4526  ;;  %9748 = vmatmul.mubr.msk.f32.vlgmr.msra.gmra.mrb[82].mxu1 %vm386_vm2, %v4529_v50 }
0x1687   :  { %9743 = vmatmul.mubr.msk.f32.vlgmr.msra.gmra.mrb[54].mxu0 %vm386_vm2, %v4527_v37  ;;  %9756 = vmatpush3.msra.mxu1 %v11314_v25 }
0x1688   :  { %9751 = vmatpush3.msra.mxu0 %v11311_v21  ;;  %9752 = vmatprep.mubr.msk.f32.mxu0 %vm10418_vm1, %v10417_v16 }
0x1689   :  { %9760 = vmatprep.subr.mxu0 %v10417_v16  ;;  %9757 = vmatprep.mubr.msk.f32.mxu1 %vm10418_vm1, %v10417_v16 }
0x168a   :  { %9765 = vmatprep.subr.mxu1 %v10417_v16 }
0x16da   :  { %v4634_v42 = vpop.f32.mrb[72].mxu1 }
0x16db   :  { %v5156_v52 = vmul.f32 0.125, %v4634_v42  ;;  %v9714_v51 = vpop.f32.mrb[73].mxu1 }
0x16dd   :  { %v5164_v53 = vadd.f32 %v5156_v52, %v10667_v9 }
0x16de   :  { %v4708_v46 = vpop.f32.mrb[74].mxu1 }
0x16df   :  { %v5157_v55 = vmul.f32 0.125, %v4708_v46  ;;  %v9719_v56 = vpop.f32.mrb[75].mxu1  ;;  %v5172_v43 = vsel %vm995_vm4, %v5164_v53, -inf }
0x16e0   :  { %5173 = vmax.xlane.f32.xlu0 %v5172_v43 }
0x16e1   :  { %v5165_v57 = vadd.f32 %v5157_v55, %v10667_v9 }
0x16e3   :  { %v5175_v47 = vsel %vm995_vm4, %v5165_v57, -inf }
0x16e4   :  { %5176 = vmax.xlane.f32.xlu1 %v5175_v47 }
0x174d   :  { %v4782_v58 = vpop.f32.mrb[76].mxu1 }
0x174e   :  { %v5158_v59 = vmul.f32 0.125, %v4782_v58  ;;  %v9724_v60 = vpop.f32.mrb[77].mxu1 }
0x1750   :  { %v5166_v61 = vadd.f32 %v5158_v59, %v10667_v9 }
0x1751   :  { %v4856_v62 = vpop.f32.mrb[78].mxu1 }
0x1752   :  { %v5159_v63 = vmul.f32 0.125, %v4856_v62  ;;  %v9729_v5 = vpop.f32.mrb[79].mxu1  ;;  %v5178_v0 = vsel %vm995_vm4, %v5166_v61, -inf }
0x1753   :  { %5179 = vmax.xlane.f32.xlu0 %v5178_v0 }
0x1754   :  { %v5167_v1 = vadd.f32 %v5159_v63, %v10667_v9 }
0x1755   :  { %v4930_v2 = vpop.f32.mrb[52].mxu0  ;;  %v5004_v3 = vpop.f32.mrb[80].mxu1 }
0x1756   :  { %v5160_v4 = vmul.f32 0.125, %v4930_v2  ;;  %v5161_v6 = vmul.f32 0.125, %v5004_v3  ;;  %v9734_v8 = vpop.f32.mrb[53].mxu0  ;;  %v9739_v10 = vpop.f32.mrb[81].mxu1  ;;  %v5181_v11 = vsel %vm995_vm4, %v5167_v1, -inf }
0x1757   :  { %5182 = vmax.xlane.f32.xlu0 %v5181_v11 }
0x1758   :  { %v5168_v12 = vadd.f32 %v5160_v4, %v10667_v9  ;;  %v5169_v13 = vadd.f32 %v5161_v6, %v10667_v9 }
0x1759   :  { %v5152_v14 = vpop.f32.mrb[82].mxu1 }
0x175a   :  { %v5163_v15 = vmul.f32 0.125, %v5152_v14  ;;  %v5078_v17 = vpop.f32.mrb[54].mxu0  ;;  %v9749_v18 = vpop.f32.mrb[83].mxu1  ;;  %v5184_v19 = vsel %vm995_vm4, %v5168_v12, -inf  ;;  %v5187_v20 = vsel %vm995_vm4, %v5169_v13, -inf }
0x175b   :  { %v5162_v22 = vmul.f32 0.125, %v5078_v17  ;;  %v9744_v23 = vpop.f32.mrb[55].mxu0  ;;  %5185 = vmax.xlane.f32.xlu0 %v5184_v19  ;;  %5188 = vmax.xlane.f32.xlu1 %v5187_v20 }
0x175c   :  { %v5171_v24 = vadd.f32 %v5163_v15, %v10667_v9 }
0x175d   :  { %v5170_v26 = vadd.f32 %v5162_v22, %v10667_v9 }
0x175e   :  { %v5193_v27 = vsel %vm995_vm4, %v5171_v24, -inf }
0x175f   :  { %5194 = vmax.xlane.f32.xlu1 %v5193_v27  ;;  %v5190_v29 = vsel %vm995_vm4, %v5170_v26, -inf }
0x1760   :  { %5191 = vmax.xlane.f32.xlu0 %v5190_v29 }
0x176d   :  { %v5174_v33 = vpop.xlane.xlu0 %5173 }
0x176e   :  { %v5196_v28 = vsub.f32 %v5164_v53, %v5174_v33 }
0x1770   :  { %4548 = vrot.lane.b32.xlu1 %v11314_v25, %s12009_s26  ;;  %v5204_v30 = vmul.f32 1.442695, %v5196_v28 }
0x1771   :  { %v5177_v31 = vpop.xlane.xlu1 %5176 }
0x1772   :  { %v5197_v32 = vsub.f32 %v5165_v57, %v5177_v31  ;;  %10295 = vpow2.f32 %v5204_v30 }
0x1774   :  { %4552 = vrot.lane.b32.xlu1 %v11311_v21, %s12010_s19  ;;  %v5206_v34 = vmul.f32 1.442695, %v5197_v32 }
0x1776   :  { %4546 = vrot.lane.b32.xlu0 %v11311_v21, %s12009_s26  ;;  %10297 = vpow2.f32 %v5206_v34 }
0x1778   :  { %4554 = vrot.lane.b32.xlu1 %v11314_v25, %s12010_s19 }
0x177c   :  { %v10296_v36 = vpop.eup %10295 }
0x177d   :  { %v5220_v54 = vsel %vm995_vm4, %v10296_v36, 0.0 }
0x1780   :  { %v10298_v39 = vpop.eup %10297 }
0x1781   :  { %v5223_v40 = vsel %vm995_vm4, %v10298_v39, 0.0 }
0x1795   :  { %5221 = vadd.xlane.f32.xlu0 %v5220_v54 }
0x179c   :  { %5224 = vadd.xlane.f32.xlu1 %v5223_v40 }
0x17e0   :  { %v5180_v45 = vpop.xlane.xlu0 %5179 }
0x17e1   :  { %v5198_v48 = vsub.f32 %v5166_v61, %v5180_v45 }
0x17e3   :  { %v5208_v49 = vmul.f32 1.442695, %v5198_v48 }
0x17e4   :  { %v5183_v50 = vpop.xlane.xlu0 %5182 }
0x17e5   :  { %10299 = vpow2.f32 %v5208_v49  ;;  %v5199_v37 = vsub.f32 %v5167_v1, %v5183_v50  ;;  %v10115_v50 = vld [vmem:[%s11968_s6 + $0x40] sm:$0xff]  }
0x17e7   :  { %v5210_v42 = vmul.f32 1.442695, %v5199_v37 }
0x17e8   :  { %v5186_v52 = vpop.xlane.xlu0 %5185  ;;  %v5189_v51 = vpop.xlane.xlu1 %5188 }
0x17e9   :  { %10301 = vpow2.f32 %v5210_v42  ;;  %v5200_v53 = vsub.f32 %v5168_v12, %v5186_v52  ;;  %v5201_v46 = vsub.f32 %v5169_v13, %v5189_v51 }
0x17eb   :  { %v5212_v55 = vmul.f32 1.442695, %v5200_v53  ;;  %v5214_v56 = vmul.f32 1.442695, %v5201_v46  ;;  %v10116_v53 = vld [vmem:[%s11968_s6 + $0x48] sm:$0xff]  }
0x17ec   :  { %v5195_v43 = vpop.xlane.xlu1 %5194 }
0x17ed   :  { %10303 = vpow2.f32 %v5212_v55  ;;  %v5203_v57 = vsub.f32 %v5171_v24, %v5195_v43  ;;  %v5192_v47 = vpop.xlane.xlu0 %5191 }
0x17ee   :  { %10305 = vpow2.f32 %v5214_v56  ;;  %v5202_v58 = vsub.f32 %v5170_v26, %v5192_v47  ;;  %v10117_v56 = vld [vmem:[%s11968_s6 + $0x50] sm:$0xff]  }
0x17ef   :  { %v10300_v59 = vpop.eup %10299  ;;  %v5218_v60 = vmul.f32 1.442695, %v5203_v57 }
0x17f0   :  { %v5216_v61 = vmul.f32 1.442695, %v5202_v58  ;;  %v5226_v62 = vsel %vm995_vm4, %v10300_v59, 0.0  ;;  %v4549_v11 = vpop.permute.xlu1 %4548  ;;  %v10118_v58 = vld [vmem:[%s11968_s6 + $0x58] sm:$0xff]  }
0x17f1   :  { %10307 = vpow2.f32 %v5218_v60  ;;  %5227 = vadd.xlane.f32.xlu0 %v5226_v62  ;;  %v4547_v12 = vpop.permute.xlu0 %4546 }
0x17f2   :  { %10309 = vpow2.f32 %v5216_v61 }
0x17f3   :  { %v10302_v63 = vpop.eup %10301 }
0x17f4   :  { %v5229_v5 = vsel %vm995_vm4, %v10302_v63, 0.0  ;;  %v4553_v13 = vpop.permute.xlu1 %4552 }
0x17f5   :  { %5230 = vadd.xlane.f32.xlu1 %v5229_v5 }
0x17f7   :  { %v10304_v0 = vpop.eup %10303 }
0x17f8   :  { %v10306_v1 = vpop.eup %10305  ;;  %v5232_v2 = vsel %vm995_vm4, %v10304_v0, 0.0  ;;  %v4555_v15 = vpop.permute.xlu1 %4554 }
0x17f9   :  { %5233 = vadd.xlane.f32.xlu0 %v5232_v2  ;;  %v5235_v3 = vsel %vm995_vm4, %v10306_v1, 0.0 }
0x17fa   :  { %5236 = vadd.xlane.f32.xlu1 %v5235_v3 }
0x17fb   :  { %v11401_v4 = vpop.eup %10307 }
0x17fc   :  { %v11403_v6 = vpop.eup %10309  ;;  %v5241_v8 = vsel %vm995_vm4, %v11401_v4, 0.0 }
0x17fd   :  { %v5238_v10 = vsel %vm995_vm4, %v11403_v6, 0.0 }
0x17fe   :  { %5242 = vadd.xlane.f32.xlu1 %v5241_v8  ;;  %5239 = vadd.xlane.f32.xlu0 %v5238_v10 }
0x180f   :  { %4560 = vrot.lane.b32.xlu1 %v11314_v25, %s12011_s20 }
0x1814   :  { %4558 = vrot.lane.b32.xlu0 %v11311_v21, %s12011_s20 }
0x1822   :  { %v5222_v14 = vpop.xlane.xlu0 %5221 }
0x1823   :  { %10311 = vrcp.f32 %v5222_v14 }
0x1829   :  { %v5225_v17 = vpop.xlane.xlu1 %5224 }
0x182a   :  { %10313 = vrcp.f32 %v5225_v17 }
0x182d   :  { %v10312_v18 = vpop.eup %10311 }
0x182e   :  { %v5245_v19 = vmul.f32 %v10312_v18, %v10296_v36 }
0x1830   :  { %9753 = vmatmul.mubr.msk.f32.vlgmr.msra.gmra.mrb[56].mxu0 %vm995_vm4, %v5245_v19 }
0x1831   :  { %9761 = vmatpush3.msra.mxu0 %v4547_v12  ;;  %9762 = vmatprep.mubr.msk.f32.mxu0 %vm10418_vm1, %v10417_v16 }
0x1832   :  { %9770 = vmatprep.subr.mxu0 %v10417_v16 }
0x1834   :  { %v10314_v25 = vpop.eup %10313 }
0x1835   :  { %v5247_v21 = vmul.f32 %v10314_v25, %v10298_v39 }
0x1837   :  { %9758 = vmatmul.mubr.msk.f32.vlgmr.msra.gmra.mrb[84].mxu1 %vm995_vm4, %v5247_v21 }
0x1838   :  { %9766 = vmatpush3.msra.mxu1 %v4549_v11  ;;  %9767 = vmatprep.mubr.msk.f32.mxu1 %vm10418_vm1, %v10417_v16 }
0x1839   :  { %9775 = vmatprep.subr.mxu1 %v10417_v16 }
0x187e   :  { %v5228_v20 = vpop.xlane.xlu0 %5227 }
0x187f   :  { %10315 = vrcp.f32 %v5228_v20 }
0x1882   :  { %v5231_v22 = vpop.xlane.xlu1 %5230 }
0x1883   :  { %10317 = vrcp.f32 %v5231_v22 }
0x1886   :  { %v5234_v23 = vpop.xlane.xlu0 %5233 }
0x1887   :  { %10319 = vrcp.f32 %v5234_v23  ;;  %v5237_v24 = vpop.xlane.xlu1 %5236  ;;  %v8877_v23 = vld [vmem:[%s11969_s7 + $0x2] ss:$0 sm:$0xff] }
0x1888   :  { %10321 = vrcp.f32 %v5237_v24 }
0x1889   :  { %v10316_v26 = vpop.eup %10315 }
0x188a   :  { %v5249_v27 = vmul.f32 %v10316_v26, %v10300_v59 }
0x188b   :  { %v5243_v29 = vpop.xlane.xlu1 %5242  ;;  %v5240_v33 = vpop.xlane.xlu0 %5239 }
0x188c   :  { %10323 = vrcp.f32 %v5243_v29  ;;  %9763 = vmatmul.mubr.msk.f32.vlgmr.msra.gmra.mrb[58].mxu0 %vm995_vm4, %v5249_v27 }
0x188d   :  { %v10318_v28 = vpop.eup %10317  ;;  %10325 = vrcp.f32 %v5240_v33  ;;  %9771 = vmatpush3.msra.mxu0 %v4553_v13  ;;  %9772 = vmatprep.mubr.msk.f32.mxu0 %vm10418_vm1, %v10417_v16 }
0x188e   :  { %v5251_v30 = vmul.f32 %v10318_v28, %v10302_v63  ;;  %9780 = vmatprep.subr.mxu0 %v10417_v16 }
0x188f   :  { %v4559_v54 = vpop.permute.xlu0 %4558  ;;  %v4561_v39 = vpop.permute.xlu1 %4560 }
0x1890   :  { %9768 = vmatmul.mubr.msk.f32.vlgmr.msra.gmra.mrb[86].mxu1 %vm995_vm4, %v5251_v30 }
0x1891   :  { %v10320_v31 = vpop.eup %10319  ;;  %9776 = vmatpush3.msra.mxu1 %v4555_v15  ;;  %9777 = vmatprep.mubr.msk.f32.mxu1 %vm10418_vm1, %v10417_v16 }
0x1892   :  { %v10322_v32 = vpop.eup %10321  ;;  %v5253_v34 = vmul.f32 %v10320_v31, %v10304_v0  ;;  %9785 = vmatprep.subr.mxu1 %v10417_v16 }
0x1893   :  { %v5255_v36 = vmul.f32 %v10322_v32, %v10306_v1 }
0x1894   :  { %9773 = vmatmul.mubr.msk.f32.vlgmr.msra.gmra.mrb[60].mxu0 %vm995_vm4, %v5253_v34 }
0x1895   :  { %9778 = vmatmul.mubr.msk.f32.vlgmr.msra.gmra.mrb[88].mxu1 %vm995_vm4, %v5255_v36  ;;  %9781 = vmatpush3.msra.mxu0 %v4559_v54 }
0x1896   :  { %v10324_v40 = vpop.eup %10323  ;;  %9786 = vmatpush3.msra.mxu1 %v4561_v39  ;;  %9787 = vmatprep.mubr.msk.f32.mxu1 %vm10418_vm1, %v10417_v16 }
0x1897   :  { %v10326_v45 = vpop.eup %10325  ;;  %v5259_v48 = vmul.f32 %v10324_v40, %v11401_v4  ;;  %9782 = vmatprep.mubr.msk.f32.mxu0 %vm10418_vm1, %v10417_v16  ;;  %9790 = vmatprep.subr.bf16.mxu0 %v10417_v16 }
0x1898   :  { %v5257_v49 = vmul.f32 %v10326_v45, %v11403_v6 }
0x1899   :  { %9788 = vmatmul.mubr.msk.f32.vlgmr.msra.gmra.mrb[90].mxu1 %vm995_vm4, %v5259_v48 }
0x189a   :  { %9783 = vmatmul.mubr.msk.f32.vlgmr.msra.gmra.mrb[62].mxu0 %vm995_vm4, %v5257_v49  ;;  %6106 = vmatprep.mubr.bf16.mxu1 %v10426_v7 }
0x189b   :  { %9798 = vmatprep.mubr.msk.bf16.mxu0 %vm10418_vm1, %v10417_v16  ;;  %9791 = vmatpush3.bf16.msra.mxu0 %v10115_v50 }
0x189c   :  { %9792 = vmatprep.subr.bf16.mxu0 %v10417_v16 }
0x189f   :  { %9793 = vmatpush3.bf16.msra.mxu0 %v10116_v53  ;;  %v10127_v53 = vld [vmem:[%s11972_s10 + $0xa4] ss:$8 sps:$4 sm:$0xff]  }
0x18a0   :  { %9794 = vmatprep.subr.bf16.mxu0 %v10417_v16 }
0x18a3   :  { %9795 = vmatpush3.bf16.msra.mxu0 %v10117_v56  ;;  %v10130_v56 = vld [vmem:[%s11972_s10 + $0xb4] ss:$8 sps:$4 sm:$0xff]  }
0x18a4   :  { %9796 = vmatprep.subr.bf16.mxu0 %v10417_v16 }
0x18a7   :  { %9797 = vmatpush3.bf16.msra.mxu0 %v10118_v58 }
0x1903   :  { %v5329_v37 = vpop.f32.mrb[56].mxu0 }
0x1904   :  { %v9754_v42 = vpop.f32.mrb[57].mxu0 }
0x1905   :  { %v10119_v42 = vld [vmem:[%s11972_s10 + $0x80] ss:$8 sps:$4 sm:$0xff]  }
0x190a   :  { %v5402_v52 = vpop.f32.mrb[84].mxu1 }
0x190b   :  { %v9759_v51 = vpop.f32.mrb[85].mxu1 }
0x190c   :  { %v10122_v51 = vld [vmem:[%s11972_s10 + $0x90] ss:$8 sps:$4 sm:$0xff]  }
0x195f   :  { %v5475_v46 = vpop.f32.mrb[58].mxu0 }
0x1960   :  { %v9764_v55 = vpop.f32.mrb[59].mxu0 }
0x1961   :  { %v10128_v55 = vld [vmem:[%s11972_s10 + $0xb0] ss:$8 sps:$4 sm:$0xff]  }
0x1963   :  { %v5548_v43 = vpop.f32.mrb[86].mxu1 }
0x1964   :  { %v9985_v57 = vpack.i.bf16 %v5548_v43, %v5475_v46  ;;  %v9769_v47 = vpop.f32.mrb[87].mxu1  ;;  %v10125_v46 = vld [vmem:[%s11972_s10 + $0xa0] ss:$8 sps:$4 sm:$0xff]  }
0x1966   :  { %9986 = vrot.lane.b32.xlu0 %v9985_v57, %s12006_s27 }
0x1967   :  { %v5621_v59 = vpop.f32.mrb[60].mxu0 }
0x1968   :  { %v5694_v60 = vpop.f32.mrb[88].mxu1  ;;  %v9774_v61 = vpop.f32.mrb[61].mxu0 }
0x1969   :  { %v9990_v62 = vpack.i.bf16 %v5694_v60, %v5621_v59  ;;  %v9779_v63 = vpop.f32.mrb[89].mxu1 }
0x196a   :  { %v8885_v63 = vld [vmem:[%s11970_s8 + $0x2] ss:$0 sm:$0xff] }
0x196b   :  { %9991 = vrot.lane.b32.xlu1 %v9990_v62, %s12007_s28 }
0x196c   :  { %v5840_v5 = vpop.f32.mrb[90].mxu1 }
0x196d   :  { %v5767_v0 = vpop.f32.mrb[62].mxu0  ;;  %v9789_v1 = vpop.f32.mrb[91].mxu1 }
0x196e   :  { %v9995_v2 = vpack.i.bf16 %v5840_v5, %v5767_v0  ;;  %v9784_v3 = vpop.f32.mrb[63].mxu0 }
0x1970   :  { %9996 = vrot.lane.b32.xlu0 %v9995_v2, %s12008_s30  ;;  %v8886_v2 = vld [vmem:[%s11971_s9 + $0x2] ss:$0 sm:$0xff] }
0x19d8   :  { %v9987_v4 = vpop.permute.xlu0 %9986 }
0x19d9   :  { %v9989_v8 = vunpack.i.h.bf16 %v9987_v4  ;;  %v9988_v10 = vunpack.i.l.bf16 %v9987_v4 }
0x19db   :  { %v5869_v14 = vsel %vm386_vm2, %v5402_v52, %v9989_v8  ;;  %v5868_v15 = vsel %vm386_vm2, %v5329_v37, %v9988_v10  ;;  %v10121_v37 = vld [vmem:[%s11972_s10 + $0x84] ss:$8 sps:$4 sm:$0xff]   ;;  %v10124_v52 = vld [vmem:[%s11972_s10 + $0x94] ss:$8 sps:$4 sm:$0xff]  }
0x19dc   :  { %6074 = vmatprep.subr.bf16.mxu1 %v10121_v37  ;;  %v10131_v10 = vld [vmem:[%s11974_s12 + $0x140] sm:$0xff]  }
0x19dd   :  { %v9992_v6 = vpop.permute.xlu1 %9991  ;;  %6075 = vmatpush1.bf16.msra.mxu1 %v10119_v42  ;;  %9317 = vmatprep.subr.bf16.mxu0 %v10131_v10 }
0x19de   :  { %v9994_v11 = vunpack.i.h.bf16 %v9992_v6  ;;  %v9993_v12 = vunpack.i.l.bf16 %v9992_v6  ;;  %6076 = vmatprep.subr.bf16.mxu1 %v10124_v52 }
0x19e0   :  { %v5871_v19 = vsel %vm1694_vm5, %v5869_v14, %v9994_v11  ;;  %v5870_v25 = vsel %vm1694_vm5, %v5868_v15, %v9993_v12  ;;  %v10132_v11 = vld [vmem:[%s11974_s12 + $0x100] sm:$0xff]   ;;  %v10133_v12 = vld [vmem:[%s11974_s12 + $0x148] sm:$0xff]   ;;  %v10135_v14 = vld [vmem:[%s11974_s12 + $0x150] sm:$0xff]  }
0x19e1   :  { %6077 = vmatpush1.bf16.msra.mxu1 %v10122_v51  ;;  %v10136_v15 = vld [vmem:[%s11974_s12 + $0x110] sm:$0xff]  }
0x19e2   :  { %v9997_v13 = vpop.permute.xlu0 %9996  ;;  %6078 = vmatprep.subr.bf16.mxu1 %v10127_v53 }
0x19e3   :  { %v9999_v17 = vunpack.i.h.bf16 %v9997_v13  ;;  %v9998_v18 = vunpack.i.l.bf16 %v9997_v13  ;;  %v10134_v13 = vld [vmem:[%s11974_s12 + $0x108] sm:$0xff]  }
0x19e5   :  { %v5873_v21 = vsel %vm1697_vm6, %v5871_v19, %v9999_v17  ;;  %v5872_v20 = vsel %vm1697_vm6, %v5870_v25, %v9998_v18  ;;  %6079 = vmatpush1.bf16.msra.mxu1 %v10125_v46  ;;  %v10137_v17 = vld [vmem:[%s11974_s12 + $0x158] sm:$0xff]   ;;  %v10139_v19 = vld [vmem:[%s11974_s12 + $0x160] sm:$0xff]  }
0x19e6   :  { %v5874_v22 = vpack.c.bf16 %v5873_v21, %v5872_v20  ;;  %6080 = vmatprep.subr.bf16.mxu1 %v10130_v56  ;;  %v10138_v18 = vld [vmem:[%s11974_s12 + $0x118] sm:$0xff]   ;;  %v10140_v25 = vld [vmem:[%s11974_s12 + $0x120] sm:$0xff]   ;;  %v10141_v21 = vld [vmem:[%s11974_s12 + $0x168] sm:$0xff]  }
0x19e7   :  { %v10142_v20 = vld [vmem:[%s11974_s12 + $0x128] sm:$0xff]  }
0x19e8   :  { %9799 = vmatmul.mubr.msk.bf16.vlgmr.msra.gmra.mrb[64].mxu0 %vm71_vm0, %v5874_v22  ;;  %v10143_v22 = vld [vmem:[%s11974_s12 + $0x170] sm:$0xff]  }
0x19e9   :  { %6081 = vmatpush1.bf16.msra.mxu1 %v10128_v55  ;;  %9318 = vmatpush3.bf16.msra.mxu0 %v10132_v11 }
0x19ea   :  { %9802 = vmatprep.subr.bf16.mxu1 %v10417_v16  ;;  %9319 = vmatprep.subr.bf16.mxu0 %v10133_v12 }
0x19ed   :  { %9320 = vmatpush3.bf16.msra.mxu0 %v10134_v13 }
0x19ee   :  { %9321 = vmatprep.subr.bf16.mxu0 %v10135_v14 }
0x19f1   :  { %9322 = vmatpush3.bf16.msra.mxu0 %v10136_v15 }
0x19f2   :  { %9323 = vmatprep.subr.bf16.mxu0 %v10137_v17 }
0x19f5   :  { %9324 = vmatpush3.bf16.msra.mxu0 %v10138_v18 }
0x19f6   :  { %9325 = vmatprep.subr.bf16.mxu0 %v10139_v19 }
0x19f9   :  { %9326 = vmatpush3.bf16.msra.mxu0 %v10140_v25  ;;  %v8938_v25 = vld [vmem:[%s11975_s13 + $0x2] ss:$0 sm:$0xff] }
0x19fa   :  { %9327 = vmatprep.subr.bf16.mxu0 %v10141_v21 }
0x19fd   :  { %9328 = vmatpush3.bf16.msra.mxu0 %v10142_v20 }
0x19fe   :  { %9329 = vmatprep.subr.bf16.mxu0 %v10143_v22 }
0x1abb   :  { %v5953_v24 = vpop.f32.mrb[64].mxu0 }
0x1abc   :  { %v5954_v26 = vadd.f32 %v8877_v23, %v5953_v24  ;;  %v9800_v27 = vpop.f32.mrb[65].mxu0  ;;  %v10145_v24 = vld [vmem:[%s11974_s12 + $0x178] sm:$0xff]  }
0x1abd   :  { %v5956_v29 = vpop.f32.mrb[66].mxu0  ;;  %v8895_v27 = vld [vmem:[%s11973_s11 + $0x4] sm:$0x3] }
0x1abe   :  { %v11472_v33 = vadd.f32 %v5954_v26, %v11235_v35  ;;  %v5957_v28 = vadd.f32 %v8877_v23, %v5956_v29  ;;  %v9801_v30 = vpop.f32.mrb[67].mxu0  ;;  %v10144_v23 = vld [vmem:[%s11974_s12 + $0x130] sm:$0xff]   ;;  %v10146_v26 = vld [vmem:[%s11974_s12 + $0x138] sm:$0xff]   ;;  %v6024_v29 = vrot.slane %v8895_v27, %v10875_v41 }
0x1abf   :  { %9330 = vmatpush3.bf16.msra.mxu0 %v10144_v23 }
0x1ac0   :  { %v11475_v31 = vadd.f32 %v5957_v28, %v11238_v38  ;;  %v5966_v32 = vsel %vm71_vm0, %v11472_v33, 0.0  ;;  %9331 = vmatprep.subr.bf16.mxu0 %v10145_v24  ;;  %v6028_v28 = vrot.slane %v8895_v27, %v10881_v44 }
0x1ac1   :  { %5967 = vadd.xlane.f32.xlu1 %v5966_v32 }
0x1ac2   :  { %v5969_v34 = vsel %vm71_vm0, %v11475_v31, 0.0 }
0x1ac3   :  { %5970 = vadd.xlane.f32.xlu0 %v5969_v34  ;;  %9332 = vmatpush3.bf16.msra.mxu0 %v10146_v26 }
0x1ac4   :  { %9826 = vmatprep.subr.bf16.mxu0 %v10417_v16 }
0x1b4e   :  { %v5968_v36 = vpop.xlane.xlu1 %5967 }
0x1b4f   :  { %v5972_v54 = vmul.f32 0.015625, %v5968_v36 }
0x1b50   :  { %v5971_v39 = vpop.xlane.xlu0 %5970 }
0x1b51   :  { %v5974_v40 = vsub.f32 %v11472_v33, %v5972_v54  ;;  %v5973_v35 = vmul.f32 0.015625, %v5971_v39 }
0x1b53   :  { %v5975_v45 = vsub.f32 %v11475_v31, %v5973_v35  ;;  %v5976_v48 = vmul.f32 %v5974_v40, %v5974_v40 }
0x1b55   :  { %v5978_v38 = vsel %vm71_vm0, %v5976_v48, 0.0  ;;  %v5977_v49 = vmul.f32 %v5975_v45, %v5975_v45 }
0x1b56   :  { %5979 = vadd.xlane.f32.xlu0 %v5978_v38 }
0x1b57   :  { %v5981_v50 = vsel %vm71_vm0, %v5977_v49, 0.0 }
0x1b5a   :  { %5982 = vadd.xlane.f32.xlu0 %v5981_v50 }
0x1be3   :  { %v5980_v43 = vpop.xlane.xlu0 %5979 }
0x1be4   :  { %v5984_v57 = vmul.f32 0.015625, %v5980_v43 }
0x1be6   :  { %v5986_v47 = vadd.f32 1e-05, %v5984_v57 }
0x1be7   :  { %v5983_v58 = vpop.xlane.xlu0 %5982 }
0x1be8   :  { %10327 = vrsqrt.f32 %v5986_v47  ;;  %v5985_v59 = vmul.f32 0.015625, %v5983_v58 }
0x1bea   :  { %v5987_v60 = vadd.f32 1e-05, %v5985_v59 }
0x1bec   :  { %10329 = vrsqrt.f32 %v5987_v60 }
0x1bf2   :  { %v10328_v61 = vpop.eup %10327 }
0x1bf3   :  { %v5990_v62 = vmul.f32 %v10328_v61, %v5974_v40 }
0x1bf5   :  { %v5998_v0 = vmul.f32 %v8885_v63, %v5990_v62 }
0x1bf6   :  { %v10330_v5 = vpop.eup %10329 }
0x1bf7   :  { %v5991_v1 = vmul.f32 %v10330_v5, %v5975_v45  ;;  %v6006_v4 = vadd.f32 %v8886_v2, %v5998_v0 }
0x1bf9   :  { %v5999_v3 = vmul.f32 %v8885_v63, %v5991_v1 }
0x1bfb   :  { %v6007_v6 = vadd.f32 %v8886_v2, %v5999_v3 }
0x1bfd   :  { %v6008_v8 = vpack.c.bf16 %v6007_v6, %v6006_v4 }
0x1bff   :  { %8904 = vmatmul.mubr.msk.bf16.vlgmr.msra.gmra.mrb[92].mxu1 %vm71_vm0, %v6008_v8 }
0x1c00   :  { %9810 = vmatprep.mubr.msk.bf16.mxu1 %vm10418_vm1, %v10417_v16 }
0x1cd2   :  { %v6108_v30 = vpop.f32.mrb[92].mxu1 }
0x1cd3   :  { %v6109_v32 = vadd.f32 %v6108_v30, %v6024_v29  ;;  %v6110_v34 = vpop.f32.mrb[93].mxu1 }
0x1cd4   :  { %v6111_v36 = vadd.f32 %v6110_v34, %v6028_v28  ;;  %v6112_v54 = vpop.f32.mrb[94].mxu1 }
0x1cd5   :  { %v6121_v39 = vmul.f32 0.044715, %v6109_v32  ;;  %v6113_v40 = vadd.f32 %v6112_v54, %v6024_v29  ;;  %v6114_v35 = vpop.f32.mrb[95].mxu1  ;;  %v6117_v3 = vmul.f32 0.5, %v6109_v32 }
0x1cd6   :  { %v6122_v45 = vmul.f32 0.044715, %v6111_v36  ;;  %v6115_v48 = vadd.f32 %v6114_v35, %v6028_v28  ;;  %v6118_v8 = vmul.f32 0.5, %v6111_v36 }
0x1cd7   :  { %v6125_v38 = vmul.f32 %v6121_v39, %v6109_v32  ;;  %v6123_v49 = vmul.f32 0.044715, %v6113_v40  ;;  %v6119_v4 = vmul.f32 0.5, %v6113_v40 }
0x1cd8   :  { %v6126_v50 = vmul.f32 %v6122_v45, %v6111_v36  ;;  %v6124_v37 = vmul.f32 0.044715, %v6115_v48  ;;  %v6120_v10 = vmul.f32 0.5, %v6115_v48 }
0x1cd9   :  { %v6129_v42 = vmul.f32 %v6125_v38, %v6109_v32  ;;  %v6127_v52 = vmul.f32 %v6123_v49, %v6113_v40  ;;  %v10147_v38 = vld [vmem:[%s11965_s3 + $0x60] sm:$0xff]  }
0x1cda   :  { %v6130_v51 = vmul.f32 %v6126_v50, %v6111_v36  ;;  %v6128_v53 = vmul.f32 %v6124_v37, %v6115_v48  ;;  %v10148_v49 = vld [vmem:[%s11967_s5 + $0x60] sm:$0xff]   ;;  %9803 = vmatpush3.bf16.msra.mxu1 %v10147_v38  ;;  %v10149_v50 = vld [vmem:[%s11965_s3 + $0x68] sm:$0xff]  }
0x1cdb   :  { %v6133_v46 = vadd.f32 %v6129_v42, %v6109_v32  ;;  %v6131_v55 = vmul.f32 %v6127_v52, %v6113_v40  ;;  %9804 = vmatprep.subr.bf16.mxu1 %v10417_v16  ;;  %v10150_v37 = vld [vmem:[%s11967_s5 + $0x68] sm:$0xff]   ;;  %v10151_v42 = vld [vmem:[%s11965_s3 + $0x70] sm:$0xff]  }
0x1cdc   :  { %v6132_v56 = vmul.f32 %v6128_v53, %v6115_v48  ;;  %v6134_v43 = vadd.f32 %v6130_v51, %v6111_v36  ;;  %v10152_v52 = vld [vmem:[%s11967_s5 + $0x70] sm:$0xff]   ;;  %v10153_v51 = vld [vmem:[%s11965_s3 + $0x78] sm:$0xff]  }
0x1cdd   :  { %v6137_v57 = vmul.f32 0.7978846, %v6133_v46  ;;  %v6135_v47 = vadd.f32 %v6131_v55, %v6113_v40  ;;  %v10154_v53 = vld [vmem:[%s11967_s5 + $0x78] sm:$0xff]  }
0x1cde   :  { %v6136_v58 = vadd.f32 %v6132_v56, %v6115_v48  ;;  %v6138_v59 = vmul.f32 0.7978846, %v6134_v43  ;;  %9805 = vmatpush3.bf16.msra.mxu1 %v10149_v50 }
0x1cdf   :  { %10331 = vtanh.f32 %v6137_v57  ;;  %v6139_v60 = vmul.f32 0.7978846, %v6135_v47  ;;  %9806 = vmatprep.subr.bf16.mxu1 %v10417_v16 }
0x1ce0   :  { %v6140_v61 = vmul.f32 0.7978846, %v6136_v58  ;;  %10333 = vtanh.f32 %v6138_v59  ;;  %v8957_v59 = vld [vmem:[%s12004_s22 + $0x3] ss:$0 sm:$0xff] }
0x1ce1   :  { %10335 = vtanh.f32 %v6139_v60 }
0x1ce2   :  { %10337 = vtanh.f32 %v6140_v61  ;;  %9807 = vmatpush3.bf16.msra.mxu1 %v10151_v42 }
0x1ce3   :  { %9808 = vmatprep.subr.bf16.mxu1 %v10417_v16 }
0x1ce6   :  { %9809 = vmatpush3.bf16.msra.mxu1 %v10153_v51 }
0x1ce7   :  { %9814 = vmatprep.subr.bf16.mxu1 %v10417_v16 }
0x1ce9   :  { %v10332_v62 = vpop.eup %10331 }
0x1cea   :  { %v10334_v63 = vpop.eup %10333  ;;  %v6145_v5 = vadd.f32 1.0, %v10332_v62 }
0x1ceb   :  { %v10336_v0 = vpop.eup %10335  ;;  %v6146_v1 = vadd.f32 1.0, %v10334_v63 }
0x1cec   :  { %v10338_v2 = vpop.eup %10337  ;;  %v6147_v6 = vadd.f32 1.0, %v10336_v0  ;;  %v6149_v12 = vmul.f32 %v6145_v5, %v6117_v3  ;;  %v8958_v5 = vld [vmem:[%s12005_s24 + $0x3] ss:$0 sm:$0xff] }
0x1ced   :  { %v6148_v11 = vadd.f32 1.0, %v10338_v2  ;;  %v6150_v14 = vmul.f32 %v6146_v1, %v6118_v8  ;;  %v10155_v3 = vld [vmem:[%s11966_s4 + $0x60] sm:$0xff]   ;;  %v10157_v8 = vld [vmem:[%s11966_s4 + $0x70] sm:$0xff]  }
0x1cee   :  { %v6151_v13 = vmul.f32 %v6147_v6, %v6119_v4  ;;  %v10156_v6 = vld [vmem:[%s11966_s4 + $0x68] sm:$0xff]  }
0x1cef   :  { %v6152_v15 = vmul.f32 %v6148_v11, %v6120_v10  ;;  %v10158_v10 = vld [vmem:[%s11966_s4 + $0x78] sm:$0xff]  }
0x1cf0   :  { %v6153_v17 = vpack.c.bf16 %v6151_v13, %v6149_v12 }
0x1cf1   :  { %v6154_v18 = vpack.c.bf16 %v6152_v15, %v6150_v14 }
0x1cf3   :  { %6324 = vmatprep.mubr.bf16.mxu0 %v6154_v18 }
0x1cf4   :  { %6325 = vmatmul.mubr.bf16.vlgmr.msra.gmra.mrb[68].mxu0 %v6153_v17 }
0x1cf5   :  { %9834 = vmatprep.mubr.msk.bf16.mxu0 %vm10418_vm1, %v10417_v16  ;;  %9827 = vmatpush3.bf16.msra.mxu0 %v10148_v49 }
0x1cf6   :  { %9828 = vmatprep.subr.bf16.mxu0 %v10417_v16 }
0x1cf9   :  { %9829 = vmatpush3.bf16.msra.mxu0 %v10150_v37 }
0x1cfa   :  { %9830 = vmatprep.subr.bf16.mxu0 %v10417_v16 }
0x1cfd   :  { %9831 = vmatpush3.bf16.msra.mxu0 %v10152_v52 }
0x1cfe   :  { %9832 = vmatprep.subr.bf16.mxu0 %v10417_v16 }
0x1d01   :  { %9833 = vmatpush3.bf16.msra.mxu0 %v10154_v53 }
0x1d02   :  { %9858 = vmatprep.subr.mxu0 %v10417_v16 }
0x1dc7   :  { %v9333_v19 = vpop.f32.mrb[68].mxu0 }
0x1dc8   :  { %v9334_v21 = vpop.f32.mrb[69].mxu0 }
0x1dc9   :  { %v9335_v20 = vadd.f32 %v9334_v21, %v9333_v19  ;;  %v9336_v22 = vpop.f32.mrb[70].mxu0 }
0x1dca   :  { %v9337_v23 = vpop.f32.mrb[71].mxu0 }
0x1dcb   :  { %v6327_v24 = vadd.f32 %v9335_v20, %v8938_v25  ;;  %v9338_v26 = vadd.f32 %v9337_v23, %v9336_v22 }
0x1dcd   :  { %v11579_v27 = vadd.f32 %v6327_v24, %v11472_v33  ;;  %v6330_v29 = vadd.f32 %v9338_v26, %v8938_v25 }
0x1dcf   :  { %v11582_v28 = vadd.f32 %v6330_v29, %v11475_v31  ;;  %v6339_v30 = vsel %vm71_vm0, %v11579_v27, 0.0 }
0x1dd0   :  { %6340 = vadd.xlane.f32.xlu1 %v6339_v30 }
0x1dd1   :  { %v6342_v32 = vsel %vm71_vm0, %v11582_v28, 0.0 }
0x1dd2   :  { %6343 = vadd.xlane.f32.xlu0 %v6342_v32 }
0x1e5d   :  { %v6341_v34 = vpop.xlane.xlu1 %6340 }
0x1e5e   :  { %v6345_v36 = vmul.f32 0.015625, %v6341_v34 }
0x1e5f   :  { %v6344_v54 = vpop.xlane.xlu0 %6343 }
0x1e60   :  { %v6347_v39 = vsub.f32 %v11579_v27, %v6345_v36  ;;  %v6346_v40 = vmul.f32 0.015625, %v6344_v54 }
0x1e62   :  { %v6348_v33 = vsub.f32 %v11582_v28, %v6346_v40  ;;  %v6349_v35 = vmul.f32 %v6347_v39, %v6347_v39 }
0x1e64   :  { %v6351_v31 = vsel %vm71_vm0, %v6349_v35, 0.0  ;;  %v6350_v45 = vmul.f32 %v6348_v33, %v6348_v33 }
0x1e65   :  { %6352 = vadd.xlane.f32.xlu1 %v6351_v31 }
0x1e66   :  { %v6354_v48 = vsel %vm71_vm0, %v6350_v45, 0.0 }
0x1e67   :  { %6355 = vadd.xlane.f32.xlu0 %v6354_v48 }
0x1ef2   :  { %v6353_v46 = vpop.xlane.xlu1 %6352 }
0x1ef3   :  { %v6357_v55 = vmul.f32 0.015625, %v6353_v46 }
0x1ef4   :  { %v6356_v56 = vpop.xlane.xlu0 %6355 }
0x1ef5   :  { %v6359_v43 = vadd.f32 1e-05, %v6357_v55  ;;  %v6358_v57 = vmul.f32 0.015625, %v6356_v56 }
0x1ef7   :  { %10339 = vrsqrt.f32 %v6359_v43  ;;  %v6360_v47 = vadd.f32 1e-05, %v6358_v57 }
0x1ef9   :  { %10341 = vrsqrt.f32 %v6360_v47 }
0x1f01   :  { %v10340_v58 = vpop.eup %10339 }
0x1f02   :  { %v6363_v60 = vmul.f32 %v10340_v58, %v6347_v39 }
0x1f03   :  { %v10342_v61 = vpop.eup %10341 }
0x1f04   :  { %v6371_v62 = vmul.f32 %v8957_v59, %v6363_v60  ;;  %v6364_v63 = vmul.f32 %v10342_v61, %v6348_v33 }
0x1f06   :  { %v6372_v0 = vmul.f32 %v8957_v59, %v6364_v63  ;;  %v6379_v1 = vadd.f32 %v8958_v5, %v6371_v62 }
0x1f08   :  { %v6380_v2 = vadd.f32 %v8958_v5, %v6372_v0 }
0x1f0a   :  { %v6381_v4 = vpack.c.bf16 %v6380_v2, %v6379_v1 }
0x1f0c   :  { %9811 = vmatmul.mubr.msk.bf16.vlgmr.msra.gmra.mrb[96].mxu1 %vm71_vm0, %v6381_v4  ;;  %9835 = vmatmul.mubr.msk.bf16.vlgmr.msra.gmra.mrb[72].mxu0 %vm71_vm0, %v6381_v4 }
0x1f0d   :  { %9815 = vmatpush3.bf16.msra.mxu1 %v10155_v3  ;;  %9822 = vmatprep.mubr.msk.bf16.mxu1 %vm10418_vm1, %v10417_v16 }
0x1f0e   :  { %9816 = vmatprep.subr.bf16.mxu1 %v10417_v16  ;;  %9860 = vmatprep.mubr.msk.f32.mxu0 %vm10418_vm1, %v10417_v16 }
0x1f11   :  { %9817 = vmatpush3.bf16.msra.mxu1 %v10156_v6 }
0x1f12   :  { %9818 = vmatprep.subr.bf16.mxu1 %v10417_v16 }
0x1f15   :  { %9819 = vmatpush3.bf16.msra.mxu1 %v10157_v8 }
0x1f16   :  { %9820 = vmatprep.subr.bf16.mxu1 %v10417_v16 }
0x1f19   :  { %9821 = vmatpush3.bf16.msra.mxu1 %v10158_v10 }
0x1f1a   :  { %9838 = vmatprep.subr.mxu1 %v10417_v16 }
0x1f1c   :  { %9823 = vmatmul.mubr.msk.bf16.vlgmr.msra.gmra.mrb[100].mxu1 %vm71_vm0, %v6381_v4 }
0x1f1d   :  { %9840 = vmatprep.mubr.msk.f32.mxu1 %vm10418_vm1, %v10417_v16 }
0x1fdf   :  { %v6452_v11 = vpop.f32.mrb[96].mxu1  ;;  %v11655_v12 = vpop.f32.mrb[72].mxu0 }
0x1fe0   :  { %v9836_v13 = vpop.f32.mrb[73].mxu0  ;;  %6609 = vrot.lane.b32.xlu0 %v6452_v11, %s12009_s26  ;;  %v9812_v14 = vpop.f32.mrb[97].mxu1 }
0x1fe1   :  { %v6455_v15 = vpop.f32.mrb[98].mxu1  ;;  %v11658_v17 = vpop.f32.mrb[74].mxu0 }
0x1fe2   :  { %v9837_v18 = vpop.f32.mrb[75].mxu0  ;;  %6611 = vrot.lane.b32.xlu1 %v6455_v15, %s12009_s26  ;;  %v9813_v19 = vpop.f32.mrb[99].mxu1 }
0x1fe4   :  { %6615 = vrot.lane.b32.xlu0 %v6455_v15, %s12010_s19 }
0x1fef   :  { %v6526_v25 = vpop.f32.mrb[100].mxu1 }
0x1ff0   :  { %6623 = vrot.lane.b32.xlu1 %v6526_v25, %s12009_s26  ;;  %v9824_v21 = vpop.f32.mrb[101].mxu1  ;;  %9839 = vmatpush3.xpose.msk.msra.mxu1 %vm386_vm2, %v6526_v25 }
0x1ff1   :  { %v6529_v20 = vpop.f32.mrb[102].mxu1  ;;  %9843 = vmatprep.subr.mxu1 %v10417_v16 }
0x1ff2   :  { %6629 = vrot.lane.b32.xlu0 %v6529_v20, %s12010_s19  ;;  %v9825_v22 = vpop.f32.mrb[103].mxu1 }
0x1ff3   :  { %9841 = vmatmul.mubr.msk.f32.vlgmr.msra.gmra.mrb[104].mxu1 %vm386_vm2, %v6452_v11 }
0x1ff4   :  { %6627 = vrot.lane.b32.xlu1 %v6526_v25, %s12010_s19  ;;  %9844 = vmatpush3.xpose.msk.msra.mxu1 %vm386_vm2, %v6529_v20 }
0x1ff5   :  { %9845 = vmatprep.mubr.msk.f32.mxu1 %vm10418_vm1, %v10417_v16  ;;  %9848 = vmatprep.subr.mxu1 %v10417_v16 }
0x1ff6   :  { %6633 = vrot.lane.b32.xlu0 %v6529_v20, %s12011_s20 }
0x1ff7   :  { %9846 = vmatmul.mubr.msk.f32.vlgmr.msra.gmra.mrb[106].mxu1 %vm386_vm2, %v6455_v15 }
0x1ff8   :  { %6625 = vrot.lane.b32.xlu1 %v6529_v20, %s12009_s26  ;;  %9850 = vmatprep.mubr.msk.f32.mxu1 %vm10418_vm1, %v10417_v16 }
0x1ffa   :  { %6619 = vrot.lane.b32.xlu0 %v6455_v15, %s12011_s20 }
0x1ffc   :  { %6613 = vrot.lane.b32.xlu1 %v6452_v11, %s12010_s19 }
0x2000   :  { %6631 = vrot.lane.b32.xlu1 %v6526_v25, %s12011_s20 }
0x2004   :  { %6617 = vrot.lane.b32.xlu1 %v6452_v11, %s12011_s20 }
0x2052   :  { %v6610_v24 = vpop.permute.xlu0 %6609 }
0x2054   :  { %v6612_v23 = vpop.permute.xlu1 %6611 }
0x2056   :  { %v6616_v29 = vpop.permute.xlu0 %6615 }
0x2062   :  { %v6624_v26 = vpop.permute.xlu1 %6623 }
0x2063   :  { %9849 = vmatpush3.xpose.msk.msra.mxu1 %vm386_vm2, %v6624_v26 }
0x2064   :  { %9853 = vmatprep.subr.mxu1 %v10417_v16  ;;  %v6630_v32 = vpop.permute.xlu0 %6629 }
0x2066   :  { %v6628_v30 = vpop.permute.xlu1 %6627  ;;  %9851 = vmatmul.mubr.msk.f32.vlgmr.msra.gmra.mrb[108].mxu1 %vm386_vm2, %v6610_v24 }
0x2067   :  { %9859 = vmatpush3.xpose.msk.msra.mxu0 %vm386_vm2, %v6628_v30  ;;  %9855 = vmatprep.mubr.msk.f32.mxu1 %vm10418_vm1, %v10417_v16 }
0x2068   :  { %9868 = vmatprep.subr.mxu0 %v10417_v16  ;;  %v6634_v54 = vpop.permute.xlu0 %6633 }
0x206a   :  { %v6626_v34 = vpop.permute.xlu1 %6625 }
0x206b   :  { %9854 = vmatpush3.xpose.msk.msra.mxu1 %vm386_vm2, %v6626_v34 }
0x206c   :  { %9863 = vmatprep.subr.mxu1 %v10417_v16  ;;  %v6620_v40 = vpop.permute.xlu0 %6619 }
0x206e   :  { %v6614_v36 = vpop.permute.xlu1 %6613  ;;  %9856 = vmatmul.mubr.msk.f32.vlgmr.msra.gmra.mrb[110].mxu1 %vm386_vm2, %v6612_v23 }
0x206f   :  { %9861 = vmatmul.mubr.msk.f32.vlgmr.msra.gmra.mrb[76].mxu0 %vm386_vm2, %v6614_v36  ;;  %9864 = vmatpush3.xpose.msk.msra.mxu1 %vm386_vm2, %v6630_v32 }
0x2070   :  { %9865 = vmatprep.mubr.msk.f32.mxu1 %vm10418_vm1, %v10417_v16  ;;  %9873 = vmatprep.subr.mxu1 %v10417_v16 }
0x2071   :  { %9870 = vmatprep.mubr.msk.f32.mxu0 %vm10418_vm1, %v10417_v16 }
0x2072   :  { %v6632_v39 = vpop.permute.xlu1 %6631  ;;  %9866 = vmatmul.mubr.msk.f32.vlgmr.msra.gmra.mrb[112].mxu1 %vm386_vm2, %v6616_v29 }
0x2073   :  { %9869 = vmatpush3.xpose.msk.msra.mxu0 %vm386_vm2, %v6632_v39  ;;  %9874 = vmatpush3.xpose.msk.msra.mxu1 %vm386_vm2, %v6634_v54 }
0x2074   :  { %9875 = vmatprep.mubr.msk.f32.mxu1 %vm10418_vm1, %v10417_v16  ;;  %9878 = vmatprep.subr.mxu0 %v10417_v16 }
0x2075   :  { %9883 = vmatprep.subr.mxu1 %v10417_v16 }
0x2076   :  { %v6618_v33 = vpop.permute.xlu1 %6617  ;;  %9876 = vmatmul.mubr.msk.f32.vlgmr.msra.gmra.mrb[114].mxu1 %vm386_vm2, %v6620_v40 }
0x2077   :  { %9871 = vmatmul.mubr.msk.f32.vlgmr.msra.gmra.mrb[78].mxu0 %vm386_vm2, %v6618_v33  ;;  %9884 = vmatpush3.msra.mxu1 %v11658_v17 }
0x2078   :  { %9879 = vmatpush3.msra.mxu0 %v11655_v12  ;;  %9885 = vmatprep.mubr.msk.f32.mxu1 %vm10418_vm1, %v10417_v16 }
0x2079   :  { %9893 = vmatprep.subr.mxu1 %v10417_v16  ;;  %9880 = vmatprep.mubr.msk.f32.mxu0 %vm10418_vm1, %v10417_v16 }
0x207a   :  { %9888 = vmatprep.subr.mxu0 %v10417_v16 }
0x20c6   :  { %v6725_v35 = vpop.f32.mrb[104].mxu1 }
0x20c7   :  { %v7247_v31 = vmul.f32 0.125, %v6725_v35  ;;  %v9842_v45 = vpop.f32.mrb[105].mxu1 }
0x20c9   :  { %v7255_v48 = vadd.f32 %v7247_v31, %v10667_v9 }
0x20ca   :  { %v6799_v38 = vpop.f32.mrb[106].mxu1 }
0x20cb   :  { %v7248_v49 = vmul.f32 0.125, %v6799_v38  ;;  %v9847_v50 = vpop.f32.mrb[107].mxu1  ;;  %v7263_v37 = vsel %vm995_vm4, %v7255_v48, -inf }
0x20cc   :  { %7264 = vmax.xlane.f32.xlu1 %v7263_v37 }
0x20cd   :  { %v7256_v42 = vadd.f32 %v7248_v49, %v10667_v9 }
0x20cf   :  { %v7266_v52 = vsel %vm995_vm4, %v7256_v42, -inf }
0x20d0   :  { %7267 = vmax.xlane.f32.xlu0 %v7266_v52 }
0x2139   :  { %v6873_v51 = vpop.f32.mrb[108].mxu1 }
0x213a   :  { %v7249_v53 = vmul.f32 0.125, %v6873_v51  ;;  %v9852_v46 = vpop.f32.mrb[109].mxu1 }
0x213c   :  { %v7257_v55 = vadd.f32 %v7249_v53, %v10667_v9 }
0x213e   :  { %v7269_v56 = vsel %vm995_vm4, %v7257_v55, -inf }
0x213f   :  { %7270 = vmax.xlane.f32.xlu0 %v7269_v56 }
0x2141   :  { %v6947_v43 = vpop.f32.mrb[110].mxu1 }
0x2142   :  { %v7250_v57 = vmul.f32 0.125, %v6947_v43  ;;  %v9857_v47 = vpop.f32.mrb[111].mxu1  ;;  %v7021_v58 = vpop.f32.mrb[76].mxu0 }
0x2143   :  { %v7251_v59 = vmul.f32 0.125, %v7021_v58  ;;  %v9862_v60 = vpop.f32.mrb[77].mxu0 }
0x2144   :  { %v7258_v61 = vadd.f32 %v7250_v57, %v10667_v9 }
0x2145   :  { %v7259_v62 = vadd.f32 %v7251_v59, %v10667_v9  ;;  %v7095_v63 = vpop.f32.mrb[112].mxu1 }
0x2146   :  { %v7252_v5 = vmul.f32 0.125, %v7095_v63  ;;  %v9867_v0 = vpop.f32.mrb[113].mxu1  ;;  %v7272_v1 = vsel %vm995_vm4, %v7258_v61, -inf }
0x2147   :  { %7273 = vmax.xlane.f32.xlu0 %v7272_v1  ;;  %v7275_v2 = vsel %vm995_vm4, %v7259_v62, -inf }
0x2148   :  { %v7260_v3 = vadd.f32 %v7252_v5, %v10667_v9  ;;  %7276 = vmax.xlane.f32.xlu1 %v7275_v2 }
0x2149   :  { %v7243_v4 = vpop.f32.mrb[114].mxu1 }
0x214a   :  { %v7254_v6 = vmul.f32 0.125, %v7243_v4  ;;  %v7169_v8 = vpop.f32.mrb[78].mxu0  ;;  %v9877_v10 = vpop.f32.mrb[115].mxu1  ;;  %v7278_v11 = vsel %vm995_vm4, %v7260_v3, -inf }
0x214b   :  { %v7253_v13 = vmul.f32 0.125, %v7169_v8  ;;  %v9872_v14 = vpop.f32.mrb[79].mxu0  ;;  %7279 = vmax.xlane.f32.xlu0 %v7278_v11 }
0x214c   :  { %v7262_v15 = vadd.f32 %v7254_v6, %v10667_v9 }
0x214d   :  { %v7261_v18 = vadd.f32 %v7253_v13, %v10667_v9 }
0x214e   :  { %v7284_v19 = vsel %vm995_vm4, %v7262_v15, -inf }
0x214f   :  { %7285 = vmax.xlane.f32.xlu0 %v7284_v19  ;;  %v7281_v25 = vsel %vm995_vm4, %v7261_v18, -inf }
0x2150   :  { %7282 = vmax.xlane.f32.xlu1 %v7281_v25 }
0x2159   :  { %v7265_v22 = vpop.xlane.xlu1 %7264 }
0x215a   :  { %v7287_v23 = vsub.f32 %v7255_v48, %v7265_v22 }
0x215c   :  { %v7295_v24 = vmul.f32 1.442695, %v7287_v23 }
0x215d   :  { %v7268_v21 = vpop.xlane.xlu0 %7267 }
0x215e   :  { %v7288_v9 = vsub.f32 %v7256_v42, %v7268_v21 }
0x2160   :  { %v7297_v20 = vmul.f32 1.442695, %v7288_v9 }
0x2161   :  { %6637 = vrot.lane.b32.xlu1 %v11655_v12, %s12009_s26 }
0x2162   :  { %10343 = vpow2.f32 %v7297_v20 }
0x2163   :  { %10345 = vpow2.f32 %v7295_v24 }
0x2165   :  { %6643 = vrot.lane.b32.xlu1 %v11655_v12, %s12010_s19  ;;  %6639 = vrot.lane.b32.xlu0 %v11658_v17, %s12009_s26 }
0x2169   :  { %6645 = vrot.lane.b32.xlu1 %v11658_v17, %s12010_s19  ;;  %s12013_s19 = sld [smem:[#allocation9_spill]] }
0x216c   :  { %v10344_v26 = vpop.eup %10343 }
0x216d   :  { %v7314_v29 = vsel %vm995_vm4, %v10344_v26, 0.0  ;;  %v10346_v30 = vpop.eup %10345 }
0x216e   :  { %v7311_v32 = vsel %vm995_vm4, %v10346_v30, 0.0 }
0x2184   :  { %7315 = vadd.xlane.f32.xlu0 %v7314_v29 }
0x218d   :  { %7312 = vadd.xlane.f32.xlu1 %v7311_v32 }
0x21cc   :  { %v7271_v34 = vpop.xlane.xlu0 %7270 }
0x21cd   :  { %v7289_v36 = vsub.f32 %v7257_v55, %v7271_v34 }
0x21cf   :  { %v7299_v54 = vmul.f32 1.442695, %v7289_v36 }
0x21d1   :  { %10347 = vpow2.f32 %v7299_v54  ;;  %v10159_v54 = vld [vmem:[%s11968_s6 + $0x60] sm:$0xff]  }
0x21d4   :  { %v7274_v39 = vpop.xlane.xlu0 %7273 }
0x21d5   :  { %v7290_v40 = vsub.f32 %v7258_v61, %v7274_v39  ;;  %v7277_v33 = vpop.xlane.xlu1 %7276 }
0x21d6   :  { %v7291_v35 = vsub.f32 %v7259_v62, %v7277_v33 }
0x21d7   :  { %v7301_v31 = vmul.f32 1.442695, %v7290_v40 }
0x21d8   :  { %v7303_v45 = vmul.f32 1.442695, %v7291_v35  ;;  %v7280_v48 = vpop.xlane.xlu0 %7279 }
0x21d9   :  { %10349 = vpow2.f32 %v7301_v31  ;;  %v7292_v38 = vsub.f32 %v7260_v3, %v7280_v48  ;;  %v10161_v48 = vld [vmem:[%s11968_s6 + $0x70] sm:$0xff]  }
0x21da   :  { %10351 = vpow2.f32 %v7303_v45  ;;  %v10160_v45 = vld [vmem:[%s11968_s6 + $0x68] sm:$0xff]  }
0x21db   :  { %v10348_v49 = vpop.eup %10347  ;;  %v7305_v50 = vmul.f32 1.442695, %v7292_v38 }
0x21dc   :  { %v7286_v37 = vpop.xlane.xlu0 %7285  ;;  %v7317_v42 = vsel %vm995_vm4, %v10348_v49, 0.0 }
0x21dd   :  { %10353 = vpow2.f32 %v7305_v50  ;;  %v7294_v52 = vsub.f32 %v7262_v15, %v7286_v37  ;;  %v7283_v51 = vpop.xlane.xlu1 %7282  ;;  %7318 = vadd.xlane.f32.xlu1 %v7317_v42 }
0x21de   :  { %v7293_v53 = vsub.f32 %v7261_v18, %v7283_v51 }
0x21df   :  { %v7309_v46 = vmul.f32 1.442695, %v7294_v52 }
0x21e0   :  { %v7307_v55 = vmul.f32 1.442695, %v7293_v53  ;;  %v6640_v0 = vpop.permute.xlu0 %6639 }
0x21e1   :  { %10355 = vpow2.f32 %v7309_v46  ;;  %v6638_v5 = vpop.permute.xlu1 %6637 }
0x21e2   :  { %10357 = vpow2.f32 %v7307_v55 }
0x21e3   :  { %v10350_v56 = vpop.eup %10349 }
0x21e4   :  { %v10352_v43 = vpop.eup %10351  ;;  %v7320_v57 = vsel %vm995_vm4, %v10350_v56, 0.0 }
0x21e5   :  { %7321 = vadd.xlane.f32.xlu0 %v7320_v57  ;;  %v7323_v47 = vsel %vm995_vm4, %v10352_v43, 0.0  ;;  %v6644_v1 = vpop.permute.xlu1 %6643 }
0x21e6   :  { %7324 = vadd.xlane.f32.xlu1 %v7323_v47 }
0x21e7   :  { %v10354_v58 = vpop.eup %10353 }
0x21e8   :  { %v7326_v59 = vsel %vm995_vm4, %v10354_v58, 0.0 }
0x21e9   :  { %7327 = vadd.xlane.f32.xlu0 %v7326_v59  ;;  %v6646_v3 = vpop.permute.xlu1 %6645 }
0x21eb   :  { %v11745_v60 = vpop.eup %10355 }
0x21ec   :  { %v11747_v61 = vpop.eup %10357  ;;  %v7332_v62 = vsel %vm995_vm4, %v11745_v60, 0.0 }
0x21ed   :  { %7333 = vadd.xlane.f32.xlu0 %v7332_v62  ;;  %v7329_v63 = vsel %vm995_vm4, %v11747_v61, 0.0 }
0x21ee   :  { %7330 = vadd.xlane.f32.xlu1 %v7329_v63 }
0x21ff   :  { %6649 = vrot.lane.b32.xlu1 %v11655_v12, %s12011_s20 }
0x2203   :  { %6651 = vrot.lane.b32.xlu0 %v11658_v17, %s12011_s20 }
0x2211   :  { %v7316_v2 = vpop.xlane.xlu0 %7315 }
0x2212   :  { %10359 = vrcp.f32 %v7316_v2 }
0x221a   :  { %v7313_v4 = vpop.xlane.xlu1 %7312 }
0x221b   :  { %10361 = vrcp.f32 %v7313_v4 }
0x221c   :  { %v10360_v6 = vpop.eup %10359 }
0x221d   :  { %v7338_v8 = vmul.f32 %v10360_v6, %v10344_v26 }
0x221f   :  { %9886 = vmatmul.mubr.msk.f32.vlgmr.msra.gmra.mrb[116].mxu1 %vm995_vm4, %v7338_v8 }
0x2220   :  { %9894 = vmatpush3.msra.mxu1 %v6640_v0  ;;  %9895 = vmatprep.mubr.msk.f32.mxu1 %vm10418_vm1, %v10417_v16 }
0x2221   :  { %9903 = vmatprep.subr.mxu1 %v10417_v16 }
0x2225   :  { %v10362_v12 = vpop.eup %10361 }
0x2226   :  { %v7336_v17 = vmul.f32 %v10362_v12, %v10346_v30 }
0x2228   :  { %9881 = vmatmul.mubr.msk.f32.vlgmr.msra.gmra.mrb[80].mxu0 %vm995_vm4, %v7336_v17 }
0x2229   :  { %9889 = vmatpush3.msra.mxu0 %v6638_v5  ;;  %9890 = vmatprep.mubr.msk.f32.mxu0 %vm10418_vm1, %v10417_v16 }
0x222a   :  { %9898 = vmatprep.subr.mxu0 %v10417_v16 }
0x226a   :  { %v7319_v10 = vpop.xlane.xlu1 %7318 }
0x226b   :  { %10363 = vrcp.f32 %v7319_v10  ;;  %v9031_v10 = vld [vmem:[%s11969_s7 + $0x3] ss:$0 sm:$0xff] }
0x2272   :  { %v7322_v11 = vpop.xlane.xlu0 %7321 }
0x2273   :  { %10365 = vrcp.f32 %v7322_v11  ;;  %v7325_v13 = vpop.xlane.xlu1 %7324 }
0x2274   :  { %10367 = vrcp.f32 %v7325_v13 }
0x2275   :  { %v10364_v14 = vpop.eup %10363 }
0x2276   :  { %v7340_v15 = vmul.f32 %v10364_v14, %v10348_v49  ;;  %v7328_v18 = vpop.xlane.xlu0 %7327  ;;  %v10162_v49 = vld [vmem:[%s11968_s6 + $0x78] sm:$0xff]  }
0x2277   :  { %10369 = vrcp.f32 %v7328_v18 }
0x2278   :  { %9891 = vmatmul.mubr.msk.f32.vlgmr.msra.gmra.mrb[82].mxu0 %vm995_vm4, %v7340_v15 }
0x2279   :  { %9899 = vmatpush3.msra.mxu0 %v6644_v1  ;;  %9900 = vmatprep.mubr.msk.f32.mxu0 %vm10418_vm1, %v10417_v16 }
0x227a   :  { %v7334_v19 = vpop.xlane.xlu0 %7333  ;;  %9908 = vmatprep.subr.mxu0 %v10417_v16 }
0x227b   :  { %10371 = vrcp.f32 %v7334_v19  ;;  %v7331_v25 = vpop.xlane.xlu1 %7330 }
0x227c   :  { %10373 = vrcp.f32 %v7331_v25 }
0x227d   :  { %v10366_v21 = vpop.eup %10365 }
0x227e   :  { %v10368_v9 = vpop.eup %10367  ;;  %v7342_v20 = vmul.f32 %v10366_v21, %v10350_v56  ;;  %v6652_v29 = vpop.permute.xlu0 %6651 }
0x227f   :  { %v7344_v22 = vmul.f32 %v10368_v9, %v10352_v43  ;;  %v6650_v23 = vpop.permute.xlu1 %6649 }
0x2280   :  { %9896 = vmatmul.mubr.msk.f32.vlgmr.msra.gmra.mrb[118].mxu1 %vm995_vm4, %v7342_v20 }
0x2281   :  { %v10370_v24 = vpop.eup %10369  ;;  %9904 = vmatpush3.msra.mxu1 %v6646_v3  ;;  %9901 = vmatmul.mubr.msk.f32.vlgmr.msra.gmra.mrb[84].mxu0 %vm995_vm4, %v7344_v22 }
0x2282   :  { %v7346_v26 = vmul.f32 %v10370_v24, %v10354_v58  ;;  %9909 = vmatpush3.msra.mxu0 %v6650_v23  ;;  %9905 = vmatprep.mubr.msk.f32.mxu1 %vm10418_vm1, %v10417_v16 }
0x2283   :  { %9913 = vmatprep.subr.mxu1 %v10417_v16  ;;  %9910 = vmatprep.mubr.msk.f32.mxu0 %vm10418_vm1, %v10417_v16 }
0x2284   :  { %9906 = vmatmul.mubr.msk.f32.vlgmr.msra.gmra.mrb[120].mxu1 %vm995_vm4, %v7346_v26  ;;  %9918 = vmatprep.subr.bf16.mxu0 %v10417_v16 }
0x2285   :  { %v10372_v30 = vpop.eup %10371  ;;  %9914 = vmatpush3.msra.mxu1 %v6652_v29  ;;  %9915 = vmatprep.mubr.msk.f32.mxu1 %vm10418_vm1, %v10417_v16 }
0x2286   :  { %v10374_v32 = vpop.eup %10373  ;;  %v7350_v34 = vmul.f32 %v10372_v30, %v11745_v60 }
0x2287   :  { %v7348_v36 = vmul.f32 %v10374_v32, %v11747_v61 }
0x2288   :  { %9916 = vmatmul.mubr.msk.f32.vlgmr.msra.gmra.mrb[122].mxu1 %vm995_vm4, %v7350_v34 }
0x2289   :  { %9911 = vmatmul.mubr.msk.f32.vlgmr.msra.gmra.mrb[86].mxu0 %vm995_vm4, %v7348_v36  ;;  %8197 = vmatprep.mubr.bf16.mxu1 %v10426_v7  ;;  %v10165_v36 = vld [vmem:[%s11972_s10 + $0xc4] ss:$8 sps:$4 sm:$0xff]  }
0x228a   :  { %9926 = vmatprep.mubr.msk.bf16.mxu0 %vm10418_vm1, %v10417_v16  ;;  %9919 = vmatpush3.bf16.msra.mxu0 %v10159_v54  ;;  %v10163_v54 = vld [vmem:[%s11972_s10 + $0xc0] ss:$8 sps:$4 sm:$0xff]  }
0x228b   :  { %9920 = vmatprep.subr.bf16.mxu0 %v10417_v16  ;;  %8165 = vmatprep.subr.bf16.mxu1 %v10165_v36 }
0x228c   :  { %8166 = vmatpush1.bf16.msra.mxu1 %v10163_v54 }
0x228e   :  { %9921 = vmatpush3.bf16.msra.mxu0 %v10160_v45  ;;  %v10174_v45 = vld [vmem:[%s11972_s10 + $0xf4] ss:$8 sps:$4 sm:$0xff]  }
0x228f   :  { %9922 = vmatprep.subr.bf16.mxu0 %v10417_v16 }
0x2292   :  { %9923 = vmatpush3.bf16.msra.mxu0 %v10161_v48 }
0x2293   :  { %9924 = vmatprep.subr.bf16.mxu0 %v10417_v16 }
0x2296   :  { %9925 = vmatpush3.bf16.msra.mxu0 %v10162_v49 }
0x22f2   :  { %v7493_v39 = vpop.f32.mrb[116].mxu1 }
0x22f3   :  { %v9887_v40 = vpop.f32.mrb[117].mxu1 }
0x22f4   :  { %v10166_v40 = vld [vmem:[%s11972_s10 + $0xd0] ss:$8 sps:$4 sm:$0xff]  }
0x22fb   :  { %v7420_v33 = vpop.f32.mrb[80].mxu0 }
0x22fc   :  { %v9882_v35 = vpop.f32.mrb[81].mxu0 }
0x22fd   :  { %v10169_v35 = vld [vmem:[%s11972_s10 + $0xe0] ss:$8 sps:$4 sm:$0xff]  }
0x234b   :  { %v7566_v31 = vpop.f32.mrb[82].mxu0 }
0x234c   :  { %v9892_v7 = vpop.f32.mrb[83].mxu0 }
0x2353   :  { %v7639_v38 = vpop.f32.mrb[118].mxu1 }
0x2354   :  { %v10000_v50 = vpack.i.bf16 %v7639_v38, %v7566_v31  ;;  %v9897_v37 = vpop.f32.mrb[119].mxu1  ;;  %v7712_v42 = vpop.f32.mrb[84].mxu0  ;;  %v10172_v31 = vld [vmem:[%s11972_s10 + $0xf0] ss:$8 sps:$4 sm:$0xff]  }
0x2355   :  { %v9902_v52 = vpop.f32.mrb[85].mxu0 }
0x2356   :  { %10001 = vrot.lane.b32.xlu1 %v10000_v50, %s12006_s27 }
0x2357   :  { %v7785_v51 = vpop.f32.mrb[120].mxu1 }
0x2358   :  { %v10005_v53 = vpack.i.bf16 %v7785_v51, %v7712_v42  ;;  %v9907_v46 = vpop.f32.mrb[121].mxu1  ;;  %v9039_v51 = vld [vmem:[%s11970_s8 + $0x3] ss:$0 sm:$0xff] }
0x235a   :  { %10006 = vrot.lane.b32.xlu0 %v10005_v53, %s12007_s28 }
0x235b   :  { %v7931_v55 = vpop.f32.mrb[122].mxu1 }
0x235c   :  { %v7858_v56 = vpop.f32.mrb[86].mxu0  ;;  %v9917_v43 = vpop.f32.mrb[123].mxu1 }
0x235d   :  { %v10010_v57 = vpack.i.bf16 %v7931_v55, %v7858_v56  ;;  %v9912_v47 = vpop.f32.mrb[87].mxu0  ;;  %v9040_v56 = vld [vmem:[%s11971_s9 + $0x3] ss:$0 sm:$0xff] }
0x235f   :  { %10011 = vrot.lane.b32.xlu1 %v10010_v57, %s12008_s30 }
0x23c8   :  { %v10002_v58 = vpop.permute.xlu1 %10001 }
0x23c9   :  { %v10004_v60 = vunpack.i.h.bf16 %v10002_v58  ;;  %v10003_v61 = vunpack.i.l.bf16 %v10002_v58 }
0x23cb   :  { %v7960_v0 = vsel %vm386_vm2, %v7493_v39, %v10004_v60  ;;  %v7959_v1 = vsel %vm386_vm2, %v7420_v33, %v10003_v61  ;;  %v10168_v39 = vld [vmem:[%s11972_s10 + $0xd4] ss:$8 sps:$4 sm:$0xff]   ;;  %v10171_v33 = vld [vmem:[%s11972_s10 + $0xe4] ss:$8 sps:$4 sm:$0xff]  }
0x23cc   :  { %v10007_v59 = vpop.permute.xlu0 %10006  ;;  %8167 = vmatprep.subr.bf16.mxu1 %v10168_v39  ;;  %v10176_v60 = vld [vmem:[%s11974_s12 + $0x180] sm:$0xff]   ;;  %v10177_v61 = vld [vmem:[%s11974_s12 + $0x1c8] sm:$0xff]  }
0x23cd   :  { %v10009_v62 = vunpack.i.h.bf16 %v10007_v59  ;;  %v10008_v63 = vunpack.i.l.bf16 %v10007_v59  ;;  %8168 = vmatpush1.bf16.msra.mxu1 %v10166_v40  ;;  %v10175_v59 = vld [vmem:[%s11974_s12 + $0x1c0] sm:$0xff]  }
0x23ce   :  { %8169 = vmatprep.subr.bf16.mxu1 %v10171_v33  ;;  %9391 = vmatprep.subr.bf16.mxu0 %v10175_v59 }
0x23cf   :  { %v7962_v4 = vsel %vm1694_vm5, %v7960_v0, %v10009_v62  ;;  %v7961_v6 = vsel %vm1694_vm5, %v7959_v1, %v10008_v63  ;;  %v10178_v62 = vld [vmem:[%s11974_s12 + $0x188] sm:$0xff]   ;;  %v10179_v63 = vld [vmem:[%s11974_s12 + $0x1d0] sm:$0xff]   ;;  %v10181_v0 = vld [vmem:[%s11974_s12 + $0x1d8] sm:$0xff]  }
0x23d0   :  { %v10182_v1 = vld [vmem:[%s11974_s12 + $0x198] sm:$0xff]  }
0x23d1   :  { %v10012_v5 = vpop.permute.xlu1 %10011  ;;  %8170 = vmatpush1.bf16.msra.mxu1 %v10169_v35 }
0x23d2   :  { %v10014_v2 = vunpack.i.h.bf16 %v10012_v5  ;;  %v10013_v3 = vunpack.i.l.bf16 %v10012_v5  ;;  %8171 = vmatprep.subr.bf16.mxu1 %v10174_v45  ;;  %v10180_v5 = vld [vmem:[%s11974_s12 + $0x190] sm:$0xff]  }
0x23d4   :  { %v7964_v8 = vsel %vm1697_vm6, %v7962_v4, %v10014_v2  ;;  %v7963_v12 = vsel %vm1697_vm6, %v7961_v6, %v10013_v3  ;;  %v10183_v2 = vld [vmem:[%s11974_s12 + $0x1e0] sm:$0xff]   ;;  %v10185_v4 = vld [vmem:[%s11974_s12 + $0x1e8] sm:$0xff]  }
0x23d5   :  { %v7965_v17 = vpack.c.bf16 %v7964_v8, %v7963_v12  ;;  %8172 = vmatpush1.bf16.msra.mxu1 %v10172_v31  ;;  %v10184_v3 = vld [vmem:[%s11974_s12 + $0x1a0] sm:$0xff]   ;;  %v10186_v6 = vld [vmem:[%s11974_s12 + $0x1a8] sm:$0xff]   ;;  %v10187_v8 = vld [vmem:[%s11974_s12 + $0x1f0] sm:$0xff]  }
0x23d6   :  { %9930 = vmatprep.subr.bf16.mxu1 %v10417_v16  ;;  %v10188_v12 = vld [vmem:[%s11974_s12 + $0x1b0] sm:$0xff]  }
0x23d7   :  { %9927 = vmatmul.mubr.msk.bf16.vlgmr.msra.gmra.mrb[88].mxu0 %vm71_vm0, %v7965_v17  ;;  %v10189_v17 = vld [vmem:[%s11974_s12 + $0x1f8] sm:$0xff]  }
0x23d8   :  { %9392 = vmatpush3.bf16.msra.mxu0 %v10176_v60 }
0x23d9   :  { %9393 = vmatprep.subr.bf16.mxu0 %v10177_v61 }
0x23dc   :  { %9394 = vmatpush3.bf16.msra.mxu0 %v10178_v62 }
0x23dd   :  { %9395 = vmatprep.subr.bf16.mxu0 %v10179_v63 }
0x23e0   :  { %9396 = vmatpush3.bf16.msra.mxu0 %v10180_v5  ;;  %v9092_v5 = vld [vmem:[%s11975_s13 + $0x3] ss:$0 sm:$0xff] }
0x23e1   :  { %9397 = vmatprep.subr.bf16.mxu0 %v10181_v0 }
0x23e4   :  { %9398 = vmatpush3.bf16.msra.mxu0 %v10182_v1 }
0x23e5   :  { %9399 = vmatprep.subr.bf16.mxu0 %v10183_v2 }
0x23e8   :  { %9400 = vmatpush3.bf16.msra.mxu0 %v10184_v3 }
0x23e9   :  { %9401 = vmatprep.subr.bf16.mxu0 %v10185_v4 }
0x23ec   :  { %9402 = vmatpush3.bf16.msra.mxu0 %v10186_v6 }
0x23ed   :  { %9403 = vmatprep.subr.bf16.mxu0 %v10187_v8 }
0x23f0   :  { %9404 = vmatpush3.bf16.msra.mxu0 %v10188_v12 }
0x23f1   :  { %9405 = vmatprep.subr.bf16.mxu0 %v10189_v17 }
0x24aa   :  { %v8044_v11 = vpop.f32.mrb[88].mxu0 }
0x24ab   :  { %v8045_v13 = vadd.f32 %v9031_v10, %v8044_v11  ;;  %v9928_v14 = vpop.f32.mrb[89].mxu0  ;;  %v9049_v11 = vld [vmem:[%s11973_s11 + $0x6] sm:$0x3] }
0x24ac   :  { %v8047_v15 = vpop.f32.mrb[90].mxu0  ;;  %v8119_v14 = vrot.slane %v9049_v11, %v10881_v44 }
0x24ad   :  { %v11816_v18 = vadd.f32 %v8045_v13, %v11579_v27  ;;  %v8048_v19 = vadd.f32 %v9031_v10, %v8047_v15  ;;  %v9929_v25 = vpop.f32.mrb[91].mxu0  ;;  %v10190_v10 = vld [vmem:[%s11974_s12 + $0x1b8] sm:$0xff]   ;;  %v8115_v13 = vrot.slane %v9049_v11, %v10875_v41 }
0x24ae   :  { %9406 = vmatpush3.bf16.msra.mxu0 %v10190_v10 }
0x24af   :  { %v11819_v21 = vadd.f32 %v8048_v19, %v11582_v28  ;;  %v8057_v9 = vsel %vm71_vm0, %v11816_v18, 0.0 }
0x24b0   :  { %8058 = vadd.xlane.f32.xlu0 %v8057_v9 }
0x24b1   :  { %v8060_v20 = vsel %vm71_vm0, %v11819_v21, 0.0 }
0x24b2   :  { %8061 = vadd.xlane.f32.xlu1 %v8060_v20 }
0x253d   :  { %v8059_v22 = vpop.xlane.xlu0 %8058 }
0x253e   :  { %v8063_v23 = vmul.f32 0.015625, %v8059_v22 }
0x253f   :  { %v8062_v24 = vpop.xlane.xlu1 %8061 }
0x2540   :  { %v8065_v26 = vsub.f32 %v11816_v18, %v8063_v23  ;;  %v8064_v27 = vmul.f32 0.015625, %v8062_v24 }
0x2542   :  { %v8066_v29 = vsub.f32 %v11819_v21, %v8064_v27  ;;  %v8067_v30 = vmul.f32 %v8065_v26, %v8065_v26 }
0x2544   :  { %v8069_v28 = vsel %vm71_vm0, %v8067_v30, 0.0  ;;  %v8068_v32 = vmul.f32 %v8066_v29, %v8066_v29 }
0x2545   :  { %8070 = vadd.xlane.f32.xlu0 %v8069_v28 }
0x2546   :  { %v8072_v34 = vsel %vm71_vm0, %v8068_v32, 0.0 }
0x2549   :  { %8073 = vadd.xlane.f32.xlu0 %v8072_v34 }
0x25d2   :  { %v8071_v7 = vpop.xlane.xlu0 %8070 }
0x25d3   :  { %v8075_v48 = vmul.f32 0.015625, %v8071_v7 }
0x25d5   :  { %v8077_v38 = vadd.f32 1e-05, %v8075_v48 }
0x25d6   :  { %v8074_v49 = vpop.xlane.xlu0 %8073 }
0x25d7   :  { %10375 = vrsqrt.f32 %v8077_v38  ;;  %v8076_v50 = vmul.f32 0.015625, %v8074_v49 }
0x25d9   :  { %v8078_v37 = vadd.f32 1e-05, %v8076_v50 }
0x25db   :  { %10377 = vrsqrt.f32 %v8078_v37 }
0x25e1   :  { %v10376_v42 = vpop.eup %10375 }
0x25e2   :  { %v8081_v52 = vmul.f32 %v10376_v42, %v8065_v26 }
0x25e4   :  { %v8089_v46 = vmul.f32 %v9039_v51, %v8081_v52 }
0x25e5   :  { %v10378_v53 = vpop.eup %10377 }
0x25e6   :  { %v8082_v55 = vmul.f32 %v10378_v53, %v8066_v29  ;;  %v8097_v57 = vadd.f32 %v9040_v56, %v8089_v46 }
0x25e8   :  { %v8090_v43 = vmul.f32 %v9039_v51, %v8082_v55 }
0x25ea   :  { %v8098_v47 = vadd.f32 %v9040_v56, %v8090_v43 }
0x25ec   :  { %v8099_v58 = vpack.c.bf16 %v8098_v47, %v8097_v57 }
0x25ee   :  { %9058 = vmatmul.mubr.msk.bf16.vlgmr.msra.gmra.mrb[124].mxu1 %vm71_vm0, %v8099_v58 }
0x25ef   :  { %9938 = vmatprep.mubr.msk.bf16.mxu1 %vm10418_vm1, %v10417_v16 }
0x26c1   :  { %v8199_v15 = vpop.f32.mrb[124].mxu1 }
0x26c2   :  { %v8200_v19 = vadd.f32 %v8199_v15, %v8115_v13  ;;  %v8201_v25 = vpop.f32.mrb[125].mxu1 }
0x26c3   :  { %v8202_v9 = vadd.f32 %v8201_v25, %v8119_v14  ;;  %v8203_v20 = vpop.f32.mrb[126].mxu1 }
0x26c4   :  { %v8212_v22 = vmul.f32 0.044715, %v8200_v19  ;;  %v8204_v23 = vadd.f32 %v8203_v20, %v8115_v13  ;;  %v8205_v24 = vpop.f32.mrb[127].mxu1  ;;  %v8208_v53 = vmul.f32 0.5, %v8200_v19 }
0x26c5   :  { %v8213_v26 = vmul.f32 0.044715, %v8202_v9  ;;  %v8206_v27 = vadd.f32 %v8205_v24, %v8119_v14  ;;  %v8209_v56 = vmul.f32 0.5, %v8202_v9  ;;  %v10192_v24 = vld [vmem:[%s11978_s16 + $0x8] sm:$0xff]  }
0x26c6   :  { %v8216_v29 = vmul.f32 %v8212_v22, %v8200_v19  ;;  %v8214_v30 = vmul.f32 0.044715, %v8204_v23  ;;  %v8210_v46 = vmul.f32 0.5, %v8204_v23 }
0x26c7   :  { %v8217_v28 = vmul.f32 %v8213_v26, %v8202_v9  ;;  %v8215_v32 = vmul.f32 0.044715, %v8206_v27  ;;  %v8211_v43 = vmul.f32 0.5, %v8206_v27  ;;  %v10193_v26 = vld [vmem:[%s11978_s16 + $0x10] sm:$0xff]  }
0x26c8   :  { %v8220_v34 = vmul.f32 %v8216_v29, %v8200_v19  ;;  %v8218_v36 = vmul.f32 %v8214_v30, %v8204_v23 }
0x26c9   :  { %v8221_v54 = vmul.f32 %v8217_v28, %v8202_v9  ;;  %v8219_v41 = vmul.f32 %v8215_v32, %v8206_v27 }
0x26ca   :  { %v8224_v39 = vadd.f32 %v8220_v34, %v8200_v19  ;;  %v8222_v44 = vmul.f32 %v8218_v36, %v8204_v23 }
0x26cb   :  { %v8223_v40 = vmul.f32 %v8219_v41, %v8206_v27  ;;  %v8225_v33 = vadd.f32 %v8221_v54, %v8202_v9  ;;  %v9109_v41 = vld [vmem:[%s11976_s14] ss:$0 sm:$0xff]  ;;  %s10427_s14 = smov [#allocation2]  }
0x26cc   :  { %v8228_v35 = vmul.f32 0.7978846, %v8224_v39  ;;  %v8226_v31 = vadd.f32 %v8222_v44, %v8204_v23  ;;  %s8561_s20 = sshll.u32 %s10427_s14, 4  ;;  %s8562_s20 = int_to_ptr.vmem [resolvable:$true] %s8561_s20 }
0x26cd   :  { %v8227_v45 = vadd.f32 %v8223_v40, %v8206_v27  ;;  %v8229_v7 = vmul.f32 0.7978846, %v8225_v33  ;;  %v10194_v27 = vld [vmem:[%s11978_s16 + $0x18] sm:$0xff]   ;;  %s10393_s23 = scalar_lea.vmem %s8562_s20, 256  ;;  %p10398_p1 = scmp.lt.s32.totalorder %s8562_s20, %s8562_s20 }
0x26ce   :  { %10379 = vtanh.f32 %v8228_v35  ;;  %v8230_v48 = vmul.f32 0.7978846, %v8226_v31  ;;  %p10394_p0 = scmp.ne.s32.totalorder %s8562_s20, %s10393_s23  ;;  %p10399_p2 = scmp.lt.s32.totalorder %s10393_s23, %s10393_s23 }
0x26cf   :  { %v8231_v38 = vmul.f32 0.7978846, %v8227_v45  ;;  %10381 = vtanh.f32 %v8229_v7 }
0x26d0   :  { %10383 = vtanh.f32 %v8230_v48  ;;  %v9111_v48 = vld [vmem:[%s12013_s19] ss:$0 sm:$0xff]  ;;  %p10400_p3 = por %p10399_p2, %p10398_p1 }
0x26d1   :  { %10385 = vtanh.f32 %v8231_v38 }
0x26d2   :  { %p10401_p4 = pnand %p10400_p3, %p10394_p0 }
0x26d8   :  { %v10380_v49 = vpop.eup %10379 }
0x26d9   :  { %v10382_v50 = vpop.eup %10381  ;;  %v8236_v37 = vadd.f32 1.0, %v10380_v49 }
0x26da   :  { %v10384_v42 = vpop.eup %10383  ;;  %v8237_v52 = vadd.f32 1.0, %v10382_v50 }
0x26db   :  { %v10386_v51 = vpop.eup %10385  ;;  %v8238_v55 = vadd.f32 1.0, %v10384_v42  ;;  %v8240_v47 = vmul.f32 %v8236_v37, %v8208_v53 }
0x26dc   :  { %v8239_v57 = vadd.f32 1.0, %v10386_v51  ;;  %v8241_v59 = vmul.f32 %v8237_v52, %v8209_v56 }
0x26dd   :  { %v8242_v58 = vmul.f32 %v8238_v55, %v8210_v46 }
0x26de   :  { %v8243_v60 = vmul.f32 %v8239_v57, %v8211_v43 }
0x26df   :  { %v8244_v61 = vpack.c.bf16 %v8242_v58, %v8240_v47 }
0x26e0   :  { %v8245_v62 = vpack.c.bf16 %v8243_v60, %v8241_v59 }
0x26e2   :  { %8415 = vmatprep.mubr.bf16.mxu0 %v8245_v62 }
0x26e3   :  { %8416 = vmatmul.mubr.bf16.vlgmr.msra.gmra.mrb[92].mxu0 %v8244_v61 }
0x27b6   :  { %v9407_v63 = vpop.f32.mrb[92].mxu0 }
0x27b7   :  { %v9408_v0 = vpop.f32.mrb[93].mxu0 }
0x27b8   :  { %v9409_v1 = vadd.f32 %v9408_v0, %v9407_v63  ;;  %v9410_v2 = vpop.f32.mrb[94].mxu0 }
0x27b9   :  { %v9411_v3 = vpop.f32.mrb[95].mxu0 }
0x27ba   :  { %v8418_v4 = vadd.f32 %v9409_v1, %v9092_v5  ;;  %v9412_v6 = vadd.f32 %v9411_v3, %v9410_v2 }
0x27bc   :  { %v8421_v8 = vadd.f32 %v9412_v6, %v9092_v5  ;;  %v8424_v12 = vadd.f32 %v8418_v4, %v11816_v18 }
0x27be   :  { %v8428_v17 = vsel %vm71_vm0, %v8424_v12, 0.0  ;;  %v8425_v10 = vadd.f32 %v8421_v8, %v11819_v21  ;;  %v10191_v21 = vld [vmem:[%s11978_s16] sm:$0xff]  }
0x27bf   :  { %8429 = vadd.xlane.f32.xlu0 %v8428_v17  ;;  %9931 = vmatpush3.bf16.msra.mxu1 %v10191_v21 }
0x27c0   :  { %v8431_v11 = vsel %vm71_vm0, %v8425_v10, 0.0  ;;  %9932 = vmatprep.subr.bf16.mxu1 %v10417_v16 }
0x27c1   :  { %8432 = vadd.xlane.f32.xlu1 %v8431_v11 }
0x27c3   :  { %9933 = vmatpush3.bf16.msra.mxu1 %v10192_v24 }
0x27c4   :  { %9934 = vmatprep.subr.bf16.mxu1 %v10417_v16 }
0x27c7   :  { %9935 = vmatpush3.bf16.msra.mxu1 %v10193_v26 }
0x27c8   :  { %9936 = vmatprep.subr.bf16.mxu1 %v10417_v16  ;;  %v9110_v16 = vld [vmem:[%s12012_s0] ss:$0 sm:$0xff] }
0x27cb   :  { %9937 = vmatpush3.bf16.msra.mxu1 %v10194_v27 }
0x284c   :  { %v8430_v13 = vpop.xlane.xlu0 %8429 }
0x284d   :  { %v8434_v14 = vmul.f32 0.015625, %v8430_v13 }
0x284e   :  { %v8433_v15 = vpop.xlane.xlu1 %8432 }
0x284f   :  { %v8436_v19 = vsub.f32 %v8424_v12, %v8434_v14  ;;  %v8435_v25 = vmul.f32 0.015625, %v8433_v15 }
0x2851   :  { %v8437_v9 = vsub.f32 %v8425_v10, %v8435_v25  ;;  %v8438_v20 = vmul.f32 %v8436_v19, %v8436_v19 }
0x2853   :  { %v8440_v22 = vsel %vm71_vm0, %v8438_v20, 0.0  ;;  %v8439_v23 = vmul.f32 %v8437_v9, %v8437_v9 }
0x2854   :  { %8441 = vadd.xlane.f32.xlu0 %v8440_v22 }
0x2855   :  { %v8443_v18 = vsel %vm71_vm0, %v8439_v23, 0.0 }
0x2856   :  { %8444 = vadd.xlane.f32.xlu1 %v8443_v18 }
0x28e1   :  { %v8442_v29 = vpop.xlane.xlu0 %8441 }
0x28e2   :  { %v8446_v30 = vmul.f32 0.015625, %v8442_v29 }
0x28e3   :  { %v8445_v28 = vpop.xlane.xlu1 %8444 }
0x28e4   :  { %v8448_v32 = vadd.f32 1e-05, %v8446_v30  ;;  %v8447_v34 = vmul.f32 0.015625, %v8445_v28 }
0x28e6   :  { %10387 = vrsqrt.f32 %v8448_v32  ;;  %v8449_v36 = vadd.f32 1e-05, %v8447_v34 }
0x28e8   :  { %10389 = vrsqrt.f32 %v8449_v36 }
0x28f0   :  { %v10388_v54 = vpop.eup %10387 }
0x28f1   :  { %v8452_v39 = vmul.f32 %v10388_v54, %v8436_v19 }
0x28f2   :  { %v10390_v44 = vpop.eup %10389 }
0x28f3   :  { %v8460_v40 = vmul.f32 %v9109_v41, %v8452_v39  ;;  %v8453_v33 = vmul.f32 %v10390_v44, %v8437_v9 }
0x28f5   :  { %v8461_v35 = vmul.f32 %v9109_v41, %v8453_v33  ;;  %v8468_v31 = vadd.f32 %v9110_v16, %v8460_v40 }
0x28f7   :  { %v8469_v45 = vadd.f32 %v9110_v16, %v8461_v35 }
0x28f9   :  { %v8470_v7 = vpack.c.bf16 %v8469_v45, %v8468_v31 }
0x28fb   :  { %9939 = vmatmul.mubr.msk.bf16.vlgmr.msra.gmra.mrb[128].mxu1 %vm71_vm0, %v8470_v7 }
0x29ce   :  { %v8547_v38 = vpop.f32.mrb[128].mxu1 }
0x29cf   :  { %v8548_v49 = vadd.f32 %v9111_v48, %v8547_v38  ;;  %v9940_v50 = vpop.f32.mrb[129].mxu1 }
0x29d0   :  { %v8550_v37 = vpop.f32.mrb[130].mxu1 }
0x29d1   :  { %8554 = vst [vmem:[#allocation2] sm:$0xff] %v8548_v49  ;;  %v8551_v42 = vadd.f32 %v9111_v48, %v8550_v37  ;;  %v9941_v52 = vpop.f32.mrb[131].mxu1 }
0x29d3   :  { %8555 = vst [vmem:[#allocation2 + $0x8] sm:$0xff] %v8551_v42 }
0x29d4   :  { %10404 = shalt.err (!%p10401_p4)
}
0x29d5   :  { %s12014_s3 = sld [smem:[#allocation10_spill]] }
0x29db   :  { %s10405_s1 = scalar_lea.hbm %s12014_s3, 256 }
0x29dc   :  { %p10406_p5 = scmp.ne.s32.totalorder %s12014_s3, %s10405_s1  ;;  %p10409_p6 = scmp.lt.u32.totalorder %s10405_s1, %s12014_s3 }
0x29de   :  { %p10411_p7 = pnand %p10409_p6, %p10406_p5 }
0x29e0   :  { %10414 = shalt.err (!%p10411_p7)
}
0x29e1   :  { %s10428_s7 = smov 128   ;;  %s10429_s28 = smov 8  }
0x29e2   :  { %8567 = dma.vmem_to_hbm [thread:$0]  %s8562_s20, 256, %s12014_s3, [#allocation3], %s10428_s7, %s10428_s7, %s10429_s28  }
0x29e3   :  { %10415 = dma.done.wait [#allocation3], 256  }
0x29e4   :  { %10416 = vsyncadd [#allocation3], 4294967040 }
0x29e5   :  { %8571 = vsyncpa [#allocation3], 1 }

</bundles_post_ra>
